<compile_context>
chip_gen: v7x
topology: tpu7x:2x2x1
jax: 0.10.0
libtpu: 0.0.40
codegen_flags: <defaults>
</compile_context>

<pallas_src>
import functools

import jax
import jax.numpy as jnp
from jax.experimental import pallas as pl
from jax.experimental.pallas import tpu as pltpu

IN_DIM = 2048
OUT_DIM = 1024


def _linear_mean_kernel(x_ref, w_ref, b_ref, out_ref, mean_ref, *,
                        seq_len, inv_seq, mask_tail):
    """One grid step = (batch-block i, sequence-tile s).

    x_ref:    (bb, ts, K)  f32 activation tile (cast to bf16 in-kernel)
    w_ref:    (K, N)       bf16 weight, resident (constant index map, 1 buffer)
    b_ref:    (1, N)       f32 bias, resident (1 buffer)
    out_ref:  (bb, ts, N)  linear-output tile
    mean_ref: (bb, 1, N)   f32 running per-batch sum (resident across s),
                           scaled by 1/S in the finalize step.
    """
    s = pl.program_id(1)
    bb, ts, K = x_ref.shape
    N = w_ref.shape[1]

    @pl.when(s == 0)
    def _():
        mean_ref[...] = jnp.zeros_like(mean_ref)

    # In-kernel f32 -> bf16 cast (VPU, hidden under the MXU): activations are
    # read from HBM exactly once.  Leading-dim merge fills the MXU M dim.
    x = x_ref[...].reshape(bb * ts, K).astype(jnp.bfloat16)
    lin = jnp.dot(x, w_ref[...], preferred_element_type=jnp.float32)   # (bb*ts, N)
    lin = (lin + b_ref[...]).reshape(bb, ts, N)                        # f32

    out_ref[...] = lin.astype(out_ref.dtype)     # lane-dense N=1024 stores

    if mask_tail:
        # Rows past seq_len in the (padded) last sequence tile must not
        # contribute to the mean.  (Their out_ref writes are dropped by Pallas.)
        row = s * ts + jax.lax.broadcasted_iota(jnp.int32, (bb, ts, 1), 1)
        lin = jnp.where(row < seq_len, lin, 0.0)
    mean_ref[...] += jnp.sum(lin, axis=1, keepdims=True)

    @pl.when(s == pl.num_programs(1) - 1)
    def _():
        mean_ref[...] = mean_ref[...] * inv_seq   # deferred 1/S scaling


def _pick_tiles(B, S, max_rows=512):
    """Choose (bb, ts): batch-block and sequence-tile sizes (bb*ts <= max_rows)."""
    if S > max_rows:
        # Large feature maps: tile the sequence; 512-row tiles fill the MXU M
        # dimension and bound VMEM (~16 MiB incl. double buffers); the tail
        # tile is masked in-kernel.
        return 1, max_rows
    ts = S
    if S % 8 != 0:
        return 1, ts   # keep the in-kernel (bb, S, K)->(bb*S, K) merge layout-aligned
    divs = [d for d in range(1, B + 1) if B % d == 0 and d * S <= max_rows]
    bb = max(divs)
    # Prefer keeping >= 2 batch blocks (v7x megacore) if the MXU M dim stays
    # reasonably full; otherwise maximize rows per step.
    if B // bb == 1:
        alt = [d for d in divs if d < bb and d * S >= 256]
        if alt:
            bb = max(alt)
    return bb, ts


def extract_image_feature(x, weight, bias, *, bb=None, ts=None,
                          out_dtype=jnp.float32):
    """x: (B, H, W, 2048) f32.  Returns (mean (B, 1024) f32, output (B, H*W, 1024))."""
    B, H, W, K = x.shape
    assert K == IN_DIM
    S = H * W
    N = OUT_DIM

    auto_bb, auto_ts = _pick_tiles(B, S)
    if bb is None:
        bb = auto_bb
    if ts is None:
        ts = auto_ts
    assert B % bb == 0
    assert bb == 1 or ts % 8 == 0

    x3d = x.reshape(B, S, K)                      # free contiguous reshape, stays f32
    if weight.dtype != jnp.bfloat16:              # hoist/cache this cast upstream when possible
        weight = weight.astype(jnp.bfloat16)
    bias2d = bias.reshape(1, N).astype(jnp.float32)

    kernel = functools.partial(
        _linear_mean_kernel,
        seq_len=S, inv_seq=1.0 / S, mask_tail=(S % ts != 0))

    out3d, mean3d = pl.pallas_call(
        kernel,
        out_shape=(
            jax.ShapeDtypeStruct((B, S, N), out_dtype),     # linear output
            jax.ShapeDtypeStruct((B, 1, N), jnp.float32),   # per-batch mean
        ),
        grid_spec=pltpu.PrefetchScalarGridSpec(
            num_scalar_prefetch=0,
            grid=(B // bb, pl.cdiv(S, ts)),
            in_specs=[
                pl.BlockSpec((bb, ts, K), lambda i, s: (i, s, 0)),     # activations (f32)
                pl.BlockSpec((K, N), lambda i, s: (0, 0),
                             pipeline_mode=pl.Buffered(1)),            # weight, resident
                pl.BlockSpec((1, N), lambda i, s: (0, 0),
                             pipeline_mode=pl.Buffered(1)),            # bias, resident
            ],
            out_specs=(
                pl.BlockSpec((bb, ts, N), lambda i, s: (i, s, 0)),     # output tile
                pl.BlockSpec((bb, 1, N), lambda i, s: (i, 0, 0)),      # mean (resident over s)
            ),
        ),
        compiler_params=pltpu.CompilerParams(
            dimension_semantics=("parallel", "arbitrary"),
            vmem_limit_bytes=40 * 1024 * 1024,
        ),
    )(x3d, weight, bias2d)

    return mean3d.reshape(B, N), out3d


if __name__ == "__main__":
    key = jax.random.PRNGKey(0)
    kx1, kx2, kw, kb = jax.random.split(key, 4)

    # Deterministic parameter init (mimics nn.Linear's uniform init range).
    bound = 1.0 / (IN_DIM ** 0.5)
    weight = jax.random.uniform(kw, (IN_DIM, OUT_DIM), jnp.float32, -bound, bound)
    bias = jax.random.uniform(kb, (OUT_DIM,), jnp.float32, -bound, bound)
    # Hoisted one-time weight cast (review: do not re-cast 8 MiB per call).
    weight_bf16 = weight.astype(jnp.bfloat16)

    def check(x, mean, output):
        B, H, W, _ = x.shape
        S = H * W
        assert output.shape == (B, S, OUT_DIM) and mean.shape == (B, OUT_DIM)
        x2d = x.reshape(B * S, IN_DIM)
        # Same bf16 input cast as the kernel (tight tolerance) and pure-f32
        # reference (loose tolerance, covers the bf16 input rounding).
        ref_bf16 = (jnp.dot(x2d.astype(jnp.bfloat16), weight_bf16,
                            preferred_element_type=jnp.float32) + bias
                    ).reshape(B, S, OUT_DIM)
        ref_f32 = (x2d @ weight + bias).reshape(B, S, OUT_DIM)
        assert jnp.allclose(output, ref_bf16, atol=2e-3, rtol=2e-3)
        assert jnp.allclose(mean, ref_bf16.mean(axis=1), atol=2e-3, rtol=2e-3)
        assert jnp.allclose(output, ref_f32, atol=5e-2, rtol=5e-2)
        assert jnp.allclose(mean, ref_f32.mean(axis=1), atol=5e-2, rtol=5e-2)

    # Case 1: small spatial grid -> batch-blocked path (bb=2, ts=S=32, one step).
    x1 = jax.random.normal(kx1, (2, 4, 8, IN_DIM), dtype=jnp.float32)
    mean1, out1 = extract_image_feature(x1, weight_bf16, bias)
    jax.block_until_ready((mean1, out1))
    check(x1, mean1, out1)

    # Case 2: sequence-tiled path with masked tail tile and deferred mean
    # finalize (S=100, ts=64 -> 2 sequence steps, last tile partially valid).
    x2 = jax.random.normal(kx2, (1, 10, 10, IN_DIM), dtype=jnp.float32)
    mean2, out2 = extract_image_feature(x2, weight_bf16, bias, bb=1, ts=64)
    jax.block_until_ready((mean2, out2))
    check(x2, mean2, out2)

    print("KERNEL_OK")
</pallas_src>

<mosaic_0001>
module attributes {stable_mosaic.version = 11 : i64} {
  func.func @_linear_mean_kernel(%arg0: i32, %arg1: i32, %arg2: memref<2x32x2048xf32, #tpu.memory_space<vmem>>, %arg3: memref<2048x1024xbf16, #tpu.memory_space<vmem>>, %arg4: memref<1x1024xf32, #tpu.memory_space<vmem>>, %arg5: memref<2x32x1024xf32, #tpu.memory_space<vmem>>, %arg6: memref<2x1x1024xf32, #tpu.memory_space<vmem>>) attributes {dimension_semantics = [#tpu.dimension_semantics<parallel>, #tpu.dimension_semantics<arbitrary>], iteration_bounds = array<i64: 1, 1>, scalar_prefetch = 0 : i64, scratch_operands = 0 : i64, tpu.core_type = #tpu.core_type<tc>, window_params = [{transform_indices = @transform_0, window_bounds = array<i64: 2, 32, 2048>}, {pipeline_mode = #tpu.pipeline_mode<synchronous>, transform_indices = @transform_1, window_bounds = array<i64: 2048, 1024>}, {pipeline_mode = #tpu.pipeline_mode<synchronous>, transform_indices = @transform_2, window_bounds = array<i64: 1, 1024>}, {transform_indices = @transform_3, window_bounds = array<i64: 2, 32, 1024>}, {transform_indices = @transform_4, window_bounds = array<i64: 2, 1, 1024>}]} {
    %c0_i32 = arith.constant 0 : i32
    %0 = arith.cmpi eq, %arg1, %c0_i32 : i32
    %1 = arith.extui %0 : i1 to i32
    %c0_i32_0 = arith.constant 0 : i32
    %2 = arith.cmpi ne, %1, %c0_i32_0 : i32
    scf.if %2 {
      %cst_19 = arith.constant 0.000000e+00 : f32
      %21 = vector.broadcast %cst_19 : f32 to vector<2x1x1024xf32>
      %c0_20 = arith.constant 0 : index
      %c0_21 = arith.constant 0 : index
      %c0_22 = arith.constant 0 : index
      %22 = vector.load %arg6[%c0_20, %c0_21, %c0_22] : memref<2x1x1024xf32, #tpu.memory_space<vmem>>, vector<2x1x1024xf32>
      tpu.vector_store %arg6[%c0_20, %c0_21, %c0_22], %21 {strides = array<i32>} : memref<2x1x1024xf32, #tpu.memory_space<vmem>>, vector<2x1x1024xf32>,
    } else {
    }
    %c0 = arith.constant 0 : index
    %c0_1 = arith.constant 0 : index
    %c0_2 = arith.constant 0 : index
    %3 = vector.load %arg2[%c0, %c0_1, %c0_2] : memref<2x32x2048xf32, #tpu.memory_space<vmem>>, vector<2x32x2048xf32>
    %4 = vector.shape_cast %3 : vector<2x32x2048xf32> to vector<64x2048xf32>
    %5 = arith.truncf %4 : vector<64x2048xf32> to vector<64x2048xbf16>
    %c0_3 = arith.constant 0 : index
    %c0_4 = arith.constant 0 : index
    %6 = vector.load %arg3[%c0_3, %c0_4] : memref<2048x1024xbf16, #tpu.memory_space<vmem>>, vector<2048x1024xbf16>
    %cst = arith.constant dense<0.000000e+00> : vector<64x1024xf32>
    %7 = tpu.matmul %5, %6, %cst {dimension_numbers = #tpu.dot_dimension_numbers<[1], [0], [0], [1], [0, 0, 1, 1], [], []>} : vector<64x2048xbf16>, vector<2048x1024xbf16>, vector<64x1024xf32> -> vector<64x1024xf32>
    %c0_5 = arith.constant 0 : index
    %c0_6 = arith.constant 0 : index
    %8 = vector.load %arg4[%c0_5, %c0_6] : memref<1x1024xf32, #tpu.memory_space<vmem>>, vector<1x1024xf32>
    %9 = vector.broadcast %8 : vector<1x1024xf32> to vector<64x1024xf32>
    %10 = arith.addf %7, %9 : vector<64x1024xf32>
    %11 = vector.shape_cast %10 : vector<64x1024xf32> to vector<2x32x1024xf32>
    %c0_7 = arith.constant 0 : index
    %c0_8 = arith.constant 0 : index
    %c0_9 = arith.constant 0 : index
    %12 = vector.load %arg5[%c0_7, %c0_8, %c0_9] : memref<2x32x1024xf32, #tpu.memory_space<vmem>>, vector<2x32x1024xf32>
    tpu.vector_store %arg5[%c0_7, %c0_8, %c0_9], %11 {strides = array<i32>} : memref<2x32x1024xf32, #tpu.memory_space<vmem>>, vector<2x32x1024xf32>,
    %c0_10 = arith.constant 0 : index
    %c0_11 = arith.constant 0 : index
    %c0_12 = arith.constant 0 : index
    %13 = vector.load %arg6[%c0_10, %c0_11, %c0_12] : memref<2x1x1024xf32, #tpu.memory_space<vmem>>, vector<2x1x1024xf32>
    %cst_13 = arith.constant dense<0.000000e+00> : vector<2x1024xf32>
    %14 = vector.multi_reduction <add>, %11, %cst_13 [1] : vector<2x32x1024xf32> to vector<2x1024xf32>
    %15 = vector.shape_cast %14 : vector<2x1024xf32> to vector<2x1x1024xf32>
    %16 = arith.addf %13, %15 : vector<2x1x1024xf32>
    %c0_14 = arith.constant 0 : index
    %c0_15 = arith.constant 0 : index
    %c0_16 = arith.constant 0 : index
    %17 = vector.load %arg6[%c0_14, %c0_15, %c0_16] : memref<2x1x1024xf32, #tpu.memory_space<vmem>>, vector<2x1x1024xf32>
    tpu.vector_store %arg6[%c0_14, %c0_15, %c0_16], %16 {strides = array<i32>} : memref<2x1x1024xf32, #tpu.memory_space<vmem>>, vector<2x1x1024xf32>,
    %c0_i32_17 = arith.constant 0 : i32
    %18 = arith.cmpi eq, %arg1, %c0_i32_17 : i32
    %19 = arith.extui %18 : i1 to i32
    %c0_i32_18 = arith.constant 0 : i32
    %20 = arith.cmpi ne, %19, %c0_i32_18 : i32
    scf.if %20 {
      %c0_19 = arith.constant 0 : index
      %c0_20 = arith.constant 0 : index
      %c0_21 = arith.constant 0 : index
      %21 = vector.load %arg6[%c0_19, %c0_20, %c0_21] : memref<2x1x1024xf32, #tpu.memory_space<vmem>>, vector<2x1x1024xf32>
      %cst_22 = arith.constant 3.125000e-02 : f32
      %22 = vector.broadcast %cst_22 : f32 to vector<2x1x1024xf32>
      %23 = arith.mulf %21, %22 : vector<2x1x1024xf32>
      %c0_23 = arith.constant 0 : index
      %c0_24 = arith.constant 0 : index
      %c0_25 = arith.constant 0 : index
      %24 = vector.load %arg6[%c0_23, %c0_24, %c0_25] : memref<2x1x1024xf32, #tpu.memory_space<vmem>>, vector<2x1x1024xf32>
      tpu.vector_store %arg6[%c0_23, %c0_24, %c0_25], %23 {strides = array<i32>} : memref<2x1x1024xf32, #tpu.memory_space<vmem>>, vector<2x1x1024xf32>,
    } else {
    }
    return
  }
  func.func @transform_0(%arg0: i32, %arg1: i32) -> (i32, i32, i32) {
    %c0_i32 = arith.constant 0 : i32
    %c0_i32_0 = arith.constant 0 : i32
    return %arg0, %arg1, %c0_i32 : i32, i32, i32
  }
  func.func @transform_1(%arg0: i32, %arg1: i32) -> (i32, i32) {
    %c0_i32 = arith.constant 0 : i32
    %c0_i32_0 = arith.constant 0 : i32
    %c0_i32_1 = arith.constant 0 : i32
    return %c0_i32, %c0_i32_0 : i32, i32
  }
  func.func @transform_2(%arg0: i32, %arg1: i32) -> (i32, i32) {
    %c0_i32 = arith.constant 0 : i32
    %c0_i32_0 = arith.constant 0 : i32
    %c0_i32_1 = arith.constant 0 : i32
    return %c0_i32, %c0_i32_0 : i32, i32
  }
  func.func @transform_3(%arg0: i32, %arg1: i32) -> (i32, i32, i32) {
    %c0_i32 = arith.constant 0 : i32
    %c0_i32_0 = arith.constant 0 : i32
    return %arg0, %arg1, %c0_i32 : i32, i32, i32
  }
  func.func @transform_4(%arg0: i32, %arg1: i32) -> (i32, i32, i32) {
    %c0_i32 = arith.constant 0 : i32
    %c0_i32_0 = arith.constant 0 : i32
    %c0_i32_1 = arith.constant 0 : i32
    return %arg0, %c0_i32, %c0_i32_0 : i32, i32, i32
  }
}

</mosaic_0001>

<bundles_post_ra>
// kernel: tpu_custom_call.1
= control target key start
LH: loop header
LB: loop body
LE: loop exit
PB: predicated region body
PF: predicated region fallthrough
CT: control target
= control target key end

     0   :  { %10 = vsyncpa [#allocation3], 0  ;;  %s11606_s0 = inlined_call_operand.hbm [shape: f32[2,32,2048], index: 0, kind: input, shape index: {}]   ;;  %s11607_s1 = inlined_call_operand.hbm [shape: bf16[2048,1024], index: 1, kind: input, shape index: {}]   ;;  %s11608_s2 = inlined_call_operand.hbm [shape: f32[1,1024], index: 2, kind: input, shape index: {}]   ;;  %s11609_s3 = inlined_call_operand.hbm [shape: f32[2,32,1024], index: 3, kind: output, shape index: {0}]   ;;  %s11610_s4 = inlined_call_operand.hbm [shape: f32[2,1,1024], index: 4, kind: output, shape index: {1}]  }
   0x1   :  { %11 = vsyncpa [#allocation6], 0 }
   0x2   :  { %12 = vsyncpa [#allocation4], 0 }
   0x3   :  { %13 = vsyncpa [#allocation10], 0  ;;  %s10819_s15 = smov [#allocation5]   ;;  %s10701_s19 = scalar_lea.hbm %s11607_s1, 131072 }
   0x4   :  { %s31_s16 = sshll.u32 %s10819_s15, 4  ;;  %p10702_p0 = scmp.ne.s32.totalorder %s11607_s1, %s10701_s19  ;;  %s32_s16 = int_to_ptr.vmem [resolvable:$true] %s31_s16 }
   0x5   :  { %p10705_p1 = scmp.lt.u32.totalorder %s10701_s19, %s11607_s1 }
   0x7   :  { %p10707_p2 = pnand %p10705_p1, %p10702_p0 }
   0x9   :  { %10710 = shalt.err (!%p10707_p2)
}
   0xa   :  { %s10711_s24 = scalar_lea.vmem %s32_s16, 131072  ;;  %p10716_p4 = scmp.lt.s32.totalorder %s32_s16, %s32_s16 }
   0xb   :  { %p10712_p3 = scmp.ne.s32.totalorder %s32_s16, %s10711_s24  ;;  %p10717_p5 = scmp.lt.s32.totalorder %s10711_s24, %s10711_s24 }
   0xd   :  { %p10718_p6 = por %p10717_p5, %p10716_p4 }
   0xf   :  { %p10719_p7 = pnand %p10718_p6, %p10712_p3 }
  0x11   :  { %10722 = shalt.err (!%p10719_p7)
}
  0x12   :  { %s10820_s25 = smov 512   ;;  %s10821_s26 = smov 32  }
  0x13   :  { %37 = dma.hbm_to_vmem [thread:$0]  %s11607_s1, 131072, %s32_s16, [#allocation6], %s10820_s25, %s10820_s25, %s10821_s26  }
  0x14   :  { %s10822_s29 = smov [#allocation2]   ;;  %s10723_s7 = scalar_lea.hbm %s11606_s0, 16384 }
  0x15   :  { %s19_s30 = sshll.u32 %s10822_s29, 4  ;;  %p10724_p8 = scmp.ne.s32.totalorder %s11606_s0, %s10723_s7  ;;  %s20_s30 = int_to_ptr.vmem [resolvable:$true] %s19_s30 }
  0x16   :  { %p10727_p9 = scmp.lt.u32.totalorder %s10723_s7, %s11606_s0 }
  0x18   :  { %p10729_p10 = pnand %p10727_p9, %p10724_p8 }
  0x1a   :  { %10732 = shalt.err (!%p10729_p10)
}
  0x1b   :  { %s10733_s12 = scalar_lea.vmem %s20_s30, 16384  ;;  %p10738_p12 = scmp.lt.s32.totalorder %s20_s30, %s20_s30 }
  0x1c   :  { %p10734_p11 = scmp.ne.s32.totalorder %s20_s30, %s10733_s12  ;;  %p10739_p13 = scmp.lt.s32.totalorder %s10733_s12, %s10733_s12 }
  0x1e   :  { %p10740_p0 = por %p10739_p13, %p10738_p12 }
  0x20   :  { %p10741_p1 = pnand %p10740_p0, %p10734_p11 }
  0x22   :  { %10744 = shalt.err (!%p10741_p1)
}
  0x23   :  { %s10823_s1 = smov 2048   ;;  %s10824_s13 = smov 128  }
  0x24   :  { %25 = dma.hbm_to_vmem [thread:$0]  %s11606_s0, 16384, %s20_s30, [#allocation3], %s10823_s1, %s10823_s1, %s10824_s13  }
  0x25   :  { %s10825_s16 = smov [#allocation7]   ;;  %s10745_s20 = scalar_lea.hbm %s11608_s2, 128 }
  0x26   :  { %s44_s17 = sshll.u32 %s10825_s16, 4  ;;  %p10746_p2 = scmp.ne.s32.totalorder %s11608_s2, %s10745_s20  ;;  %s45_s17 = int_to_ptr.vmem [resolvable:$true] %s44_s17 }
  0x27   :  { %p10749_p3 = scmp.lt.u32.totalorder %s10745_s20, %s11608_s2 }
  0x29   :  { %p10751_p4 = pnand %p10749_p3, %p10746_p2 }
  0x2b   :  { %10754 = shalt.err (!%p10751_p4)
}
  0x2c   :  { %s10755_s25 = scalar_lea.vmem %s45_s17, 128  ;;  %p10760_p6 = scmp.lt.s32.totalorder %s45_s17, %s45_s17 }
  0x2d   :  { %p10756_p5 = scmp.ne.s32.totalorder %s45_s17, %s10755_s25  ;;  %p10761_p7 = scmp.lt.s32.totalorder %s10755_s25, %s10755_s25 }
  0x2f   :  { %p10762_p8 = por %p10761_p7, %p10760_p6 }
  0x31   :  { %p10763_p9 = pnand %p10762_p8, %p10756_p5 }
  0x33   :  { %10766 = shalt.err (!%p10763_p9)
}
  0x34   :  { %47 = dma.hbm_to_vmem [thread:$0]  %s11608_s2, 128, %s45_s17, [#allocation6]  }
  0x35   :  { %10811 = dma.done.wait [#allocation3], 16384  }
  0x36   :  { %10812 = vsyncadd [#allocation3], 4294950912 }
  0x37   :  { %10813 = dma.done.wait [#allocation6], 131200  }
  0x38   :  { %10814 = vsyncadd [#allocation6], 4294836096  ;;  %v255_v0 = vld [vmem:[#allocation5] sm:$0xff]  ;;  %v256_v2 = vld [vmem:[#allocation5 + $0x8] sm:$0xff]  ;;  %s10827_s2 = smov [#allocation8]  }
  0x39   :  { %v259_v1 = vld [vmem:[#allocation5 + $0x20] sm:$0xff]  ;;  %v260_v4 = vld [vmem:[#allocation5 + $0x28] sm:$0xff]  ;;  %s9121_s27 = sshll.u32 %s10827_s2, 4  ;;  %s9122_s27 = int_to_ptr.vmem [resolvable:$true] %s9121_s27 }
  0x3a   :  { %v9151_v3 = vcombine.high %v255_v0, %v259_v1  ;;  %v9150_v5 = vcombine.low %v255_v0, %v259_v1  ;;  %v263_v6 = vld [vmem:[#allocation5 + $0x40] sm:$0xff]  ;;  %v9153_v8 = vcombine.high %v256_v2, %v260_v4  ;;  %v9152_v9 = vcombine.low %v256_v2, %v260_v4  ;;  %v264_v11 = vld [vmem:[#allocation5 + $0x48] sm:$0xff]  ;;  %s10767_s28 = scalar_lea.vmem %s9122_s27, 8192  ;;  %p10772_p11 = scmp.lt.s32.totalorder %s9122_s27, %s9122_s27 }
  0x3b   :  { %v267_v7 = vld [vmem:[#allocation5 + $0x60] sm:$0xff]  ;;  %v268_v12 = vld [vmem:[#allocation5 + $0x68] sm:$0xff]  ;;  %p10768_p10 = scmp.ne.s32.totalorder %s9122_s27, %s10767_s28  ;;  %p10773_p12 = scmp.lt.s32.totalorder %s10767_s28, %s10767_s28 }
  0x3c   :  { %v9159_v10 = vcombine.high %v263_v6, %v267_v7  ;;  %v271_v13 = vld [vmem:[#allocation5 + $0x80] sm:$0xff]  ;;  %6441 = vmatprep.subr.bf16.mxu0 %v9151_v3  ;;  %v9161_v14 = vcombine.high %v264_v11, %v268_v12  ;;  %v272_v16 = vld [vmem:[#allocation5 + $0x88] sm:$0xff]  ;;  %7025 = vmatprep.subr.bf16.mxu1 %v9153_v8  ;;  %v9158_v18 = vcombine.low %v263_v6, %v267_v7 }
  0x3d   :  { %v275_v15 = vld [vmem:[#allocation5 + $0xa0] sm:$0xff]  ;;  %v276_v17 = vld [vmem:[#allocation5 + $0xa8] sm:$0xff]  ;;  %6442 = vmatpush1.bf16.msra.mxu0 %v9150_v5  ;;  %7026 = vmatpush1.bf16.msra.mxu1 %v9152_v9  ;;  %v9160_v19 = vcombine.low %v264_v11, %v268_v12  ;;  %p10774_p13 = por %p10773_p12, %p10772_p11 }
  0x3e   :  { %6443 = vmatprep.subr.bf16.mxu0 %v9159_v10  ;;  %v9167_v20 = vcombine.high %v271_v13, %v275_v15  ;;  %7027 = vmatprep.subr.bf16.mxu1 %v9161_v14  ;;  %v9169_v21 = vcombine.high %v272_v16, %v276_v17  ;;  %v279_v22 = vld [vmem:[#allocation5 + $0xc0] sm:$0xff]  ;;  %v280_v24 = vld [vmem:[#allocation5 + $0xc8] sm:$0xff]  ;;  %v9166_v26 = vcombine.low %v271_v13, %v275_v15 }
  0x3f   :  { %v283_v23 = vld [vmem:[#allocation5 + $0xe0] sm:$0xff]  ;;  %v284_v25 = vld [vmem:[#allocation5 + $0xe8] sm:$0xff]  ;;  %v9168_v27 = vcombine.low %v272_v16, %v276_v17  ;;  %p10775_p0 = pnand %p10774_p13, %p10768_p10 }
  0x40   :  { %v9175_v28 = vcombine.high %v279_v22, %v283_v23  ;;  %v9177_v29 = vcombine.high %v280_v24, %v284_v25  ;;  %v287_v30 = vld [vmem:[#allocation5 + $0x100] sm:$0xff]  ;;  %v288_v32 = vld [vmem:[#allocation5 + $0x108] sm:$0xff]  ;;  %v9174_v34 = vcombine.low %v279_v22, %v283_v23  ;;  %v9176_v35 = vcombine.low %v280_v24, %v284_v25 }
  0x41   :  { %6444 = vmatpush1.bf16.msra.mxu0 %v9158_v18  ;;  %7028 = vmatpush1.bf16.msra.mxu1 %v9160_v19  ;;  %v291_v31 = vld [vmem:[#allocation5 + $0x120] sm:$0xff]  ;;  %v292_v33 = vld [vmem:[#allocation5 + $0x128] sm:$0xff] }
  0x42   :  { %6445 = vmatprep.subr.bf16.mxu0 %v9167_v20  ;;  %7029 = vmatprep.subr.bf16.mxu1 %v9169_v21  ;;  %v9183_v36 = vcombine.high %v287_v30, %v291_v31  ;;  %v9185_v37 = vcombine.high %v288_v32, %v292_v33  ;;  %v295_v38 = vld [vmem:[#allocation5 + $0x140] sm:$0xff]  ;;  %v296_v40 = vld [vmem:[#allocation5 + $0x148] sm:$0xff]  ;;  %v9182_v42 = vcombine.low %v287_v30, %v291_v31 }
  0x43   :  { %v299_v39 = vld [vmem:[#allocation5 + $0x160] sm:$0xff]  ;;  %v300_v41 = vld [vmem:[#allocation5 + $0x168] sm:$0xff]  ;;  %v9184_v43 = vcombine.low %v288_v32, %v292_v33 }
  0x44   :  { %v9191_v44 = vcombine.high %v295_v38, %v299_v39  ;;  %v9193_v45 = vcombine.high %v296_v40, %v300_v41  ;;  %v303_v46 = vld [vmem:[#allocation5 + $0x180] sm:$0xff]  ;;  %v304_v48 = vld [vmem:[#allocation5 + $0x188] sm:$0xff]  ;;  %v9190_v50 = vcombine.low %v295_v38, %v299_v39  ;;  %v9192_v51 = vcombine.low %v296_v40, %v300_v41 }
  0x45   :  { %6446 = vmatpush1.bf16.msra.mxu0 %v9166_v26  ;;  %7030 = vmatpush1.bf16.msra.mxu1 %v9168_v27  ;;  %v307_v47 = vld [vmem:[#allocation5 + $0x1a0] sm:$0xff]  ;;  %v308_v49 = vld [vmem:[#allocation5 + $0x1a8] sm:$0xff] }
  0x46   :  { %6447 = vmatprep.subr.bf16.mxu0 %v9175_v28  ;;  %7031 = vmatprep.subr.bf16.mxu1 %v9177_v29  ;;  %v9199_v52 = vcombine.high %v303_v46, %v307_v47  ;;  %v64_v53 = vld [vmem:[#allocation2 + $0x8] sm:$0xff]  ;;  %v9201_v55 = vcombine.high %v304_v48, %v308_v49  ;;  %v311_v56 = vld [vmem:[#allocation5 + $0x1c0] sm:$0xff]  ;;  %v9198_v61 = vcombine.low %v303_v46, %v307_v47 }
  0x47   :  { %v80_v54 = vld [vmem:[#allocation2 + $0x88] sm:$0xff]  ;;  %v315_v57 = vld [vmem:[#allocation5 + $0x1e0] sm:$0xff]  ;;  %v9200_v62 = vcombine.low %v304_v48, %v308_v49 }
  0x48   :  { %v10894_v58 = vpack.c.bf16 %v80_v54, %v64_v53  ;;  %v312_v59 = vld [vmem:[#allocation5 + $0x1c8] sm:$0xff]  ;;  %v9207_v63 = vcombine.high %v311_v56, %v315_v57  ;;  %v319_v1 = vld [vmem:[#allocation5 + $0x200] sm:$0xff]  ;;  %v9206_v5 = vcombine.low %v311_v56, %v315_v57 }
  0x49   :  { %6448 = vmatpush1.bf16.msra.mxu0 %v9174_v34  ;;  %7032 = vmatpush1.bf16.msra.mxu1 %v9176_v35  ;;  %v316_v60 = vld [vmem:[#allocation5 + $0x1e8] sm:$0xff]  ;;  %v323_v2 = vld [vmem:[#allocation5 + $0x220] sm:$0xff] }
  0x4a   :  { %6449 = vmatprep.subr.bf16.mxu0 %v9183_v36  ;;  %7033 = vmatprep.subr.bf16.mxu1 %v9185_v37  ;;  %v9209_v0 = vcombine.high %v312_v59, %v316_v60  ;;  %v320_v3 = vld [vmem:[#allocation5 + $0x208] sm:$0xff]  ;;  %v9208_v6 = vcombine.low %v312_v59, %v316_v60  ;;  %v9215_v7 = vcombine.high %v319_v1, %v323_v2  ;;  %v327_v9 = vld [vmem:[#allocation5 + $0x240] sm:$0xff] }
  0x4b   :  { %6473 = vmatprep.mubr.bf16.mxu0 %v10894_v58  ;;  %7057 = vmatprep.mubr.bf16.mxu1 %v10894_v58  ;;  %v324_v4 = vld [vmem:[#allocation5 + $0x228] sm:$0xff]  ;;  %v331_v10 = vld [vmem:[#allocation5 + $0x260] sm:$0xff]  ;;  %v9214_v13 = vcombine.low %v319_v1, %v323_v2 }
  0x4c   :  { %v9217_v8 = vcombine.high %v320_v3, %v324_v4  ;;  %v328_v11 = vld [vmem:[#allocation5 + $0x248] sm:$0xff]  ;;  %v9216_v14 = vcombine.low %v320_v3, %v324_v4  ;;  %v9223_v15 = vcombine.high %v327_v9, %v331_v10  ;;  %v335_v17 = vld [vmem:[#allocation5 + $0x280] sm:$0xff]  ;;  %v9222_v21 = vcombine.low %v327_v9, %v331_v10 }
  0x4d   :  { %6450 = vmatpush1.bf16.msra.mxu0 %v9182_v42  ;;  %7034 = vmatpush1.bf16.msra.mxu1 %v9184_v43  ;;  %v332_v12 = vld [vmem:[#allocation5 + $0x268] sm:$0xff]  ;;  %v339_v18 = vld [vmem:[#allocation5 + $0x2a0] sm:$0xff] }
  0x4e   :  { %6451 = vmatprep.subr.bf16.mxu0 %v9191_v44  ;;  %7035 = vmatprep.subr.bf16.mxu1 %v9193_v45  ;;  %v9225_v16 = vcombine.high %v328_v11, %v332_v12  ;;  %v336_v19 = vld [vmem:[#allocation5 + $0x288] sm:$0xff]  ;;  %v9224_v22 = vcombine.low %v328_v11, %v332_v12  ;;  %v9231_v23 = vcombine.high %v335_v17, %v339_v18  ;;  %v343_v25 = vld [vmem:[#allocation5 + $0x2c0] sm:$0xff] }
  0x4f   :  { %v340_v20 = vld [vmem:[#allocation5 + $0x2a8] sm:$0xff]  ;;  %v347_v26 = vld [vmem:[#allocation5 + $0x2e0] sm:$0xff]  ;;  %v9230_v29 = vcombine.low %v335_v17, %v339_v18 }
  0x50   :  { %v9233_v24 = vcombine.high %v336_v19, %v340_v20  ;;  %v344_v27 = vld [vmem:[#allocation5 + $0x2c8] sm:$0xff]  ;;  %v9232_v30 = vcombine.low %v336_v19, %v340_v20  ;;  %v9239_v31 = vcombine.high %v343_v25, %v347_v26  ;;  %v351_v33 = vld [vmem:[#allocation5 + $0x300] sm:$0xff]  ;;  %v9238_v37 = vcombine.low %v343_v25, %v347_v26 }
  0x51   :  { %6452 = vmatpush1.bf16.msra.mxu0 %v9190_v50  ;;  %7036 = vmatpush1.bf16.msra.mxu1 %v9192_v51  ;;  %v348_v28 = vld [vmem:[#allocation5 + $0x2e8] sm:$0xff]  ;;  %v355_v34 = vld [vmem:[#allocation5 + $0x320] sm:$0xff] }
  0x52   :  { %6453 = vmatprep.subr.bf16.mxu0 %v9199_v52  ;;  %7037 = vmatprep.subr.bf16.mxu1 %v9201_v55  ;;  %v9241_v32 = vcombine.high %v344_v27, %v348_v28  ;;  %v352_v35 = vld [vmem:[#allocation5 + $0x308] sm:$0xff]  ;;  %v9240_v38 = vcombine.low %v344_v27, %v348_v28  ;;  %v9247_v39 = vcombine.high %v351_v33, %v355_v34  ;;  %v359_v41 = vld [vmem:[#allocation5 + $0x340] sm:$0xff] }
  0x53   :  { %v356_v36 = vld [vmem:[#allocation5 + $0x328] sm:$0xff]  ;;  %v363_v42 = vld [vmem:[#allocation5 + $0x360] sm:$0xff]  ;;  %v9246_v45 = vcombine.low %v351_v33, %v355_v34 }
  0x54   :  { %v9249_v40 = vcombine.high %v352_v35, %v356_v36  ;;  %v360_v43 = vld [vmem:[#allocation5 + $0x348] sm:$0xff]  ;;  %v9248_v46 = vcombine.low %v352_v35, %v356_v36  ;;  %v9255_v47 = vcombine.high %v359_v41, %v363_v42  ;;  %v367_v49 = vld [vmem:[#allocation5 + $0x380] sm:$0xff]  ;;  %v9254_v53 = vcombine.low %v359_v41, %v363_v42 }
  0x55   :  { %6454 = vmatpush1.bf16.msra.mxu0 %v9198_v61  ;;  %7038 = vmatpush1.bf16.msra.mxu1 %v9200_v62  ;;  %v364_v44 = vld [vmem:[#allocation5 + $0x368] sm:$0xff]  ;;  %v371_v50 = vld [vmem:[#allocation5 + $0x3a0] sm:$0xff] }
  0x56   :  { %6455 = vmatprep.subr.bf16.mxu0 %v9207_v63  ;;  %7039 = vmatprep.subr.bf16.mxu1 %v9209_v0  ;;  %v9257_v48 = vcombine.high %v360_v43, %v364_v44  ;;  %v368_v51 = vld [vmem:[#allocation5 + $0x388] sm:$0xff]  ;;  %v9256_v54 = vcombine.low %v360_v43, %v364_v44  ;;  %v9263_v55 = vcombine.high %v367_v49, %v371_v50  ;;  %v375_v57 = vld [vmem:[#allocation5 + $0x3c0] sm:$0xff] }
  0x57   :  { %v372_v52 = vld [vmem:[#allocation5 + $0x3a8] sm:$0xff]  ;;  %v379_v59 = vld [vmem:[#allocation5 + $0x3e0] sm:$0xff]  ;;  %v9262_v62 = vcombine.low %v367_v49, %v371_v50 }
  0x58   :  { %v9265_v56 = vcombine.high %v368_v51, %v372_v52  ;;  %v376_v60 = vld [vmem:[#allocation5 + $0x3c8] sm:$0xff]  ;;  %v9264_v63 = vcombine.low %v368_v51, %v372_v52  ;;  %v9271_v0 = vcombine.high %v375_v57, %v379_v59  ;;  %v383_v2 = vld [vmem:[#allocation5 + $0x400] sm:$0xff] }
  0x59   :  { %6456 = vmatpush1.bf16.msra.mxu0 %v9206_v5  ;;  %7040 = vmatpush1.bf16.msra.mxu1 %v9208_v6  ;;  %v380_v61 = vld [vmem:[#allocation5 + $0x3e8] sm:$0xff]  ;;  %v387_v3 = vld [vmem:[#allocation5 + $0x420] sm:$0xff]  ;;  %v9270_v6 = vcombine.low %v375_v57, %v379_v59 }
  0x5a   :  { %6457 = vmatprep.subr.bf16.mxu0 %v9215_v7  ;;  %7041 = vmatprep.subr.bf16.mxu1 %v9217_v8  ;;  %v9273_v1 = vcombine.high %v376_v60, %v380_v61  ;;  %v384_v4 = vld [vmem:[#allocation5 + $0x408] sm:$0xff]  ;;  %v63_v7 = vld [vmem:[#allocation2] sm:$0xff]  ;;  %v9272_v9 = vcombine.low %v376_v60, %v380_v61  ;;  %v9279_v10 = vcombine.high %v383_v2, %v387_v3 }
  0x5b   :  { %v388_v5 = vld [vmem:[#allocation5 + $0x428] sm:$0xff]  ;;  %v79_v8 = vld [vmem:[#allocation2 + $0x80] sm:$0xff]  ;;  %v9278_v19 = vcombine.low %v383_v2, %v387_v3 }
  0x5c   :  { %v9281_v11 = vcombine.high %v384_v4, %v388_v5  ;;  %v391_v12 = vld [vmem:[#allocation5 + $0x440] sm:$0xff]  ;;  %v96_v17 = vld [vmem:[#allocation2 + $0x108] sm:$0xff]  ;;  %v9280_v20 = vcombine.low %v384_v4, %v388_v5 }
  0x5d   :  { %6458 = vmatpush1.bf16.msra.mxu0 %v9214_v13  ;;  %7042 = vmatpush1.bf16.msra.mxu1 %v9216_v14  ;;  %v395_v13 = vld [vmem:[#allocation5 + $0x460] sm:$0xff]  ;;  %v392_v14 = vld [vmem:[#allocation5 + $0x448] sm:$0xff] }
  0x5e   :  { %6459 = vmatprep.subr.bf16.mxu0 %v9223_v15  ;;  %7043 = vmatprep.subr.bf16.mxu1 %v9225_v16  ;;  %v10898_v15 = vpack.c.bf16 %v79_v8, %v63_v7  ;;  %v396_v16 = vld [vmem:[#allocation5 + $0x468] sm:$0xff]  ;;  %v9286_v28 = vcombine.low %v391_v12, %v395_v13  ;;  %v407_v34 = vld [vmem:[#allocation5 + $0x4c0] sm:$0xff] }
  0x5f   :  { %v112_v18 = vld [vmem:[#allocation2 + $0x188] sm:$0xff]  ;;  %v411_v35 = vld [vmem:[#allocation5 + $0x4e0] sm:$0xff] }
  0x60   :  { %v10900_v25 = vpack.c.bf16 %v112_v18, %v96_v17  ;;  %v400_v26 = vld [vmem:[#allocation5 + $0x488] sm:$0xff]  ;;  %v9303_v43 = vcombine.high %v407_v34, %v411_v35  ;;  %v9302_v50 = vcombine.low %v407_v34, %v411_v35  ;;  %v127_v51 = vld [vmem:[#allocation2 + $0x200] sm:$0xff] }
  0x61   :  { %6460 = vmatpush1.bf16.msra.mxu0 %v9222_v21  ;;  %7044 = vmatpush1.bf16.msra.mxu1 %v9224_v22  ;;  %v9287_v21 = vcombine.high %v391_v12, %v395_v13  ;;  %v9289_v22 = vcombine.high %v392_v14, %v396_v16  ;;  %v404_v27 = vld [vmem:[#allocation5 + $0x4a8] sm:$0xff]  ;;  %v143_v52 = vld [vmem:[#allocation2 + $0x280] sm:$0xff] }
  0x62   :  { %6461 = vmatprep.subr.bf16.mxu0 %v9231_v23  ;;  %7045 = vmatprep.subr.bf16.mxu1 %v9233_v24  ;;  %v399_v23 = vld [vmem:[#allocation5 + $0x480] sm:$0xff]  ;;  %v9297_v33 = vcombine.high %v400_v26, %v404_v27  ;;  %v408_v36 = vld [vmem:[#allocation5 + $0x4c8] sm:$0xff]  ;;  %v9296_v42 = vcombine.low %v400_v26, %v404_v27  ;;  %v10914_v61 = vpack.c.bf16 %v143_v52, %v127_v51 }
  0x63   :  { %v403_v24 = vld [vmem:[#allocation5 + $0x4a0] sm:$0xff]  ;;  %v420_v49 = vld [vmem:[#allocation5 + $0x528] sm:$0xff] }
  0x64   :  { %v9294_v41 = vcombine.low %v399_v23, %v403_v24  ;;  %v427_v57 = vld [vmem:[#allocation5 + $0x560] sm:$0xff]  ;;  %v424_v59 = vld [vmem:[#allocation5 + $0x548] sm:$0xff] }
  0x65   :  { %6462 = vmatpush1.bf16.msra.mxu0 %v9230_v29  ;;  %7046 = vmatpush1.bf16.msra.mxu1 %v9232_v30  ;;  %v95_v29 = vld [vmem:[#allocation2 + $0x100] sm:$0xff]  ;;  %v428_v60 = vld [vmem:[#allocation5 + $0x568] sm:$0xff] }
  0x66   :  { %6463 = vmatprep.subr.bf16.mxu0 %v9239_v31  ;;  %7047 = vmatprep.subr.bf16.mxu1 %v9241_v32  ;;  %v111_v30 = vld [vmem:[#allocation2 + $0x180] sm:$0xff]  ;;  %v9288_v31 = vcombine.low %v392_v14, %v396_v16  ;;  %v9295_v32 = vcombine.high %v399_v23, %v403_v24  ;;  %v9321_v3 = vcombine.high %v424_v59, %v428_v60  ;;  %v432_v7 = vld [vmem:[#allocation5 + $0x588] sm:$0xff] }
  0x67   :  { %v431_v4 = vld [vmem:[#allocation5 + $0x580] sm:$0xff]  ;;  %v436_v8 = vld [vmem:[#allocation5 + $0x5a8] sm:$0xff]  ;;  %v9320_v12 = vcombine.low %v424_v59, %v428_v60 }
  0x68   :  { %v435_v5 = vld [vmem:[#allocation5 + $0x5a0] sm:$0xff]  ;;  %v9329_v14 = vcombine.high %v432_v7, %v436_v8  ;;  %v440_v18 = vld [vmem:[#allocation5 + $0x5c8] sm:$0xff]  ;;  %v9328_v24 = vcombine.low %v432_v7, %v436_v8 }
  0x69   :  { %6464 = vmatpush1.bf16.msra.mxu0 %v9238_v37  ;;  %7048 = vmatpush1.bf16.msra.mxu1 %v9240_v38  ;;  %v412_v37 = vld [vmem:[#allocation5 + $0x4e8] sm:$0xff]  ;;  %v10906_v38 = vpack.c.bf16 %v111_v30, %v95_v29  ;;  %v9327_v13 = vcombine.high %v431_v4, %v435_v5  ;;  %v439_v16 = vld [vmem:[#allocation5 + $0x5c0] sm:$0xff]  ;;  %v9326_v23 = vcombine.low %v431_v4, %v435_v5 }
  0x6a   :  { %6465 = vmatprep.subr.bf16.mxu0 %v9247_v39  ;;  %7049 = vmatprep.subr.bf16.mxu1 %v9249_v40  ;;  %v128_v39 = vld [vmem:[#allocation2 + $0x208] sm:$0xff]  ;;  %v9305_v44 = vcombine.high %v408_v36, %v412_v37  ;;  %v443_v17 = vld [vmem:[#allocation5 + $0x5e0] sm:$0xff] }
  0x6b   :  { %v144_v40 = vld [vmem:[#allocation2 + $0x288] sm:$0xff]  ;;  %v9335_v26 = vcombine.high %v439_v16, %v443_v17  ;;  %v451_v29 = vld [vmem:[#allocation5 + $0x620] sm:$0xff] }
  0x6c   :  { %v476_v59 = vld [vmem:[#allocation5 + $0x6e8] sm:$0xff] }
  0x6d   :  { %6466 = vmatpush1.bf16.msra.mxu0 %v9246_v45  ;;  %7050 = vmatpush1.bf16.msra.mxu1 %v9248_v46  ;;  %v415_v45 = vld [vmem:[#allocation5 + $0x500] sm:$0xff]  ;;  %v484_v4 = vld [vmem:[#allocation5 + $0x728] sm:$0xff] }
  0x6e   :  { %6467 = vmatprep.subr.bf16.mxu0 %v9255_v47  ;;  %7051 = vmatprep.subr.bf16.mxu1 %v9257_v48  ;;  %v419_v46 = vld [vmem:[#allocation5 + $0x520] sm:$0xff]  ;;  %v10908_v47 = vpack.c.bf16 %v144_v40, %v128_v39  ;;  %v416_v48 = vld [vmem:[#allocation5 + $0x508] sm:$0xff] }
  0x6f   :  { %v459_v39 = vld [vmem:[#allocation5 + $0x660] sm:$0xff]  ;;  %v456_v40 = vld [vmem:[#allocation5 + $0x648] sm:$0xff] }
  0x71   :  { %6468 = vmatpush1.bf16.msra.mxu0 %v9254_v53  ;;  %7052 = vmatpush1.bf16.msra.mxu1 %v9256_v54  ;;  %v9304_v53 = vcombine.low %v408_v36, %v412_v37  ;;  %v9311_v54 = vcombine.high %v415_v45, %v419_v46  ;;  %v455_v37 = vld [vmem:[#allocation5 + $0x640] sm:$0xff] }
  0x72   :  { %6469 = vmatprep.subr.bf16.mxu0 %v9263_v55  ;;  %7053 = vmatprep.subr.bf16.mxu1 %v9265_v56  ;;  %v9313_v55 = vcombine.high %v416_v48, %v420_v49  ;;  %v423_v56 = vld [vmem:[#allocation5 + $0x540] sm:$0xff]  ;;  %v9350_v51 = vcombine.low %v455_v37, %v459_v39 }
  0x73   :  { %v9319_v2 = vcombine.high %v423_v56, %v427_v57 }
  0x75   :  { %6470 = vmatpush1.bf16.msra.mxu0 %v9262_v62  ;;  %7054 = vmatpush1.bf16.msra.mxu1 %v9264_v63  ;;  %v160_v62 = vld [vmem:[#allocation2 + $0x308] sm:$0xff] }
  0x76   :  { %6471 = vmatprep.subr.bf16.mxu0 %v9271_v0  ;;  %7055 = vmatprep.subr.bf16.mxu1 %v9273_v1  ;;  %v176_v63 = vld [vmem:[#allocation2 + $0x388] sm:$0xff]  ;;  %v9310_v0 = vcombine.low %v415_v45, %v419_v46  ;;  %v9312_v1 = vcombine.low %v416_v48, %v420_v49  ;;  %v463_v46 = vld [vmem:[#allocation5 + $0x680] sm:$0xff] }
  0x77   :  { %v467_v48 = vld [vmem:[#allocation5 + $0x6a0] sm:$0xff]  ;;  %v464_v49 = vld [vmem:[#allocation5 + $0x688] sm:$0xff] }
  0x78   :  { %v9358_v60 = vcombine.low %v463_v46, %v467_v48 }
  0x79   :  { %6472 = vmatpush1.bf16.msra.mxu0 %v9270_v6  ;;  %7056 = vmatpush1.bf16.msra.mxu1 %v9272_v9  ;;  %v10916_v6 = vpack.c.bf16 %v176_v63, %v160_v62  ;;  %v9318_v9 = vcombine.low %v423_v56, %v427_v57  ;;  %v475_v56 = vld [vmem:[#allocation5 + $0x6e0] sm:$0xff]  ;;  %v472_v57 = vld [vmem:[#allocation5 + $0x6c8] sm:$0xff] }
  0x7a   :  { %6514 = vmatprep.subr.bf16.mxu0 %v9279_v10  ;;  %7098 = vmatprep.subr.bf16.mxu1 %v9281_v11  ;;  %v159_v10 = vld [vmem:[#allocation2 + $0x300] sm:$0xff]  ;;  %v9368_v7 = vcombine.low %v472_v57, %v476_v59 }
  0x7b   :  { %v175_v11 = vld [vmem:[#allocation2 + $0x380] sm:$0xff] }
  0x7c   :  { %6474 = vmatmul.mubr.bf16.vlgmr.msra.gmra.mrb[0].mxu0 %v10898_v15  ;;  %7058 = vmatmul.mubr.bf16.vlgmr.msra.gmra.mrb[0].mxu1 %v10898_v15 }
  0x7d   :  { %6515 = vmatpush1.bf16.msra.mxu0 %v9278_v19  ;;  %7099 = vmatpush1.bf16.msra.mxu1 %v9280_v20  ;;  %v444_v19 = vld [vmem:[#allocation5 + $0x5e8] sm:$0xff]  ;;  %v10922_v20 = vpack.c.bf16 %v175_v11, %v159_v10  ;;  %v487_v10 = vld [vmem:[#allocation5 + $0x740] sm:$0xff] }
  0x7e   :  { %6516 = vmatprep.subr.bf16.mxu0 %v9287_v21  ;;  %7100 = vmatprep.subr.bf16.mxu1 %v9289_v22  ;;  %v66_v21 = vld [vmem:[#allocation2 + $0x18] sm:$0xff]  ;;  %v9337_v27 = vcombine.high %v440_v18, %v444_v19  ;;  %v9336_v34 = vcombine.low %v440_v18, %v444_v19  ;;  %v491_v11 = vld [vmem:[#allocation5 + $0x760] sm:$0xff] }
  0x7f   :  { %6483 = vmatprep.mubr.bf16.mxu0 %v10900_v25  ;;  %7067 = vmatprep.mubr.bf16.mxu1 %v10900_v25  ;;  %v82_v22 = vld [vmem:[#allocation2 + $0x98] sm:$0xff]  ;;  %v495_v19 = vld [vmem:[#allocation5 + $0x780] sm:$0xff] }
  0x80   :  { %v10924_v30 = vpack.c.bf16 %v82_v22, %v66_v21  ;;  %v499_v21 = vld [vmem:[#allocation5 + $0x7a0] sm:$0xff]  ;;  %v496_v22 = vld [vmem:[#allocation5 + $0x788] sm:$0xff] }
  0x81   :  { %6517 = vmatpush1.bf16.msra.mxu0 %v9286_v28  ;;  %7101 = vmatpush1.bf16.msra.mxu1 %v9288_v31  ;;  %v447_v28 = vld [vmem:[#allocation5 + $0x600] sm:$0xff]  ;;  %v448_v31 = vld [vmem:[#allocation5 + $0x608] sm:$0xff] }
  0x82   :  { %6518 = vmatprep.subr.bf16.mxu0 %v9295_v32  ;;  %7102 = vmatprep.subr.bf16.mxu1 %v9297_v33  ;;  %v452_v32 = vld [vmem:[#allocation5 + $0x628] sm:$0xff]  ;;  %v9334_v33 = vcombine.low %v439_v16, %v443_v17  ;;  %v9343_v35 = vcombine.high %v447_v28, %v451_v29  ;;  %v9383_v17 = vcombine.high %v487_v10, %v491_v11 }
  0x83   :  { %v9345_v36 = vcombine.high %v448_v31, %v452_v32 }
  0x84   :  { %6484 = vmatmul.mubr.bf16.gmra.mrb[4].mxu0 %v10906_v38  ;;  %7068 = vmatmul.mubr.bf16.gmra.mrb[4].mxu1 %v10906_v38 }
  0x85   :  { %6519 = vmatpush1.bf16.msra.mxu0 %v9294_v41  ;;  %7103 = vmatpush1.bf16.msra.mxu1 %v9296_v42  ;;  %v460_v41 = vld [vmem:[#allocation5 + $0x668] sm:$0xff]  ;;  %v9342_v42 = vcombine.low %v447_v28, %v451_v29  ;;  %v503_v29 = vld [vmem:[#allocation5 + $0x7c0] sm:$0xff] }
  0x86   :  { %6520 = vmatprep.subr.bf16.mxu0 %v9303_v43  ;;  %7104 = vmatprep.subr.bf16.mxu1 %v9305_v44  ;;  %v9344_v43 = vcombine.low %v448_v31, %v452_v32  ;;  %v9351_v44 = vcombine.high %v455_v37, %v459_v39  ;;  %v9353_v45 = vcombine.high %v456_v40, %v460_v41  ;;  %v507_v31 = vld [vmem:[#allocation5 + $0x7e0] sm:$0xff]  ;;  %v504_v32 = vld [vmem:[#allocation5 + $0x7c8] sm:$0xff] }
  0x87   :  { %6493 = vmatprep.mubr.bf16.mxu0 %v10908_v47  ;;  %7077 = vmatprep.mubr.bf16.mxu1 %v10908_v47  ;;  %v9352_v52 = vcombine.low %v456_v40, %v460_v41  ;;  %v511_v39 = vld [vmem:[#allocation5 + $0x800] sm:$0xff]  ;;  %v512_v41 = vld [vmem:[#allocation5 + $0x808] sm:$0xff] }
  0x88   :  { %v515_v40 = vld [vmem:[#allocation5 + $0x820] sm:$0xff] }
  0x89   :  { %6521 = vmatpush1.bf16.msra.mxu0 %v9302_v50  ;;  %7105 = vmatpush1.bf16.msra.mxu1 %v9304_v53  ;;  %v468_v50 = vld [vmem:[#allocation5 + $0x6a8] sm:$0xff]  ;;  %v9359_v53 = vcombine.high %v463_v46, %v467_v48  ;;  %v9407_v48 = vcombine.high %v511_v39, %v515_v40 }
  0x8a   :  { %6522 = vmatprep.subr.bf16.mxu0 %v9311_v54  ;;  %7106 = vmatprep.subr.bf16.mxu1 %v9313_v55  ;;  %v9361_v54 = vcombine.high %v464_v49, %v468_v50  ;;  %v471_v55 = vld [vmem:[#allocation5 + $0x6c0] sm:$0xff]  ;;  %v9360_v62 = vcombine.low %v464_v49, %v468_v50 }
  0x8b   :  { %v9367_v63 = vcombine.high %v471_v55, %v475_v56  ;;  %v9366_v5 = vcombine.low %v471_v55, %v475_v56  ;;  %v519_v50 = vld [vmem:[#allocation5 + $0x840] sm:$0xff]  ;;  %v98_v55 = vld [vmem:[#allocation2 + $0x118] sm:$0xff] }
  0x8c   :  { %6494 = vmatmul.mubr.bf16.gmra.mrb[8].mxu0 %v10914_v61  ;;  %7078 = vmatmul.mubr.bf16.gmra.mrb[8].mxu1 %v10914_v61  ;;  %v114_v56 = vld [vmem:[#allocation2 + $0x198] sm:$0xff] }
  0x8d   :  { %6523 = vmatpush1.bf16.msra.mxu0 %v9310_v0  ;;  %7107 = vmatpush1.bf16.msra.mxu1 %v9312_v1  ;;  %v9369_v0 = vcombine.high %v472_v57, %v476_v59  ;;  %v479_v1 = vld [vmem:[#allocation5 + $0x700] sm:$0xff]  ;;  %v9406_v57 = vcombine.low %v511_v39, %v515_v40  ;;  %v552_v40 = vld [vmem:[#allocation5 + $0x948] sm:$0xff] }
  0x8e   :  { %6524 = vmatprep.subr.bf16.mxu0 %v9319_v2  ;;  %7108 = vmatprep.subr.bf16.mxu1 %v9321_v3  ;;  %v483_v2 = vld [vmem:[#allocation5 + $0x720] sm:$0xff]  ;;  %v480_v3 = vld [vmem:[#allocation5 + $0x708] sm:$0xff] }
  0x8f   :  { %6503 = vmatprep.mubr.bf16.mxu0 %v10916_v6  ;;  %7087 = vmatprep.mubr.bf16.mxu1 %v10916_v6  ;;  %v9375_v8 = vcombine.high %v479_v1, %v483_v2  ;;  %v9376_v16 = vcombine.low %v480_v3, %v484_v4  ;;  %v555_v39 = vld [vmem:[#allocation5 + $0x960] sm:$0xff] }
  0x91   :  { %6525 = vmatpush1.bf16.msra.mxu0 %v9318_v9  ;;  %7109 = vmatpush1.bf16.msra.mxu1 %v9320_v12  ;;  %v9377_v9 = vcombine.high %v480_v3, %v484_v4  ;;  %v488_v12 = vld [vmem:[#allocation5 + $0x748] sm:$0xff] }
  0x92   :  { %6526 = vmatprep.subr.bf16.mxu0 %v9327_v13  ;;  %7110 = vmatprep.subr.bf16.mxu1 %v9329_v14  ;;  %v492_v13 = vld [vmem:[#allocation5 + $0x768] sm:$0xff]  ;;  %v9374_v14 = vcombine.low %v479_v1, %v483_v2  ;;  %v10932_v1 = vpack.c.bf16 %v114_v56, %v98_v55 }
  0x93   :  { %v9385_v18 = vcombine.high %v488_v12, %v492_v13  ;;  %v528_v2 = vld [vmem:[#allocation5 + $0x888] sm:$0xff] }
  0x94   :  { %6504 = vmatmul.mubr.bf16.gmra.mrb[12].mxu0 %v10922_v20  ;;  %7088 = vmatmul.mubr.bf16.gmra.mrb[12].mxu1 %v10922_v20  ;;  %v532_v3 = vld [vmem:[#allocation5 + $0x8a8] sm:$0xff] }
  0x95   :  { %6527 = vmatpush1.bf16.msra.mxu0 %v9326_v23  ;;  %7111 = vmatpush1.bf16.msra.mxu1 %v9328_v24  ;;  %v500_v23 = vld [vmem:[#allocation5 + $0x7a8] sm:$0xff]  ;;  %v9382_v24 = vcombine.low %v487_v10, %v491_v11  ;;  %v9425_v10 = vcombine.high %v528_v2, %v532_v3  ;;  %v535_v11 = vld [vmem:[#allocation5 + $0x8c0] sm:$0xff] }
  0x96   :  { %6528 = vmatprep.subr.bf16.mxu0 %v9335_v26  ;;  %7112 = vmatprep.subr.bf16.mxu1 %v9337_v27  ;;  %v9384_v26 = vcombine.low %v488_v12, %v492_v13  ;;  %v9391_v27 = vcombine.high %v495_v19, %v499_v21  ;;  %v9393_v28 = vcombine.high %v496_v22, %v500_v23  ;;  %v539_v12 = vld [vmem:[#allocation5 + $0x8e0] sm:$0xff]  ;;  %v536_v13 = vld [vmem:[#allocation5 + $0x8c8] sm:$0xff] }
  0x97   :  { %6546 = vmatprep.mubr.bf16.mxu0 %v10924_v30  ;;  %7130 = vmatprep.mubr.bf16.mxu1 %v10924_v30  ;;  %v564_v55 = vld [vmem:[#allocation5 + $0x9a8] sm:$0xff] }
  0x99   :  { %6529 = vmatpush1.bf16.msra.mxu0 %v9334_v33  ;;  %7113 = vmatpush1.bf16.msra.mxu1 %v9336_v34  ;;  %v508_v33 = vld [vmem:[#allocation5 + $0x7e8] sm:$0xff]  ;;  %v9390_v34 = vcombine.low %v495_v19, %v499_v21  ;;  %v9424_v21 = vcombine.low %v528_v2, %v532_v3  ;;  %v571_v2 = vld [vmem:[#allocation5 + $0x9e0] sm:$0xff] }
  0x9a   :  { %6530 = vmatprep.subr.bf16.mxu0 %v9343_v35  ;;  %7114 = vmatprep.subr.bf16.mxu1 %v9345_v36  ;;  %v9392_v35 = vcombine.low %v496_v22, %v500_v23  ;;  %v9399_v36 = vcombine.high %v503_v29, %v507_v31  ;;  %v9401_v37 = vcombine.high %v504_v32, %v508_v33  ;;  %v568_v3 = vld [vmem:[#allocation5 + $0x9c8] sm:$0xff] }
  0x9b   :  { %v9400_v46 = vcombine.low %v504_v32, %v508_v33  ;;  %v9431_v22 = vcombine.high %v535_v11, %v539_v12  ;;  %v129_v32 = vld [vmem:[#allocation2 + $0x210] sm:$0xff] }
  0x9c   :  { %v145_v33 = vld [vmem:[#allocation2 + $0x290] sm:$0xff] }
  0x9d   :  { %6531 = vmatpush1.bf16.msra.mxu0 %v9342_v42  ;;  %7115 = vmatpush1.bf16.msra.mxu1 %v9344_v43  ;;  %v516_v42 = vld [vmem:[#allocation5 + $0x828] sm:$0xff]  ;;  %v9398_v43 = vcombine.low %v503_v29, %v507_v31  ;;  %v9430_v31 = vcombine.low %v535_v11, %v539_v12 }
  0x9e   :  { %6532 = vmatprep.subr.bf16.mxu0 %v9351_v44  ;;  %7116 = vmatprep.subr.bf16.mxu1 %v9353_v45  ;;  %v65_v44 = vld [vmem:[#allocation2 + $0x10] sm:$0xff]  ;;  %v9409_v49 = vcombine.high %v512_v41, %v516_v42  ;;  %v9408_v59 = vcombine.low %v512_v41, %v516_v42  ;;  %v548_v29 = vld [vmem:[#allocation5 + $0x928] sm:$0xff]  ;;  %v10946_v42 = vpack.c.bf16 %v145_v33, %v129_v32 }
  0x9f   :  { %v81_v45 = vld [vmem:[#allocation2 + $0x90] sm:$0xff]  ;;  %v556_v41 = vld [vmem:[#allocation5 + $0x968] sm:$0xff] }
  0xa1   :  { %6533 = vmatpush1.bf16.msra.mxu0 %v9350_v51  ;;  %7117 = vmatpush1.bf16.msra.mxu1 %v9352_v52  ;;  %v523_v51 = vld [vmem:[#allocation5 + $0x860] sm:$0xff]  ;;  %v520_v52 = vld [vmem:[#allocation5 + $0x848] sm:$0xff] }
  0xa2   :  { %6534 = vmatprep.subr.bf16.mxu0 %v9359_v53  ;;  %7118 = vmatprep.subr.bf16.mxu1 %v9361_v54  ;;  %v10930_v53 = vpack.c.bf16 %v81_v45, %v65_v44  ;;  %v524_v54 = vld [vmem:[#allocation5 + $0x868] sm:$0xff]  ;;  %v9414_v4 = vcombine.low %v519_v50, %v523_v51  ;;  %v178_v44 = vld [vmem:[#allocation2 + $0x398] sm:$0xff] }
  0xa5   :  { %6535 = vmatpush1.bf16.msra.mxu0 %v9358_v60  ;;  %7119 = vmatpush1.bf16.msra.mxu1 %v9360_v62  ;;  %v9415_v60 = vcombine.high %v519_v50, %v523_v51  ;;  %v9417_v62 = vcombine.high %v520_v52, %v524_v54  ;;  %v559_v50 = vld [vmem:[#allocation5 + $0x980] sm:$0xff] }
  0xa6   :  { %6536 = vmatprep.subr.bf16.mxu0 %v9367_v63  ;;  %7120 = vmatprep.subr.bf16.mxu1 %v9369_v0  ;;  %v527_v63 = vld [vmem:[#allocation5 + $0x880] sm:$0xff] }
  0xa7   :  { %v531_v0 = vld [vmem:[#allocation5 + $0x8a0] sm:$0xff] }
  0xa8   :  { %v9422_v19 = vcombine.low %v527_v63, %v531_v0  ;;  %v563_v51 = vld [vmem:[#allocation5 + $0x9a0] sm:$0xff] }
  0xa9   :  { %6537 = vmatpush1.bf16.msra.mxu0 %v9366_v5  ;;  %7121 = vmatpush1.bf16.msra.mxu1 %v9368_v7  ;;  %v97_v5 = vld [vmem:[#allocation2 + $0x110] sm:$0xff] }
  0xaa   :  { %6538 = vmatprep.subr.bf16.mxu0 %v9375_v8  ;;  %7122 = vmatprep.subr.bf16.mxu1 %v9377_v9  ;;  %v113_v7 = vld [vmem:[#allocation2 + $0x190] sm:$0xff]  ;;  %v9416_v8 = vcombine.low %v520_v52, %v524_v54  ;;  %v9423_v9 = vcombine.high %v527_v63, %v531_v0  ;;  %v560_v54 = vld [vmem:[#allocation5 + $0x988] sm:$0xff]  ;;  %v567_v0 = vld [vmem:[#allocation5 + $0x9c0] sm:$0xff] }
  0xab   :  { %v9457_v63 = vcombine.high %v560_v54, %v564_v55  ;;  %v9463_v11 = vcombine.high %v567_v0, %v571_v2 }
  0xad   :  { %6539 = vmatpush1.bf16.msra.mxu0 %v9374_v14  ;;  %7123 = vmatpush1.bf16.msra.mxu1 %v9376_v16  ;;  %v540_v14 = vld [vmem:[#allocation5 + $0x8e8] sm:$0xff]  ;;  %v10938_v16 = vpack.c.bf16 %v113_v7, %v97_v5 }
  0xae   :  { %6540 = vmatprep.subr.bf16.mxu0 %v9383_v17  ;;  %7124 = vmatprep.subr.bf16.mxu1 %v9385_v18  ;;  %v130_v17 = vld [vmem:[#allocation2 + $0x218] sm:$0xff]  ;;  %v9433_v23 = vcombine.high %v536_v13, %v540_v14  ;;  %v68_v7 = vld [vmem:[#allocation2 + $0x28] sm:$0xff] }
  0xaf   :  { %v146_v18 = vld [vmem:[#allocation2 + $0x298] sm:$0xff] }
  0xb1   :  { %6541 = vmatpush1.bf16.msra.mxu0 %v9382_v24  ;;  %7125 = vmatpush1.bf16.msra.mxu1 %v9384_v26  ;;  %v543_v24 = vld [vmem:[#allocation5 + $0x900] sm:$0xff] }
  0xb2   :  { %6542 = vmatprep.subr.bf16.mxu0 %v9391_v27  ;;  %7126 = vmatprep.subr.bf16.mxu1 %v9393_v28  ;;  %v547_v26 = vld [vmem:[#allocation5 + $0x920] sm:$0xff]  ;;  %v10940_v27 = vpack.c.bf16 %v146_v18, %v130_v17  ;;  %v544_v28 = vld [vmem:[#allocation5 + $0x908] sm:$0xff] }
  0xb3   :  { %v9438_v45 = vcombine.low %v543_v24, %v547_v26  ;;  %v576_v18 = vld [vmem:[#allocation5 + $0xa08] sm:$0xff] }
  0xb5   :  { %6543 = vmatpush1.bf16.msra.mxu0 %v9390_v34  ;;  %7127 = vmatpush1.bf16.msra.mxu1 %v9392_v35  ;;  %v9432_v34 = vcombine.low %v536_v13, %v540_v14  ;;  %v9439_v35 = vcombine.high %v543_v24, %v547_v26  ;;  %v575_v13 = vld [vmem:[#allocation5 + $0xa00] sm:$0xff] }
  0xb6   :  { %6544 = vmatprep.subr.bf16.mxu0 %v9399_v36  ;;  %7128 = vmatprep.subr.bf16.mxu1 %v9401_v37  ;;  %v9441_v36 = vcombine.high %v544_v28, %v548_v29  ;;  %v551_v37 = vld [vmem:[#allocation5 + $0x940] sm:$0xff] }
  0xb7   :  { %v9446_v56 = vcombine.low %v551_v37, %v555_v39  ;;  %v579_v14 = vld [vmem:[#allocation5 + $0xa20] sm:$0xff] }
  0xb8   :  { %v583_v26 = vld [vmem:[#allocation5 + $0xa40] sm:$0xff]  ;;  %v9470_v32 = vcombine.low %v575_v13, %v579_v14 }
  0xb9   :  { %6545 = vmatpush1.bf16.msra.mxu0 %v9398_v43  ;;  %7129 = vmatpush1.bf16.msra.mxu1 %v9400_v46  ;;  %v162_v43 = vld [vmem:[#allocation2 + $0x318] sm:$0xff]  ;;  %v9440_v46 = vcombine.low %v544_v28, %v548_v29  ;;  %v587_v28 = vld [vmem:[#allocation5 + $0xa60] sm:$0xff]  ;;  %v584_v29 = vld [vmem:[#allocation5 + $0xa48] sm:$0xff] }
  0xba   :  { %6587 = vmatprep.subr.bf16.mxu0 %v9407_v48  ;;  %7171 = vmatprep.subr.bf16.mxu1 %v9409_v49  ;;  %v9447_v48 = vcombine.high %v551_v37, %v555_v39  ;;  %v9449_v49 = vcombine.high %v552_v40, %v556_v41  ;;  %v10948_v52 = vpack.c.bf16 %v178_v44, %v162_v43  ;;  %v595_v37 = vld [vmem:[#allocation5 + $0xaa0] sm:$0xff]  ;;  %v592_v39 = vld [vmem:[#allocation5 + $0xa88] sm:$0xff] }
  0xbc   :  { %6547 = vmatmul.mubr.bf16.vlgmr.msra.gmra.mrb[0].mxu0 %v10930_v53  ;;  %7131 = vmatmul.mubr.bf16.vlgmr.msra.gmra.mrb[0].mxu1 %v10930_v53 }
  0xbd   :  { %6588 = vmatpush1.bf16.msra.mxu0 %v9406_v57  ;;  %7172 = vmatpush1.bf16.msra.mxu1 %v9408_v59  ;;  %v161_v57 = vld [vmem:[#allocation2 + $0x310] sm:$0xff] }
  0xbe   :  { %6589 = vmatprep.subr.bf16.mxu0 %v9415_v60  ;;  %7173 = vmatprep.subr.bf16.mxu1 %v9417_v62  ;;  %v177_v59 = vld [vmem:[#allocation2 + $0x390] sm:$0xff]  ;;  %v9448_v60 = vcombine.low %v552_v40, %v556_v41  ;;  %v9455_v62 = vcombine.high %v559_v50, %v563_v51  ;;  %v596_v40 = vld [vmem:[#allocation5 + $0xaa8] sm:$0xff]  ;;  %v9478_v41 = vcombine.low %v583_v26, %v587_v28 }
  0xbf   :  { %6556 = vmatprep.mubr.bf16.mxu0 %v10932_v1  ;;  %7140 = vmatprep.mubr.bf16.mxu1 %v10932_v1  ;;  %v10954_v5 = vpack.c.bf16 %v177_v59, %v161_v57  ;;  %v607_v57 = vld [vmem:[#allocation5 + $0xb00] sm:$0xff] }
  0xc0   :  { %v611_v59 = vld [vmem:[#allocation5 + $0xb20] sm:$0xff] }
  0xc1   :  { %6590 = vmatpush1.bf16.msra.mxu0 %v9414_v4  ;;  %7174 = vmatpush1.bf16.msra.mxu1 %v9416_v8  ;;  %v572_v4 = vld [vmem:[#allocation5 + $0x9e8] sm:$0xff] }
  0xc2   :  { %6591 = vmatprep.subr.bf16.mxu0 %v9423_v9  ;;  %7175 = vmatprep.subr.bf16.mxu1 %v9425_v10  ;;  %v84_v8 = vld [vmem:[#allocation2 + $0xa8] sm:$0xff]  ;;  %v9454_v9 = vcombine.low %v559_v50, %v563_v51  ;;  %v9456_v10 = vcombine.low %v560_v54, %v564_v55  ;;  %v9465_v12 = vcombine.high %v568_v3, %v572_v4 }
  0xc3   :  { %v10956_v17 = vpack.c.bf16 %v84_v8, %v68_v7  ;;  %v604_v50 = vld [vmem:[#allocation5 + $0xae8] sm:$0xff]  ;;  %v9488_v54 = vcombine.low %v592_v39, %v596_v40  ;;  %v619_v7 = vld [vmem:[#allocation5 + $0xb60] sm:$0xff] }
  0xc4   :  { %6557 = vmatmul.mubr.bf16.gmra.mrb[4].mxu0 %v10938_v16  ;;  %7141 = vmatmul.mubr.bf16.gmra.mrb[4].mxu1 %v10938_v16  ;;  %v616_v8 = vld [vmem:[#allocation5 + $0xb48] sm:$0xff] }
  0xc5   :  { %6592 = vmatpush1.bf16.msra.mxu0 %v9422_v19  ;;  %7176 = vmatpush1.bf16.msra.mxu1 %v9424_v21  ;;  %v580_v19 = vld [vmem:[#allocation5 + $0xa28] sm:$0xff]  ;;  %v9462_v21 = vcombine.low %v567_v0, %v571_v2  ;;  %v9503_v2 = vcombine.high %v607_v57, %v611_v59 }
  0xc6   :  { %6593 = vmatprep.subr.bf16.mxu0 %v9431_v22  ;;  %7177 = vmatprep.subr.bf16.mxu1 %v9433_v23  ;;  %v9464_v22 = vcombine.low %v568_v3, %v572_v4  ;;  %v9471_v23 = vcombine.high %v575_v13, %v579_v14  ;;  %v9473_v24 = vcombine.high %v576_v18, %v580_v19  ;;  %v615_v4 = vld [vmem:[#allocation5 + $0xb40] sm:$0xff] }
  0xc7   :  { %6566 = vmatprep.mubr.bf16.mxu0 %v10940_v27  ;;  %7150 = vmatprep.mubr.bf16.mxu1 %v10940_v27  ;;  %v9472_v33 = vcombine.low %v576_v18, %v580_v19  ;;  %v623_v14 = vld [vmem:[#allocation5 + $0xb80] sm:$0xff]  ;;  %v624_v19 = vld [vmem:[#allocation5 + $0xb88] sm:$0xff] }
  0xc8   :  { %v627_v18 = vld [vmem:[#allocation5 + $0xba0] sm:$0xff] }
  0xc9   :  { %6594 = vmatpush1.bf16.msra.mxu0 %v9430_v31  ;;  %7178 = vmatpush1.bf16.msra.mxu1 %v9432_v34  ;;  %v588_v31 = vld [vmem:[#allocation5 + $0xa68] sm:$0xff]  ;;  %v9479_v34 = vcombine.high %v583_v26, %v587_v28  ;;  %v631_v28 = vld [vmem:[#allocation5 + $0xbc0] sm:$0xff] }
  0xca   :  { %6595 = vmatprep.subr.bf16.mxu0 %v9439_v35  ;;  %7179 = vmatprep.subr.bf16.mxu1 %v9441_v36  ;;  %v9481_v35 = vcombine.high %v584_v29, %v588_v31  ;;  %v591_v36 = vld [vmem:[#allocation5 + $0xa80] sm:$0xff]  ;;  %v9480_v43 = vcombine.low %v584_v29, %v588_v31  ;;  %v632_v31 = vld [vmem:[#allocation5 + $0xbc8] sm:$0xff] }
  0xcb   :  { %v9487_v44 = vcombine.high %v591_v36, %v595_v37  ;;  %v9486_v51 = vcombine.low %v591_v36, %v595_v37  ;;  %v635_v29 = vld [vmem:[#allocation5 + $0xbe0] sm:$0xff] }
  0xcc   :  { %6567 = vmatmul.mubr.bf16.gmra.mrb[8].mxu0 %v10946_v42  ;;  %7151 = vmatmul.mubr.bf16.gmra.mrb[8].mxu1 %v10946_v42  ;;  %v639_v37 = vld [vmem:[#allocation5 + $0xc00] sm:$0xff] }
  0xcd   :  { %6596 = vmatpush1.bf16.msra.mxu0 %v9438_v45  ;;  %7180 = vmatpush1.bf16.msra.mxu1 %v9440_v46  ;;  %v9489_v45 = vcombine.high %v592_v39, %v596_v40  ;;  %v599_v46 = vld [vmem:[#allocation5 + $0xac0] sm:$0xff]  ;;  %v640_v40 = vld [vmem:[#allocation5 + $0xc08] sm:$0xff] }
  0xce   :  { %6597 = vmatprep.subr.bf16.mxu0 %v9447_v48  ;;  %7181 = vmatprep.subr.bf16.mxu1 %v9449_v49  ;;  %v603_v48 = vld [vmem:[#allocation5 + $0xae0] sm:$0xff]  ;;  %v600_v49 = vld [vmem:[#allocation5 + $0xac8] sm:$0xff] }
  0xcf   :  { %6576 = vmatprep.mubr.bf16.mxu0 %v10948_v52  ;;  %7160 = vmatprep.mubr.bf16.mxu1 %v10948_v52  ;;  %v9495_v55 = vcombine.high %v599_v46, %v603_v48  ;;  %v9496_v0 = vcombine.low %v600_v49, %v604_v50  ;;  %v643_v39 = vld [vmem:[#allocation5 + $0xc20] sm:$0xff] }
  0xd1   :  { %6598 = vmatpush1.bf16.msra.mxu0 %v9446_v56  ;;  %7182 = vmatpush1.bf16.msra.mxu1 %v9448_v60  ;;  %v9497_v56 = vcombine.high %v600_v49, %v604_v50  ;;  %v608_v60 = vld [vmem:[#allocation5 + $0xb08] sm:$0xff]  ;;  %v647_v50 = vld [vmem:[#allocation5 + $0xc40] sm:$0xff] }
  0xd2   :  { %6599 = vmatprep.subr.bf16.mxu0 %v9455_v62  ;;  %7183 = vmatprep.subr.bf16.mxu1 %v9457_v63  ;;  %v612_v62 = vld [vmem:[#allocation5 + $0xb28] sm:$0xff]  ;;  %v9494_v63 = vcombine.low %v599_v46, %v603_v48  ;;  %v9535_v48 = vcombine.high %v639_v37, %v643_v39 }
  0xd3   :  { %v9505_v3 = vcombine.high %v608_v60, %v612_v62 }
  0xd4   :  { %6577 = vmatmul.mubr.bf16.gmra.mrb[12].mxu0 %v10954_v5  ;;  %7161 = vmatmul.mubr.bf16.gmra.mrb[12].mxu1 %v10954_v5 }
  0xd5   :  { %6600 = vmatpush1.bf16.msra.mxu0 %v9454_v9  ;;  %7184 = vmatpush1.bf16.msra.mxu1 %v9456_v10  ;;  %v620_v9 = vld [vmem:[#allocation5 + $0xb68] sm:$0xff]  ;;  %v9502_v10 = vcombine.low %v607_v57, %v611_v59 }
  0xd6   :  { %6601 = vmatprep.subr.bf16.mxu0 %v9463_v11  ;;  %7185 = vmatprep.subr.bf16.mxu1 %v9465_v12  ;;  %v9504_v11 = vcombine.low %v608_v60, %v612_v62  ;;  %v9511_v12 = vcombine.high %v615_v4, %v619_v7  ;;  %v9513_v13 = vcombine.high %v616_v8, %v620_v9  ;;  %v100_v57 = vld [vmem:[#allocation2 + $0x128] sm:$0xff] }
  0xd7   :  { %6619 = vmatprep.mubr.bf16.mxu0 %v10956_v17  ;;  %7203 = vmatprep.mubr.bf16.mxu1 %v10956_v17  ;;  %v116_v59 = vld [vmem:[#allocation2 + $0x1a8] sm:$0xff]  ;;  %v9534_v60 = vcombine.low %v639_v37, %v643_v39 }
  0xd8   :  { %v676_v37 = vld [vmem:[#allocation5 + $0xd28] sm:$0xff] }
  0xd9   :  { %6602 = vmatpush1.bf16.msra.mxu0 %v9462_v21  ;;  %7186 = vmatpush1.bf16.msra.mxu1 %v9464_v22  ;;  %v628_v21 = vld [vmem:[#allocation5 + $0xba8] sm:$0xff]  ;;  %v9510_v22 = vcombine.low %v615_v4, %v619_v7  ;;  %v10964_v4 = vpack.c.bf16 %v116_v59, %v100_v57 }
  0xda   :  { %6603 = vmatprep.subr.bf16.mxu0 %v9471_v23  ;;  %7187 = vmatprep.subr.bf16.mxu1 %v9473_v24  ;;  %v9512_v23 = vcombine.low %v616_v8, %v620_v9  ;;  %v9519_v24 = vcombine.high %v623_v14, %v627_v18  ;;  %v9521_v26 = vcombine.high %v624_v19, %v628_v21  ;;  %v656_v7 = vld [vmem:[#allocation5 + $0xc88] sm:$0xff] }
  0xdb   :  { %v660_v8 = vld [vmem:[#allocation5 + $0xca8] sm:$0xff] }
  0xdd   :  { %6604 = vmatpush1.bf16.msra.mxu0 %v9470_v32  ;;  %7188 = vmatpush1.bf16.msra.mxu1 %v9472_v33  ;;  %v636_v32 = vld [vmem:[#allocation5 + $0xbe8] sm:$0xff]  ;;  %v9518_v33 = vcombine.low %v623_v14, %v627_v18  ;;  %v9553_v14 = vcombine.high %v656_v7, %v660_v8  ;;  %v663_v18 = vld [vmem:[#allocation5 + $0xcc0] sm:$0xff] }
  0xde   :  { %6605 = vmatprep.subr.bf16.mxu0 %v9479_v34  ;;  %7189 = vmatprep.subr.bf16.mxu1 %v9481_v35  ;;  %v9520_v34 = vcombine.low %v624_v19, %v628_v21  ;;  %v9527_v35 = vcombine.high %v631_v28, %v635_v29  ;;  %v9529_v36 = vcombine.high %v632_v31, %v636_v32  ;;  %v667_v19 = vld [vmem:[#allocation5 + $0xce0] sm:$0xff]  ;;  %v664_v21 = vld [vmem:[#allocation5 + $0xcc8] sm:$0xff] }
  0xdf   :  { %v9528_v46 = vcombine.low %v632_v31, %v636_v32  ;;  %v9559_v31 = vcombine.high %v663_v18, %v667_v19  ;;  %v9558_v39 = vcombine.low %v663_v18, %v667_v19  ;;  %v699_v18 = vld [vmem:[#allocation5 + $0xde0] sm:$0xff]  ;;  %v696_v19 = vld [vmem:[#allocation5 + $0xdc8] sm:$0xff] }
  0xe1   :  { %6606 = vmatpush1.bf16.msra.mxu0 %v9478_v41  ;;  %7190 = vmatpush1.bf16.msra.mxu1 %v9480_v43  ;;  %v644_v41 = vld [vmem:[#allocation5 + $0xc28] sm:$0xff]  ;;  %v9526_v43 = vcombine.low %v631_v28, %v635_v29  ;;  %v9552_v29 = vcombine.low %v656_v7, %v660_v8 }
  0xe2   :  { %6607 = vmatprep.subr.bf16.mxu0 %v9487_v44  ;;  %7191 = vmatprep.subr.bf16.mxu1 %v9489_v45  ;;  %v67_v44 = vld [vmem:[#allocation2 + $0x20] sm:$0xff]  ;;  %v9537_v49 = vcombine.high %v640_v40, %v644_v41  ;;  %v9536_v62 = vcombine.low %v640_v40, %v644_v41  ;;  %v692_v7 = vld [vmem:[#allocation5 + $0xda8] sm:$0xff] }
  0xe3   :  { %v83_v45 = vld [vmem:[#allocation2 + $0xa0] sm:$0xff] }
  0xe4   :  { %v131_v40 = vld [vmem:[#allocation2 + $0x220] sm:$0xff] }
  0xe5   :  { %6608 = vmatpush1.bf16.msra.mxu0 %v9486_v51  ;;  %7192 = vmatpush1.bf16.msra.mxu1 %v9488_v54  ;;  %v651_v51 = vld [vmem:[#allocation5 + $0xc60] sm:$0xff]  ;;  %v648_v54 = vld [vmem:[#allocation5 + $0xc48] sm:$0xff] }
  0xe6   :  { %6609 = vmatprep.subr.bf16.mxu0 %v9495_v55  ;;  %7193 = vmatprep.subr.bf16.mxu1 %v9497_v56  ;;  %v10962_v55 = vpack.c.bf16 %v83_v45, %v67_v44  ;;  %v652_v56 = vld [vmem:[#allocation5 + $0xc68] sm:$0xff]  ;;  %v9542_v9 = vcombine.low %v647_v50, %v651_v51  ;;  %v147_v41 = vld [vmem:[#allocation2 + $0x2a0] sm:$0xff] }
  0xe9   :  { %6610 = vmatpush1.bf16.msra.mxu0 %v9494_v63  ;;  %7194 = vmatpush1.bf16.msra.mxu1 %v9496_v0  ;;  %v9543_v63 = vcombine.high %v647_v50, %v651_v51  ;;  %v9545_v0 = vcombine.high %v648_v54, %v652_v56  ;;  %v684_v50 = vld [vmem:[#allocation5 + $0xd68] sm:$0xff]  ;;  %v10978_v51 = vpack.c.bf16 %v147_v41, %v131_v40 }
  0xea   :  { %6611 = vmatprep.subr.bf16.mxu0 %v9503_v2  ;;  %7195 = vmatprep.subr.bf16.mxu1 %v9505_v3  ;;  %v655_v2 = vld [vmem:[#allocation5 + $0xc80] sm:$0xff] }
  0xeb   :  { %v659_v3 = vld [vmem:[#allocation5 + $0xca0] sm:$0xff] }
  0xec   :  { %v9550_v28 = vcombine.low %v655_v2, %v659_v3 }
  0xed   :  { %6612 = vmatpush1.bf16.msra.mxu0 %v9502_v10  ;;  %7196 = vmatpush1.bf16.msra.mxu1 %v9504_v11  ;;  %v99_v10 = vld [vmem:[#allocation2 + $0x120] sm:$0xff] }
  0xee   :  { %6613 = vmatprep.subr.bf16.mxu0 %v9511_v12  ;;  %7197 = vmatprep.subr.bf16.mxu1 %v9513_v13  ;;  %v115_v11 = vld [vmem:[#allocation2 + $0x1a0] sm:$0xff]  ;;  %v9544_v12 = vcombine.low %v648_v54, %v652_v56  ;;  %v9551_v13 = vcombine.high %v655_v2, %v659_v3  ;;  %v164_v54 = vld [vmem:[#allocation2 + $0x328] sm:$0xff] }
  0xef   :  { %v180_v56 = vld [vmem:[#allocation2 + $0x3a8] sm:$0xff] }
  0xf0   :  { %v10980_v2 = vpack.c.bf16 %v180_v56, %v164_v54  ;;  %v688_v3 = vld [vmem:[#allocation5 + $0xd88] sm:$0xff] }
  0xf1   :  { %6614 = vmatpush1.bf16.msra.mxu0 %v9510_v22  ;;  %7198 = vmatpush1.bf16.msra.mxu1 %v9512_v23  ;;  %v668_v22 = vld [vmem:[#allocation5 + $0xce8] sm:$0xff]  ;;  %v10970_v23 = vpack.c.bf16 %v115_v11, %v99_v10  ;;  %v179_v10 = vld [vmem:[#allocation2 + $0x3a0] sm:$0xff] }
  0xf2   :  { %6615 = vmatprep.subr.bf16.mxu0 %v9519_v24  ;;  %7199 = vmatprep.subr.bf16.mxu1 %v9521_v26  ;;  %v132_v24 = vld [vmem:[#allocation2 + $0x228] sm:$0xff]  ;;  %v9561_v32 = vcombine.high %v664_v21, %v668_v22 }
  0xf3   :  { %v148_v26 = vld [vmem:[#allocation2 + $0x2a8] sm:$0xff] }
  0xf5   :  { %6616 = vmatpush1.bf16.msra.mxu0 %v9518_v33  ;;  %7200 = vmatpush1.bf16.msra.mxu1 %v9520_v34  ;;  %v671_v33 = vld [vmem:[#allocation5 + $0xd00] sm:$0xff] }
  0xf6   :  { %6617 = vmatprep.subr.bf16.mxu0 %v9527_v35  ;;  %7201 = vmatprep.subr.bf16.mxu1 %v9529_v36  ;;  %v675_v34 = vld [vmem:[#allocation5 + $0xd20] sm:$0xff]  ;;  %v10972_v35 = vpack.c.bf16 %v148_v26, %v132_v24  ;;  %v672_v36 = vld [vmem:[#allocation5 + $0xd08] sm:$0xff]  ;;  %v70_v24 = vld [vmem:[#allocation2 + $0x38] sm:$0xff] }
  0xf7   :  { %v9567_v44 = vcombine.high %v671_v33, %v675_v34  ;;  %v9569_v45 = vcombine.high %v672_v36, %v676_v37  ;;  %v9566_v57 = vcombine.low %v671_v33, %v675_v34  ;;  %v9568_v59 = vcombine.low %v672_v36, %v676_v37  ;;  %v86_v26 = vld [vmem:[#allocation2 + $0xb8] sm:$0xff]  ;;  %v703_v33 = vld [vmem:[#allocation5 + $0xe00] sm:$0xff]  ;;  %v704_v37 = vld [vmem:[#allocation5 + $0xe08] sm:$0xff] }
  0xf8   :  { %v707_v34 = vld [vmem:[#allocation5 + $0xe20] sm:$0xff]  ;;  %v10988_v36 = vpack.c.bf16 %v86_v26, %v70_v24  ;;  %v736_v26 = vld [vmem:[#allocation5 + $0xf08] sm:$0xff] }
  0xf9   :  { %6618 = vmatpush1.bf16.msra.mxu0 %v9526_v43  ;;  %7202 = vmatpush1.bf16.msra.mxu1 %v9528_v46  ;;  %v9560_v43 = vcombine.low %v664_v21, %v668_v22  ;;  %v679_v46 = vld [vmem:[#allocation5 + $0xd40] sm:$0xff]  ;;  %v700_v21 = vld [vmem:[#allocation5 + $0xde8] sm:$0xff] }
  0xfa   :  { %6660 = vmatprep.subr.bf16.mxu0 %v9535_v48  ;;  %7244 = vmatprep.subr.bf16.mxu1 %v9537_v49  ;;  %v683_v48 = vld [vmem:[#allocation5 + $0xd60] sm:$0xff]  ;;  %v680_v49 = vld [vmem:[#allocation5 + $0xd48] sm:$0xff]  ;;  %v9592_v41 = vcombine.low %v696_v19, %v700_v21 }
  0xfb   :  { %v9574_v8 = vcombine.low %v679_v46, %v683_v48  ;;  %v9576_v11 = vcombine.low %v680_v49, %v684_v50  ;;  %v739_v24 = vld [vmem:[#allocation5 + $0xf20] sm:$0xff] }
  0xfc   :  { %6620 = vmatmul.mubr.bf16.vlgmr.msra.gmra.mrb[0].mxu0 %v10962_v55  ;;  %7204 = vmatmul.mubr.bf16.vlgmr.msra.gmra.mrb[0].mxu1 %v10962_v55 }
  0xfd   :  { %6661 = vmatpush1.bf16.msra.mxu0 %v9534_v60  ;;  %7245 = vmatpush1.bf16.msra.mxu1 %v9536_v62  ;;  %v9575_v60 = vcombine.high %v679_v46, %v683_v48  ;;  %v9577_v62 = vcombine.high %v680_v49, %v684_v50  ;;  %v715_v46 = vld [vmem:[#allocation5 + $0xe60] sm:$0xff]  ;;  %v712_v48 = vld [vmem:[#allocation5 + $0xe48] sm:$0xff]  ;;  %v9598_v50 = vcombine.low %v703_v33, %v707_v34 }
  0xfe   :  { %6662 = vmatprep.subr.bf16.mxu0 %v9543_v63  ;;  %7246 = vmatprep.subr.bf16.mxu1 %v9545_v0  ;;  %v687_v63 = vld [vmem:[#allocation5 + $0xd80] sm:$0xff]  ;;  %v716_v49 = vld [vmem:[#allocation5 + $0xe68] sm:$0xff] }
  0xff   :  { %6629 = vmatprep.mubr.bf16.mxu0 %v10964_v4  ;;  %7213 = vmatprep.mubr.bf16.mxu1 %v10964_v4  ;;  %v691_v0 = vld [vmem:[#allocation5 + $0xda0] sm:$0xff] }
 0x101   :  { %6663 = vmatpush1.bf16.msra.mxu0 %v9542_v9  ;;  %7247 = vmatpush1.bf16.msra.mxu1 %v9544_v12  ;;  %v163_v9 = vld [vmem:[#allocation2 + $0x320] sm:$0xff]  ;;  %v9583_v12 = vcombine.high %v687_v63, %v691_v0 }
 0x102   :  { %6664 = vmatprep.subr.bf16.mxu0 %v9551_v13  ;;  %7248 = vmatprep.subr.bf16.mxu1 %v9553_v14  ;;  %v9585_v13 = vcombine.high %v688_v3, %v692_v7  ;;  %v695_v14 = vld [vmem:[#allocation5 + $0xdc0] sm:$0xff]  ;;  %v10986_v22 = vpack.c.bf16 %v179_v10, %v163_v9 }
 0x103   :  { %v9590_v40 = vcombine.low %v695_v14, %v699_v18  ;;  %v727_v9 = vld [vmem:[#allocation5 + $0xec0] sm:$0xff] }
 0x104   :  { %6630 = vmatmul.mubr.bf16.gmra.mrb[4].mxu0 %v10970_v23  ;;  %7214 = vmatmul.mubr.bf16.gmra.mrb[4].mxu1 %v10970_v23  ;;  %v731_v10 = vld [vmem:[#allocation5 + $0xee0] sm:$0xff] }
 0x105   :  { %6665 = vmatpush1.bf16.msra.mxu0 %v9550_v28  ;;  %7249 = vmatpush1.bf16.msra.mxu1 %v9552_v29  ;;  %v9582_v28 = vcombine.low %v687_v63, %v691_v0  ;;  %v9584_v29 = vcombine.low %v688_v3, %v692_v7  ;;  %v724_v63 = vld [vmem:[#allocation5 + $0xea8] sm:$0xff]  ;;  %v9608_v3 = vcombine.low %v712_v48, %v716_v49 }
 0x106   :  { %6666 = vmatprep.subr.bf16.mxu0 %v9559_v31  ;;  %7250 = vmatprep.subr.bf16.mxu1 %v9561_v32  ;;  %v9591_v31 = vcombine.high %v695_v14, %v699_v18  ;;  %v9593_v32 = vcombine.high %v696_v19, %v700_v21  ;;  %v9623_v18 = vcombine.high %v727_v9, %v731_v10  ;;  %v735_v21 = vld [vmem:[#allocation5 + $0xf00] sm:$0xff] }
 0x107   :  { %6639 = vmatprep.mubr.bf16.mxu0 %v10972_v35  ;;  %7223 = vmatprep.mubr.bf16.mxu1 %v10972_v35 }
 0x109   :  { %6667 = vmatpush1.bf16.msra.mxu0 %v9558_v39  ;;  %7251 = vmatpush1.bf16.msra.mxu1 %v9560_v43  ;;  %v708_v39 = vld [vmem:[#allocation5 + $0xe28] sm:$0xff]  ;;  %v9599_v43 = vcombine.high %v703_v33, %v707_v34  ;;  %v743_v34 = vld [vmem:[#allocation5 + $0xf40] sm:$0xff] }
 0x10a   :  { %6668 = vmatprep.subr.bf16.mxu0 %v9567_v44  ;;  %7252 = vmatprep.subr.bf16.mxu1 %v9569_v45  ;;  %v9601_v44 = vcombine.high %v704_v37, %v708_v39  ;;  %v711_v45 = vld [vmem:[#allocation5 + $0xe40] sm:$0xff]  ;;  %v9600_v54 = vcombine.low %v704_v37, %v708_v39  ;;  %v744_v39 = vld [vmem:[#allocation5 + $0xf48] sm:$0xff] }
 0x10b   :  { %v9607_v56 = vcombine.high %v711_v45, %v715_v46  ;;  %v9606_v0 = vcombine.low %v711_v45, %v715_v46  ;;  %v747_v37 = vld [vmem:[#allocation5 + $0xf60] sm:$0xff] }
 0x10c   :  { %6640 = vmatmul.mubr.bf16.gmra.mrb[8].mxu0 %v10978_v51  ;;  %7224 = vmatmul.mubr.bf16.gmra.mrb[8].mxu1 %v10978_v51  ;;  %v751_v46 = vld [vmem:[#allocation5 + $0xf80] sm:$0xff] }
 0x10d   :  { %6669 = vmatpush1.bf16.msra.mxu0 %v9566_v57  ;;  %7253 = vmatpush1.bf16.msra.mxu1 %v9568_v59  ;;  %v9609_v57 = vcombine.high %v712_v48, %v716_v49  ;;  %v719_v59 = vld [vmem:[#allocation5 + $0xe80] sm:$0xff]  ;;  %v752_v49 = vld [vmem:[#allocation5 + $0xf88] sm:$0xff] }
 0x10e   :  { %6670 = vmatprep.subr.bf16.mxu0 %v9575_v60  ;;  %7254 = vmatprep.subr.bf16.mxu1 %v9577_v62  ;;  %v723_v60 = vld [vmem:[#allocation5 + $0xea0] sm:$0xff]  ;;  %v720_v62 = vld [vmem:[#allocation5 + $0xe88] sm:$0xff] }
 0x10f   :  { %6649 = vmatprep.mubr.bf16.mxu0 %v10980_v2  ;;  %7233 = vmatprep.mubr.bf16.mxu1 %v10980_v2  ;;  %v9615_v7 = vcombine.high %v719_v59, %v723_v60  ;;  %v9616_v14 = vcombine.low %v720_v62, %v724_v63  ;;  %v755_v48 = vld [vmem:[#allocation5 + $0xfa0] sm:$0xff] }
 0x111   :  { %6671 = vmatpush1.bf16.msra.mxu0 %v9574_v8  ;;  %7255 = vmatpush1.bf16.msra.mxu1 %v9576_v11  ;;  %v9617_v8 = vcombine.high %v720_v62, %v724_v63  ;;  %v728_v11 = vld [vmem:[#allocation5 + $0xec8] sm:$0xff]  ;;  %v763_v62 = vld [vmem:[#allocation5 + $0xfe0] sm:$0xff] }
 0x112   :  { %6672 = vmatprep.subr.bf16.mxu0 %v9583_v12  ;;  %7256 = vmatprep.subr.bf16.mxu1 %v9585_v13  ;;  %v732_v12 = vld [vmem:[#allocation5 + $0xee8] sm:$0xff]  ;;  %v9614_v13 = vcombine.low %v719_v59, %v723_v60  ;;  %v759_v60 = vld [vmem:[#allocation5 + $0xfc0] sm:$0xff] }
 0x113   :  { %v9625_v19 = vcombine.high %v728_v11, %v732_v12  ;;  %v760_v63 = vld [vmem:[#allocation5 + $0xfc8] sm:$0xff] }
 0x114   :  { %6650 = vmatmul.mubr.bf16.gmra.mrb[12].mxu0 %v10986_v22  ;;  %7234 = vmatmul.mubr.bf16.gmra.mrb[12].mxu1 %v10986_v22 }
 0x115   :  { %6673 = vmatpush1.bf16.msra.mxu0 %v9582_v28  ;;  %7257 = vmatpush1.bf16.msra.mxu1 %v9584_v29  ;;  %v740_v28 = vld [vmem:[#allocation5 + $0xf28] sm:$0xff]  ;;  %v9622_v29 = vcombine.low %v727_v9, %v731_v10  ;;  %v767_v10 = vld [vmem:[#allocation5 + $0x1000] sm:$0xff] }
 0x116   :  { %6674 = vmatprep.subr.bf16.mxu0 %v9591_v31  ;;  %7258 = vmatprep.subr.bf16.mxu1 %v9593_v32  ;;  %v9624_v31 = vcombine.low %v728_v11, %v732_v12  ;;  %v9631_v32 = vcombine.high %v735_v21, %v739_v24  ;;  %v9633_v33 = vcombine.high %v736_v26, %v740_v28  ;;  %v771_v11 = vld [vmem:[#allocation5 + $0x1020] sm:$0xff]  ;;  %v768_v12 = vld [vmem:[#allocation5 + $0x1008] sm:$0xff] }
 0x117   :  { %6692 = vmatprep.mubr.bf16.mxu0 %v10988_v36  ;;  %7276 = vmatprep.mubr.bf16.mxu1 %v10988_v36 }
 0x119   :  { %6675 = vmatpush1.bf16.msra.mxu0 %v9590_v40  ;;  %7259 = vmatpush1.bf16.msra.mxu1 %v9592_v41  ;;  %v748_v40 = vld [vmem:[#allocation5 + $0xf68] sm:$0xff]  ;;  %v9630_v41 = vcombine.low %v735_v21, %v739_v24  ;;  %v9663_v24 = vcombine.high %v767_v10, %v771_v11 }
 0x11a   :  { %6676 = vmatprep.subr.bf16.mxu0 %v9599_v43  ;;  %7260 = vmatprep.subr.bf16.mxu1 %v9601_v44  ;;  %v9632_v43 = vcombine.low %v736_v26, %v740_v28  ;;  %v9639_v44 = vcombine.high %v743_v34, %v747_v37  ;;  %v9641_v45 = vcombine.high %v744_v39, %v748_v40  ;;  %v775_v28 = vld [vmem:[#allocation5 + $0x1040] sm:$0xff] }
 0x11d   :  { %6677 = vmatpush1.bf16.msra.mxu0 %v9598_v50  ;;  %7261 = vmatpush1.bf16.msra.mxu1 %v9600_v54  ;;  %v756_v50 = vld [vmem:[#allocation5 + $0xfa8] sm:$0xff]  ;;  %v9638_v54 = vcombine.low %v743_v34, %v747_v37  ;;  %v102_v34 = vld [vmem:[#allocation2 + $0x138] sm:$0xff] }
 0x11e   :  { %6678 = vmatprep.subr.bf16.mxu0 %v9607_v56  ;;  %7262 = vmatprep.subr.bf16.mxu1 %v9609_v57  ;;  %v9640_v56 = vcombine.low %v744_v39, %v748_v40  ;;  %v9647_v57 = vcombine.high %v751_v46, %v755_v48  ;;  %v9649_v59 = vcombine.high %v752_v49, %v756_v50  ;;  %v118_v37 = vld [vmem:[#allocation2 + $0x1b8] sm:$0xff] }
 0x11f   :  { %v9662_v39 = vcombine.low %v767_v10, %v771_v11 }
 0x121   :  { %6679 = vmatpush1.bf16.msra.mxu0 %v9606_v0  ;;  %7263 = vmatpush1.bf16.msra.mxu1 %v9608_v3  ;;  %v764_v0 = vld [vmem:[#allocation5 + $0xfe8] sm:$0xff]  ;;  %v9646_v3 = vcombine.low %v751_v46, %v755_v48  ;;  %v10996_v46 = vpack.c.bf16 %v118_v37, %v102_v34  ;;  %v807_v37 = vld [vmem:[#allocation5 + $0x1140] sm:$0xff] }
 0x122   :  { %6680 = vmatprep.subr.bf16.mxu0 %v9615_v7  ;;  %7264 = vmatprep.subr.bf16.mxu1 %v9617_v8  ;;  %v9648_v7 = vcombine.low %v752_v49, %v756_v50  ;;  %v9655_v8 = vcombine.high %v759_v60, %v763_v62  ;;  %v9657_v9 = vcombine.high %v760_v63, %v764_v0  ;;  %v784_v48 = vld [vmem:[#allocation5 + $0x1088] sm:$0xff] }
 0x123   :  { %v9656_v21 = vcombine.low %v760_v63, %v764_v0  ;;  %v788_v49 = vld [vmem:[#allocation5 + $0x10a8] sm:$0xff]  ;;  %v795_v63 = vld [vmem:[#allocation5 + $0x10e0] sm:$0xff] }
 0x124   :  { %v792_v0 = vld [vmem:[#allocation5 + $0x10c8] sm:$0xff]  ;;  %v9680_v11 = vcombine.low %v784_v48, %v788_v49 }
 0x125   :  { %6681 = vmatpush1.bf16.msra.mxu0 %v9614_v13  ;;  %7265 = vmatpush1.bf16.msra.mxu1 %v9616_v14  ;;  %v772_v13 = vld [vmem:[#allocation5 + $0x1028] sm:$0xff]  ;;  %v9654_v14 = vcombine.low %v759_v60, %v763_v62  ;;  %v9681_v60 = vcombine.high %v784_v48, %v788_v49  ;;  %v791_v62 = vld [vmem:[#allocation5 + $0x10c0] sm:$0xff] }
 0x126   :  { %6682 = vmatprep.subr.bf16.mxu0 %v9623_v18  ;;  %7266 = vmatprep.subr.bf16.mxu1 %v9625_v19  ;;  %v69_v18 = vld [vmem:[#allocation2 + $0x30] sm:$0xff]  ;;  %v9665_v26 = vcombine.high %v768_v12, %v772_v13  ;;  %v9664_v40 = vcombine.low %v768_v12, %v772_v13  ;;  %v9687_v12 = vcombine.high %v791_v62, %v795_v63 }
 0x127   :  { %v85_v19 = vld [vmem:[#allocation2 + $0xb0] sm:$0xff] }
 0x129   :  { %6683 = vmatpush1.bf16.msra.mxu0 %v9622_v29  ;;  %7267 = vmatpush1.bf16.msra.mxu1 %v9624_v31  ;;  %v779_v29 = vld [vmem:[#allocation5 + $0x1060] sm:$0xff]  ;;  %v776_v31 = vld [vmem:[#allocation5 + $0x1048] sm:$0xff] }
 0x12a   :  { %6684 = vmatprep.subr.bf16.mxu0 %v9631_v32  ;;  %7268 = vmatprep.subr.bf16.mxu1 %v9633_v33  ;;  %v10994_v32 = vpack.c.bf16 %v85_v19, %v69_v18  ;;  %v780_v33 = vld [vmem:[#allocation5 + $0x1068] sm:$0xff]  ;;  %v9670_v50 = vcombine.low %v775_v28, %v779_v29  ;;  %v803_v18 = vld [vmem:[#allocation5 + $0x1120] sm:$0xff] }
 0x12d   :  { %6685 = vmatpush1.bf16.msra.mxu0 %v9630_v41  ;;  %7269 = vmatpush1.bf16.msra.mxu1 %v9632_v43  ;;  %v9671_v41 = vcombine.high %v775_v28, %v779_v29  ;;  %v9673_v43 = vcombine.high %v776_v31, %v780_v33  ;;  %v133_v28 = vld [vmem:[#allocation2 + $0x230] sm:$0xff] }
 0x12e   :  { %6686 = vmatprep.subr.bf16.mxu0 %v9639_v44  ;;  %7270 = vmatprep.subr.bf16.mxu1 %v9641_v45  ;;  %v783_v44 = vld [vmem:[#allocation5 + $0x1080] sm:$0xff]  ;;  %v149_v29 = vld [vmem:[#allocation2 + $0x2b0] sm:$0xff] }
 0x12f   :  { %v787_v45 = vld [vmem:[#allocation5 + $0x10a0] sm:$0xff] }
 0x130   :  { %v9678_v10 = vcombine.low %v783_v44, %v787_v45 }
 0x131   :  { %6687 = vmatpush1.bf16.msra.mxu0 %v9638_v54  ;;  %7271 = vmatpush1.bf16.msra.mxu1 %v9640_v56  ;;  %v101_v54 = vld [vmem:[#allocation2 + $0x130] sm:$0xff] }
 0x132   :  { %6688 = vmatprep.subr.bf16.mxu0 %v9647_v57  ;;  %7272 = vmatprep.subr.bf16.mxu1 %v9649_v59  ;;  %v117_v56 = vld [vmem:[#allocation2 + $0x1b0] sm:$0xff]  ;;  %v9672_v57 = vcombine.low %v776_v31, %v780_v33  ;;  %v9679_v59 = vcombine.high %v783_v44, %v787_v45  ;;  %v166_v44 = vld [vmem:[#allocation2 + $0x338] sm:$0xff] }
 0x133   :  { %v182_v45 = vld [vmem:[#allocation2 + $0x3b8] sm:$0xff] }
 0x135   :  { %6689 = vmatpush1.bf16.msra.mxu0 %v9646_v3  ;;  %7273 = vmatpush1.bf16.msra.mxu1 %v9648_v7  ;;  %v796_v3 = vld [vmem:[#allocation5 + $0x10e8] sm:$0xff]  ;;  %v11002_v7 = vpack.c.bf16 %v117_v56, %v101_v54  ;;  %v815_v56 = vld [vmem:[#allocation5 + $0x1180] sm:$0xff] }
 0x136   :  { %6690 = vmatprep.subr.bf16.mxu0 %v9655_v8  ;;  %7274 = vmatprep.subr.bf16.mxu1 %v9657_v9  ;;  %v134_v8 = vld [vmem:[#allocation2 + $0x238] sm:$0xff]  ;;  %v9689_v13 = vcombine.high %v792_v0, %v796_v3  ;;  %v9688_v31 = vcombine.low %v792_v0, %v796_v3  ;;  %v165_v0 = vld [vmem:[#allocation2 + $0x330] sm:$0xff] }
 0x137   :  { %v150_v9 = vld [vmem:[#allocation2 + $0x2b8] sm:$0xff]  ;;  %v181_v3 = vld [vmem:[#allocation2 + $0x3b0] sm:$0xff] }
 0x138   :  { %v11004_v19 = vpack.c.bf16 %v150_v9, %v134_v8 }
 0x139   :  { %6691 = vmatpush1.bf16.msra.mxu0 %v9654_v14  ;;  %7275 = vmatpush1.bf16.msra.mxu1 %v9656_v21  ;;  %v799_v14 = vld [vmem:[#allocation5 + $0x1100] sm:$0xff]  ;;  %v800_v21 = vld [vmem:[#allocation5 + $0x1108] sm:$0xff] }
 0x13a   :  { %6733 = vmatprep.subr.bf16.mxu0 %v9663_v24  ;;  %7317 = vmatprep.subr.bf16.mxu1 %v9665_v26  ;;  %v804_v24 = vld [vmem:[#allocation5 + $0x1128] sm:$0xff]  ;;  %v9686_v26 = vcombine.low %v791_v62, %v795_v63  ;;  %v9695_v33 = vcombine.high %v799_v14, %v803_v18  ;;  %v9694_v48 = vcombine.low %v799_v14, %v803_v18 }
 0x13b   :  { %v9697_v34 = vcombine.high %v800_v21, %v804_v24  ;;  %v9696_v49 = vcombine.low %v800_v21, %v804_v24  ;;  %v820_v62 = vld [vmem:[#allocation5 + $0x11a8] sm:$0xff]  ;;  %v11018_v18 = vpack.c.bf16 %v181_v3, %v165_v0  ;;  %v847_v0 = vld [vmem:[#allocation5 + $0x1280] sm:$0xff] }
 0x13c   :  { %6693 = vmatmul.mubr.bf16.vlgmr.msra.gmra.mrb[0].mxu0 %v10994_v32  ;;  %7277 = vmatmul.mubr.bf16.vlgmr.msra.gmra.mrb[0].mxu1 %v10994_v32  ;;  %v828_v14 = vld [vmem:[#allocation5 + $0x11e8] sm:$0xff]  ;;  %v851_v3 = vld [vmem:[#allocation5 + $0x12a0] sm:$0xff] }
 0x13d   :  { %6734 = vmatpush1.bf16.msra.mxu0 %v9662_v39  ;;  %7318 = vmatpush1.bf16.msra.mxu1 %v9664_v40  ;;  %v811_v39 = vld [vmem:[#allocation5 + $0x1160] sm:$0xff]  ;;  %v808_v40 = vld [vmem:[#allocation5 + $0x1148] sm:$0xff] }
 0x13e   :  { %6735 = vmatprep.subr.bf16.mxu0 %v9671_v41  ;;  %7319 = vmatprep.subr.bf16.mxu1 %v9673_v43  ;;  %v812_v41 = vld [vmem:[#allocation5 + $0x1168] sm:$0xff]  ;;  %v11010_v43 = vpack.c.bf16 %v149_v29, %v133_v28  ;;  %v9702_v63 = vcombine.low %v807_v37, %v811_v39 }
 0x13f   :  { %6702 = vmatprep.mubr.bf16.mxu0 %v10996_v46  ;;  %7286 = vmatprep.mubr.bf16.mxu1 %v10996_v46  ;;  %v9705_v54 = vcombine.high %v808_v40, %v812_v41  ;;  %v9704_v8 = vcombine.low %v808_v40, %v812_v41  ;;  %v72_v21 = vld [vmem:[#allocation2 + $0x48] sm:$0xff] }
 0x140   :  { %v88_v24 = vld [vmem:[#allocation2 + $0xc8] sm:$0xff] }
 0x141   :  { %6736 = vmatpush1.bf16.msra.mxu0 %v9670_v50  ;;  %7320 = vmatpush1.bf16.msra.mxu1 %v9672_v57  ;;  %v9703_v50 = vcombine.high %v807_v37, %v811_v39  ;;  %v819_v57 = vld [vmem:[#allocation5 + $0x11a0] sm:$0xff]  ;;  %v11020_v37 = vpack.c.bf16 %v88_v24, %v72_v21  ;;  %v832_v39 = vld [vmem:[#allocation5 + $0x1208] sm:$0xff] }
 0x142   :  { %6737 = vmatprep.subr.bf16.mxu0 %v9679_v59  ;;  %7321 = vmatprep.subr.bf16.mxu1 %v9681_v60  ;;  %v11012_v59 = vpack.c.bf16 %v182_v45, %v166_v44  ;;  %v816_v60 = vld [vmem:[#allocation5 + $0x1188] sm:$0xff]  ;;  %v9711_v9 = vcombine.high %v815_v56, %v819_v57  ;;  %v859_v21 = vld [vmem:[#allocation5 + $0x12e0] sm:$0xff] }
 0x143   :  { %v9712_v28 = vcombine.low %v816_v60, %v820_v62  ;;  %v836_v40 = vld [vmem:[#allocation5 + $0x1228] sm:$0xff] }
 0x144   :  { %6703 = vmatmul.mubr.bf16.gmra.mrb[4].mxu0 %v11002_v7  ;;  %7287 = vmatmul.mubr.bf16.gmra.mrb[4].mxu1 %v11002_v7  ;;  %v856_v24 = vld [vmem:[#allocation5 + $0x12c8] sm:$0xff] }
 0x145   :  { %6738 = vmatpush1.bf16.msra.mxu0 %v9678_v10  ;;  %7322 = vmatpush1.bf16.msra.mxu1 %v9680_v11  ;;  %v9713_v10 = vcombine.high %v816_v60, %v820_v62  ;;  %v823_v11 = vld [vmem:[#allocation5 + $0x11c0] sm:$0xff]  ;;  %v9728_v60 = vcombine.low %v832_v39, %v836_v40 }
 0x146   :  { %6739 = vmatprep.subr.bf16.mxu0 %v9687_v12  ;;  %7323 = vmatprep.subr.bf16.mxu1 %v9689_v13  ;;  %v827_v12 = vld [vmem:[#allocation5 + $0x11e0] sm:$0xff]  ;;  %v824_v13 = vld [vmem:[#allocation5 + $0x11c8] sm:$0xff] }
 0x147   :  { %6712 = vmatprep.mubr.bf16.mxu0 %v11004_v19  ;;  %7296 = vmatprep.mubr.bf16.mxu1 %v11004_v19  ;;  %v9719_v29 = vcombine.high %v823_v11, %v827_v12  ;;  %v9718_v41 = vcombine.low %v823_v11, %v827_v12  ;;  %v9720_v44 = vcombine.low %v824_v13, %v828_v14 }
 0x148   :  { %v9743_v12 = vcombine.high %v847_v0, %v851_v3 }
 0x149   :  { %6740 = vmatpush1.bf16.msra.mxu0 %v9686_v26  ;;  %7324 = vmatpush1.bf16.msra.mxu1 %v9688_v31  ;;  %v9710_v26 = vcombine.low %v815_v56, %v819_v57  ;;  %v9721_v31 = vcombine.high %v824_v13, %v828_v14  ;;  %v844_v56 = vld [vmem:[#allocation5 + $0x1268] sm:$0xff]  ;;  %v855_v14 = vld [vmem:[#allocation5 + $0x12c0] sm:$0xff] }
 0x14a   :  { %6741 = vmatprep.subr.bf16.mxu0 %v9695_v33  ;;  %7325 = vmatprep.subr.bf16.mxu1 %v9697_v34  ;;  %v831_v33 = vld [vmem:[#allocation5 + $0x1200] sm:$0xff] }
 0x14b   :  { %v835_v34 = vld [vmem:[#allocation5 + $0x1220] sm:$0xff] }
 0x14c   :  { %6713 = vmatmul.mubr.bf16.gmra.mrb[8].mxu0 %v11010_v43  ;;  %7297 = vmatmul.mubr.bf16.gmra.mrb[8].mxu1 %v11010_v43  ;;  %v9727_v45 = vcombine.high %v831_v33, %v835_v34  ;;  %v9726_v57 = vcombine.low %v831_v33, %v835_v34  ;;  %v863_v34 = vld [vmem:[#allocation5 + $0x1300] sm:$0xff] }
 0x14d   :  { %6742 = vmatpush1.bf16.msra.mxu0 %v9694_v48  ;;  %7326 = vmatpush1.bf16.msra.mxu1 %v9696_v49  ;;  %v9729_v48 = vcombine.high %v832_v39, %v836_v40  ;;  %v839_v49 = vld [vmem:[#allocation5 + $0x1240] sm:$0xff]  ;;  %v864_v40 = vld [vmem:[#allocation5 + $0x1308] sm:$0xff] }
 0x14e   :  { %6743 = vmatprep.subr.bf16.mxu0 %v9703_v50  ;;  %7327 = vmatprep.subr.bf16.mxu1 %v9705_v54  ;;  %v843_v50 = vld [vmem:[#allocation5 + $0x1260] sm:$0xff]  ;;  %v840_v54 = vld [vmem:[#allocation5 + $0x1248] sm:$0xff] }
 0x14f   :  { %6722 = vmatprep.mubr.bf16.mxu0 %v11012_v59  ;;  %7306 = vmatprep.mubr.bf16.mxu1 %v11012_v59  ;;  %v9735_v62 = vcombine.high %v839_v49, %v843_v50  ;;  %v9736_v11 = vcombine.low %v840_v54, %v844_v56  ;;  %v867_v39 = vld [vmem:[#allocation5 + $0x1320] sm:$0xff] }
 0x151   :  { %6744 = vmatpush1.bf16.msra.mxu0 %v9702_v63  ;;  %7328 = vmatpush1.bf16.msra.mxu1 %v9704_v8  ;;  %v9737_v63 = vcombine.high %v840_v54, %v844_v56  ;;  %v848_v8 = vld [vmem:[#allocation5 + $0x1288] sm:$0xff]  ;;  %v875_v54 = vld [vmem:[#allocation5 + $0x1360] sm:$0xff] }
 0x152   :  { %6745 = vmatprep.subr.bf16.mxu0 %v9711_v9  ;;  %7329 = vmatprep.subr.bf16.mxu1 %v9713_v10  ;;  %v852_v9 = vld [vmem:[#allocation5 + $0x12a8] sm:$0xff]  ;;  %v9734_v10 = vcombine.low %v839_v49, %v843_v50  ;;  %v871_v50 = vld [vmem:[#allocation5 + $0x1340] sm:$0xff] }
 0x153   :  { %v9745_v13 = vcombine.high %v848_v8, %v852_v9  ;;  %v872_v56 = vld [vmem:[#allocation5 + $0x1348] sm:$0xff] }
 0x154   :  { %6723 = vmatmul.mubr.bf16.gmra.mrb[12].mxu0 %v11018_v18  ;;  %7307 = vmatmul.mubr.bf16.gmra.mrb[12].mxu1 %v11018_v18 }
 0x155   :  { %6746 = vmatpush1.bf16.msra.mxu0 %v9710_v26  ;;  %7330 = vmatpush1.bf16.msra.mxu1 %v9712_v28  ;;  %v860_v26 = vld [vmem:[#allocation5 + $0x12e8] sm:$0xff]  ;;  %v9742_v28 = vcombine.low %v847_v0, %v851_v3  ;;  %v879_v3 = vld [vmem:[#allocation5 + $0x1380] sm:$0xff] }
 0x156   :  { %6747 = vmatprep.subr.bf16.mxu0 %v9719_v29  ;;  %7331 = vmatprep.subr.bf16.mxu1 %v9721_v31  ;;  %v9744_v29 = vcombine.low %v848_v8, %v852_v9  ;;  %v9751_v31 = vcombine.high %v855_v14, %v859_v21  ;;  %v9753_v33 = vcombine.high %v856_v24, %v860_v26  ;;  %v883_v8 = vld [vmem:[#allocation5 + $0x13a0] sm:$0xff]  ;;  %v880_v9 = vld [vmem:[#allocation5 + $0x1388] sm:$0xff] }
 0x157   :  { %6765 = vmatprep.mubr.bf16.mxu0 %v11020_v37  ;;  %7349 = vmatprep.mubr.bf16.mxu1 %v11020_v37 }
 0x159   :  { %6748 = vmatpush1.bf16.msra.mxu0 %v9718_v41  ;;  %7332 = vmatpush1.bf16.msra.mxu1 %v9720_v44  ;;  %v868_v41 = vld [vmem:[#allocation5 + $0x1328] sm:$0xff]  ;;  %v9750_v44 = vcombine.low %v855_v14, %v859_v21  ;;  %v887_v21 = vld [vmem:[#allocation5 + $0x13c0] sm:$0xff] }
 0x15a   :  { %6749 = vmatprep.subr.bf16.mxu0 %v9727_v45  ;;  %7333 = vmatprep.subr.bf16.mxu1 %v9729_v48  ;;  %v9752_v45 = vcombine.low %v856_v24, %v860_v26  ;;  %v9759_v48 = vcombine.high %v863_v34, %v867_v39  ;;  %v9761_v49 = vcombine.high %v864_v40, %v868_v41  ;;  %v891_v24 = vld [vmem:[#allocation5 + $0x13e0] sm:$0xff]  ;;  %v888_v26 = vld [vmem:[#allocation5 + $0x13c8] sm:$0xff] }
 0x15d   :  { %6750 = vmatpush1.bf16.msra.mxu0 %v9726_v57  ;;  %7334 = vmatpush1.bf16.msra.mxu1 %v9728_v60  ;;  %v876_v57 = vld [vmem:[#allocation5 + $0x1368] sm:$0xff]  ;;  %v9758_v60 = vcombine.low %v863_v34, %v867_v39  ;;  %v895_v39 = vld [vmem:[#allocation5 + $0x1400] sm:$0xff] }
 0x15e   :  { %6751 = vmatprep.subr.bf16.mxu0 %v9735_v62  ;;  %7335 = vmatprep.subr.bf16.mxu1 %v9737_v63  ;;  %v9760_v62 = vcombine.low %v864_v40, %v868_v41  ;;  %v9767_v63 = vcombine.high %v871_v50, %v875_v54  ;;  %v9769_v0 = vcombine.high %v872_v56, %v876_v57  ;;  %v899_v40 = vld [vmem:[#allocation5 + $0x1420] sm:$0xff]  ;;  %v896_v41 = vld [vmem:[#allocation5 + $0x1408] sm:$0xff] }
 0x161   :  { %6752 = vmatpush1.bf16.msra.mxu0 %v9734_v10  ;;  %7336 = vmatpush1.bf16.msra.mxu1 %v9736_v11  ;;  %v884_v10 = vld [vmem:[#allocation5 + $0x13a8] sm:$0xff]  ;;  %v9766_v11 = vcombine.low %v871_v50, %v875_v54  ;;  %v9791_v54 = vcombine.high %v895_v39, %v899_v40 }
 0x162   :  { %6753 = vmatprep.subr.bf16.mxu0 %v9743_v12  ;;  %7337 = vmatprep.subr.bf16.mxu1 %v9745_v13  ;;  %v9768_v12 = vcombine.low %v872_v56, %v876_v57  ;;  %v9775_v13 = vcombine.high %v879_v3, %v883_v8  ;;  %v9777_v14 = vcombine.high %v880_v9, %v884_v10  ;;  %v903_v57 = vld [vmem:[#allocation5 + $0x1440] sm:$0xff] }
 0x165   :  { %6754 = vmatpush1.bf16.msra.mxu0 %v9742_v28  ;;  %7338 = vmatpush1.bf16.msra.mxu1 %v9744_v29  ;;  %v892_v28 = vld [vmem:[#allocation5 + $0x13e8] sm:$0xff]  ;;  %v9774_v29 = vcombine.low %v879_v3, %v883_v8 }
 0x166   :  { %6755 = vmatprep.subr.bf16.mxu0 %v9751_v31  ;;  %7339 = vmatprep.subr.bf16.mxu1 %v9753_v33  ;;  %v9776_v31 = vcombine.low %v880_v9, %v884_v10  ;;  %v9783_v33 = vcombine.high %v887_v21, %v891_v24  ;;  %v9785_v34 = vcombine.high %v888_v26, %v892_v28  ;;  %v104_v3 = vld [vmem:[#allocation2 + $0x148] sm:$0xff] }
 0x167   :  { %v9784_v50 = vcombine.low %v888_v26, %v892_v28  ;;  %v120_v8 = vld [vmem:[#allocation2 + $0x1c8] sm:$0xff]  ;;  %v9790_v9 = vcombine.low %v895_v39, %v899_v40  ;;  %v919_v40 = vld [vmem:[#allocation5 + $0x14c0] sm:$0xff] }
 0x168   :  { %v916_v26 = vld [vmem:[#allocation5 + $0x14a8] sm:$0xff] }
 0x169   :  { %6756 = vmatpush1.bf16.msra.mxu0 %v9750_v44  ;;  %7340 = vmatpush1.bf16.msra.mxu1 %v9752_v45  ;;  %v900_v44 = vld [vmem:[#allocation5 + $0x1428] sm:$0xff]  ;;  %v9782_v45 = vcombine.low %v887_v21, %v891_v24  ;;  %v11028_v21 = vpack.c.bf16 %v120_v8, %v104_v3 }
 0x16a   :  { %6757 = vmatprep.subr.bf16.mxu0 %v9759_v48  ;;  %7341 = vmatprep.subr.bf16.mxu1 %v9761_v49  ;;  %v71_v48 = vld [vmem:[#allocation2 + $0x40] sm:$0xff]  ;;  %v9793_v56 = vcombine.high %v896_v41, %v900_v44  ;;  %v9792_v10 = vcombine.low %v896_v41, %v900_v44  ;;  %v912_v24 = vld [vmem:[#allocation5 + $0x1488] sm:$0xff] }
 0x16b   :  { %v87_v49 = vld [vmem:[#allocation2 + $0xc0] sm:$0xff]  ;;  %v9809_v39 = vcombine.high %v912_v24, %v916_v26  ;;  %v920_v44 = vld [vmem:[#allocation5 + $0x14c8] sm:$0xff] }
 0x16c   :  { %v923_v41 = vld [vmem:[#allocation5 + $0x14e0] sm:$0xff]  ;;  %v928_v8 = vld [vmem:[#allocation5 + $0x1508] sm:$0xff] }
 0x16d   :  { %6758 = vmatpush1.bf16.msra.mxu0 %v9758_v60  ;;  %7342 = vmatpush1.bf16.msra.mxu1 %v9760_v62  ;;  %v907_v60 = vld [vmem:[#allocation5 + $0x1460] sm:$0xff]  ;;  %v904_v62 = vld [vmem:[#allocation5 + $0x1448] sm:$0xff] }
 0x16e   :  { %6759 = vmatprep.subr.bf16.mxu0 %v9767_v63  ;;  %7343 = vmatprep.subr.bf16.mxu1 %v9769_v0  ;;  %v11026_v63 = vpack.c.bf16 %v87_v49, %v71_v48  ;;  %v908_v0 = vld [vmem:[#allocation5 + $0x1468] sm:$0xff]  ;;  %v9798_v28 = vcombine.low %v903_v57, %v907_v60 }
 0x16f   :  { %v136_v49 = vld [vmem:[#allocation2 + $0x248] sm:$0xff] }
 0x171   :  { %6760 = vmatpush1.bf16.msra.mxu0 %v9766_v11  ;;  %7344 = vmatpush1.bf16.msra.mxu1 %v9768_v12  ;;  %v9799_v11 = vcombine.high %v903_v57, %v907_v60  ;;  %v9801_v12 = vcombine.high %v904_v62, %v908_v0  ;;  %v9815_v57 = vcombine.high %v919_v40, %v923_v41 }
 0x172   :  { %6761 = vmatprep.subr.bf16.mxu0 %v9775_v13  ;;  %7345 = vmatprep.subr.bf16.mxu1 %v9777_v14  ;;  %v911_v13 = vld [vmem:[#allocation5 + $0x1480] sm:$0xff] }
 0x173   :  { %v915_v14 = vld [vmem:[#allocation5 + $0x14a0] sm:$0xff] }
 0x175   :  { %6762 = vmatpush1.bf16.msra.mxu0 %v9774_v29  ;;  %7346 = vmatpush1.bf16.msra.mxu1 %v9776_v31  ;;  %v103_v29 = vld [vmem:[#allocation2 + $0x140] sm:$0xff] }
 0x176   :  { %6763 = vmatprep.subr.bf16.mxu0 %v9783_v33  ;;  %7347 = vmatprep.subr.bf16.mxu1 %v9785_v34  ;;  %v119_v31 = vld [vmem:[#allocation2 + $0x1c0] sm:$0xff]  ;;  %v9800_v33 = vcombine.low %v904_v62, %v908_v0  ;;  %v9807_v34 = vcombine.high %v911_v13, %v915_v14 }
 0x177   :  { %v11034_v48 = vpack.c.bf16 %v119_v31, %v103_v29  ;;  %v927_v62 = vld [vmem:[#allocation5 + $0x1500] sm:$0xff]  ;;  %v936_v29 = vld [vmem:[#allocation5 + $0x1548] sm:$0xff] }
 0x178   :  { %v931_v0 = vld [vmem:[#allocation5 + $0x1520] sm:$0xff]  ;;  %v940_v31 = vld [vmem:[#allocation5 + $0x1568] sm:$0xff] }
 0x179   :  { %6764 = vmatpush1.bf16.msra.mxu0 %v9782_v45  ;;  %7348 = vmatpush1.bf16.msra.mxu1 %v9784_v50  ;;  %v924_v45 = vld [vmem:[#allocation5 + $0x14e8] sm:$0xff] }
 0x17a   :  { %6806 = vmatprep.subr.bf16.mxu0 %v9791_v54  ;;  %7390 = vmatprep.subr.bf16.mxu1 %v9793_v56  ;;  %v152_v50 = vld [vmem:[#allocation2 + $0x2c8] sm:$0xff]  ;;  %v9806_v54 = vcombine.low %v911_v13, %v915_v14  ;;  %v9808_v56 = vcombine.low %v912_v24, %v916_v26  ;;  %v9817_v60 = vcombine.high %v920_v44, %v924_v45  ;;  %v935_v26 = vld [vmem:[#allocation5 + $0x1540] sm:$0xff] }
 0x17b   :  { %v11036_v3 = vpack.c.bf16 %v152_v50, %v136_v49  ;;  %v9816_v13 = vcombine.low %v920_v44, %v924_v45  ;;  %v9823_v14 = vcombine.high %v927_v62, %v931_v0  ;;  %v9833_v45 = vcombine.high %v936_v29, %v940_v31  ;;  %v943_v49 = vld [vmem:[#allocation5 + $0x1580] sm:$0xff] }
 0x17c   :  { %6766 = vmatmul.mubr.bf16.vlgmr.msra.gmra.mrb[0].mxu0 %v11026_v63  ;;  %7350 = vmatmul.mubr.bf16.vlgmr.msra.gmra.mrb[0].mxu1 %v11026_v63  ;;  %v947_v50 = vld [vmem:[#allocation5 + $0x15a0] sm:$0xff] }
 0x17d   :  { %6807 = vmatpush1.bf16.msra.mxu0 %v9790_v9  ;;  %7391 = vmatpush1.bf16.msra.mxu1 %v9792_v10  ;;  %v932_v9 = vld [vmem:[#allocation5 + $0x1528] sm:$0xff]  ;;  %v9814_v10 = vcombine.low %v919_v40, %v923_v41  ;;  %v9822_v40 = vcombine.low %v927_v62, %v931_v0  ;;  %v183_v62 = vld [vmem:[#allocation2 + $0x3c0] sm:$0xff]  ;;  %v9832_v0 = vcombine.low %v936_v29, %v940_v31 }
 0x17e   :  { %6808 = vmatprep.subr.bf16.mxu0 %v9799_v11  ;;  %7392 = vmatprep.subr.bf16.mxu1 %v9801_v12  ;;  %v135_v11 = vld [vmem:[#allocation2 + $0x240] sm:$0xff]  ;;  %v9825_v24 = vcombine.high %v928_v8, %v932_v9  ;;  %v9824_v41 = vcombine.low %v928_v8, %v932_v9  ;;  %v9839_v8 = vcombine.high %v943_v49, %v947_v50 }
 0x17f   :  { %6775 = vmatprep.mubr.bf16.mxu0 %v11028_v21  ;;  %7359 = vmatprep.mubr.bf16.mxu1 %v11028_v21  ;;  %v151_v12 = vld [vmem:[#allocation2 + $0x2c0] sm:$0xff] }
 0x181   :  { %6809 = vmatpush1.bf16.msra.mxu0 %v9798_v28  ;;  %7393 = vmatpush1.bf16.msra.mxu1 %v9800_v33  ;;  %v939_v28 = vld [vmem:[#allocation5 + $0x1560] sm:$0xff]  ;;  %v11042_v33 = vpack.c.bf16 %v151_v12, %v135_v11 }
 0x182   :  { %6810 = vmatprep.subr.bf16.mxu0 %v9807_v34  ;;  %7394 = vmatprep.subr.bf16.mxu1 %v9809_v39  ;;  %v168_v34 = vld [vmem:[#allocation2 + $0x348] sm:$0xff]  ;;  %v9831_v44 = vcombine.high %v935_v26, %v939_v28  ;;  %v951_v11 = vld [vmem:[#allocation5 + $0x15c0] sm:$0xff] }
 0x183   :  { %11657 = vst [vmem:[#allocation15_spill] sm:$0xff] %v11042_v33  ;;  %v184_v39 = vld [vmem:[#allocation2 + $0x3c8] sm:$0xff]  ;;  %v955_v12 = vld [vmem:[#allocation5 + $0x15e0] sm:$0xff] }
 0x184   :  { %6776 = vmatmul.mubr.bf16.gmra.mrb[4].mxu0 %v11034_v48  ;;  %7360 = vmatmul.mubr.bf16.gmra.mrb[4].mxu1 %v11034_v48  ;;  %v9847_v31 = vcombine.high %v951_v11, %v955_v12 }
 0x185   :  { %6811 = vmatpush1.bf16.msra.mxu0 %v9806_v54  ;;  %7395 = vmatpush1.bf16.msra.mxu1 %v9808_v56  ;;  %v11044_v54 = vpack.c.bf16 %v184_v39, %v168_v34  ;;  %v944_v56 = vld [vmem:[#allocation5 + $0x1588] sm:$0xff]  ;;  %v9838_v34 = vcombine.low %v943_v49, %v947_v50 }
 0x186   :  { %6812 = vmatprep.subr.bf16.mxu0 %v9815_v57  ;;  %7396 = vmatprep.subr.bf16.mxu1 %v9817_v60  ;;  %v948_v57 = vld [vmem:[#allocation5 + $0x15a8] sm:$0xff]  ;;  %v9830_v60 = vcombine.low %v935_v26, %v939_v28  ;;  %v74_v26 = vld [vmem:[#allocation2 + $0x58] sm:$0xff] }
 0x187   :  { %6785 = vmatprep.mubr.bf16.mxu0 %v11036_v3  ;;  %7369 = vmatprep.mubr.bf16.mxu1 %v11036_v3  ;;  %11658 = vst [vmem:[#allocation16_spill] sm:$0xff] %v11044_v54  ;;  %v9841_v9 = vcombine.high %v944_v56, %v948_v57  ;;  %v90_v28 = vld [vmem:[#allocation2 + $0xd8] sm:$0xff]  ;;  %v9840_v29 = vcombine.low %v944_v56, %v948_v57  ;;  %v967_v57 = vld [vmem:[#allocation5 + $0x1640] sm:$0xff] }
 0x189   :  { %6813 = vmatpush1.bf16.msra.mxu0 %v9814_v10  ;;  %7397 = vmatpush1.bf16.msra.mxu1 %v9816_v13  ;;  %v167_v10 = vld [vmem:[#allocation2 + $0x340] sm:$0xff]  ;;  %v952_v13 = vld [vmem:[#allocation5 + $0x15c8] sm:$0xff] }
 0x18a   :  { %6814 = vmatprep.subr.bf16.mxu0 %v9823_v14  ;;  %7398 = vmatprep.subr.bf16.mxu1 %v9825_v24  ;;  %v956_v14 = vld [vmem:[#allocation5 + $0x15e8] sm:$0xff]  ;;  %v11050_v24 = vpack.c.bf16 %v183_v62, %v167_v10  ;;  %v9846_v10 = vcombine.low %v951_v11, %v955_v12 }
 0x18b   :  { %v9849_v39 = vcombine.high %v952_v13, %v956_v14  ;;  %v9848_v49 = vcombine.low %v952_v13, %v956_v14  ;;  %v968_v62 = vld [vmem:[#allocation5 + $0x1648] sm:$0xff]  ;;  %v975_v13 = vld [vmem:[#allocation5 + $0x1680] sm:$0xff] }
 0x18c   :  { %6786 = vmatmul.mubr.bf16.gmra.mrb[8].mxu0 %v11042_v33  ;;  %7370 = vmatmul.mubr.bf16.gmra.mrb[8].mxu1 %v11042_v33  ;;  %11659 = vst [vmem:[#allocation17_spill] sm:$0xff] %v11050_v24  ;;  %v964_v33 = vld [vmem:[#allocation5 + $0x1628] sm:$0xff]  ;;  %v979_v14 = vld [vmem:[#allocation5 + $0x16a0] sm:$0xff] }
 0x18d   :  { %6815 = vmatpush1.bf16.msra.mxu0 %v9822_v40  ;;  %7399 = vmatpush1.bf16.msra.mxu1 %v9824_v41  ;;  %v959_v40 = vld [vmem:[#allocation5 + $0x1600] sm:$0xff] }
 0x18e   :  { %6816 = vmatprep.subr.bf16.mxu0 %v9831_v44  ;;  %7400 = vmatprep.subr.bf16.mxu1 %v9833_v45  ;;  %v963_v41 = vld [vmem:[#allocation5 + $0x1620] sm:$0xff]  ;;  %v11052_v44 = vpack.c.bf16 %v90_v28, %v74_v26  ;;  %v960_v45 = vld [vmem:[#allocation5 + $0x1608] sm:$0xff] }
 0x18f   :  { %6795 = vmatprep.mubr.bf16.mxu0 %v11044_v54  ;;  %7379 = vmatprep.mubr.bf16.mxu1 %v11044_v54  ;;  %v9855_v50 = vcombine.high %v959_v40, %v963_v41  ;;  %v9857_v56 = vcombine.high %v960_v45, %v964_v33  ;;  %v976_v26 = vld [vmem:[#allocation5 + $0x1688] sm:$0xff] }
 0x190   :  { %11660 = vst [vmem:[#allocation18_spill] sm:$0xff] %v11052_v44  ;;  %v980_v28 = vld [vmem:[#allocation5 + $0x16a8] sm:$0xff] }
 0x191   :  { %6817 = vmatpush1.bf16.msra.mxu0 %v9830_v60  ;;  %7401 = vmatpush1.bf16.msra.mxu1 %v9832_v0  ;;  %v971_v60 = vld [vmem:[#allocation5 + $0x1660] sm:$0xff]  ;;  %v972_v0 = vld [vmem:[#allocation5 + $0x1668] sm:$0xff] }
 0x192   :  { %6818 = vmatprep.subr.bf16.mxu0 %v9839_v8  ;;  %7402 = vmatprep.subr.bf16.mxu1 %v9841_v9  ;;  %v9854_v8 = vcombine.low %v959_v40, %v963_v41  ;;  %v9856_v9 = vcombine.low %v960_v45, %v964_v33  ;;  %v9863_v11 = vcombine.high %v967_v57, %v971_v60  ;;  %v987_v40 = vld [vmem:[#allocation5 + $0x16e0] sm:$0xff]  ;;  %v984_v41 = vld [vmem:[#allocation5 + $0x16c8] sm:$0xff] }
 0x193   :  { %v9865_v12 = vcombine.high %v968_v62, %v972_v0  ;;  %v9870_v33 = vcombine.low %v975_v13, %v979_v14  ;;  %v9872_v45 = vcombine.low %v976_v26, %v980_v28  ;;  %v1060_v54 = vld [vmem:[#allocation5 + $0x1928] sm:$0xff] }
 0x194   :  { %6796 = vmatmul.mubr.bf16.gmra.mrb[12].mxu0 %v11050_v24  ;;  %7380 = vmatmul.mubr.bf16.gmra.mrb[12].mxu1 %v11050_v24 }
 0x195   :  { %6819 = vmatpush1.bf16.msra.mxu0 %v9838_v34  ;;  %7403 = vmatpush1.bf16.msra.mxu1 %v9840_v29  ;;  %v9862_v34 = vcombine.low %v967_v57, %v971_v60  ;;  %v9864_v29 = vcombine.low %v968_v62, %v972_v0  ;;  %v995_v57 = vld [vmem:[#allocation5 + $0x1720] sm:$0xff]  ;;  %v992_v60 = vld [vmem:[#allocation5 + $0x1708] sm:$0xff] }
 0x196   :  { %6820 = vmatprep.subr.bf16.mxu0 %v9847_v31  ;;  %7404 = vmatprep.subr.bf16.mxu1 %v9849_v39  ;;  %v9871_v31 = vcombine.high %v975_v13, %v979_v14  ;;  %v9873_v39 = vcombine.high %v976_v26, %v980_v28  ;;  %v1003_v13 = vld [vmem:[#allocation5 + $0x1760] sm:$0xff]  ;;  %v1000_v14 = vld [vmem:[#allocation5 + $0x1748] sm:$0xff] }
 0x197   :  { %6838 = vmatprep.mubr.bf16.mxu0 %v11052_v44  ;;  %7422 = vmatprep.mubr.bf16.mxu1 %v11052_v44 }
 0x199   :  { %6821 = vmatpush1.bf16.msra.mxu0 %v9846_v10  ;;  %7405 = vmatpush1.bf16.msra.mxu1 %v9848_v49  ;;  %v983_v10 = vld [vmem:[#allocation5 + $0x16c0] sm:$0xff]  ;;  %v988_v49 = vld [vmem:[#allocation5 + $0x16e8] sm:$0xff] }
 0x19a   :  { %6822 = vmatprep.subr.bf16.mxu0 %v9855_v50  ;;  %7406 = vmatprep.subr.bf16.mxu1 %v9857_v56  ;;  %v9879_v50 = vcombine.high %v983_v10, %v987_v40  ;;  %v9881_v56 = vcombine.high %v984_v41, %v988_v49  ;;  %v9878_v62 = vcombine.low %v983_v10, %v987_v40  ;;  %v1011_v10 = vld [vmem:[#allocation5 + $0x17a0] sm:$0xff]  ;;  %v1008_v40 = vld [vmem:[#allocation5 + $0x1788] sm:$0xff] }
 0x19b   :  { %v9880_v0 = vcombine.low %v984_v41, %v988_v49 }
 0x19d   :  { %6823 = vmatpush1.bf16.msra.mxu0 %v9854_v8  ;;  %7407 = vmatpush1.bf16.msra.mxu1 %v9856_v9  ;;  %v991_v8 = vld [vmem:[#allocation5 + $0x1700] sm:$0xff]  ;;  %v996_v9 = vld [vmem:[#allocation5 + $0x1728] sm:$0xff] }
 0x19e   :  { %6824 = vmatprep.subr.bf16.mxu0 %v9863_v11  ;;  %7408 = vmatprep.subr.bf16.mxu1 %v9865_v12  ;;  %v9887_v11 = vcombine.high %v991_v8, %v995_v57  ;;  %v9889_v12 = vcombine.high %v992_v60, %v996_v9  ;;  %v9886_v26 = vcombine.low %v991_v8, %v995_v57  ;;  %v1019_v8 = vld [vmem:[#allocation5 + $0x17e0] sm:$0xff]  ;;  %v1016_v57 = vld [vmem:[#allocation5 + $0x17c8] sm:$0xff] }
 0x19f   :  { %v9888_v28 = vcombine.low %v992_v60, %v996_v9 }
 0x1a1   :  { %6825 = vmatpush1.bf16.msra.mxu0 %v9862_v34  ;;  %7409 = vmatpush1.bf16.msra.mxu1 %v9864_v29  ;;  %v999_v34 = vld [vmem:[#allocation5 + $0x1740] sm:$0xff]  ;;  %v1004_v29 = vld [vmem:[#allocation5 + $0x1768] sm:$0xff] }
 0x1a2   :  { %6826 = vmatprep.subr.bf16.mxu0 %v9871_v31  ;;  %7410 = vmatprep.subr.bf16.mxu1 %v9873_v39  ;;  %v9895_v31 = vcombine.high %v999_v34, %v1003_v13  ;;  %v9897_v39 = vcombine.high %v1000_v14, %v1004_v29  ;;  %v9894_v41 = vcombine.low %v999_v34, %v1003_v13  ;;  %v1027_v34 = vld [vmem:[#allocation5 + $0x1820] sm:$0xff]  ;;  %v1024_v13 = vld [vmem:[#allocation5 + $0x1808] sm:$0xff] }
 0x1a3   :  { %v9896_v49 = vcombine.low %v1000_v14, %v1004_v29  ;;  %v73_v29 = vld [vmem:[#allocation2 + $0x50] sm:$0xff] }
 0x1a5   :  { %6827 = vmatpush1.bf16.msra.mxu0 %v9870_v33  ;;  %7411 = vmatpush1.bf16.msra.mxu1 %v9872_v45  ;;  %v1007_v33 = vld [vmem:[#allocation5 + $0x1780] sm:$0xff]  ;;  %v1012_v45 = vld [vmem:[#allocation5 + $0x17a8] sm:$0xff] }
 0x1a6   :  { %6828 = vmatprep.subr.bf16.mxu0 %v9879_v50  ;;  %7412 = vmatprep.subr.bf16.mxu1 %v9881_v56  ;;  %v9903_v50 = vcombine.high %v1007_v33, %v1011_v10  ;;  %v9905_v56 = vcombine.high %v1008_v40, %v1012_v45  ;;  %v9902_v60 = vcombine.low %v1007_v33, %v1011_v10  ;;  %v1031_v10 = vld [vmem:[#allocation5 + $0x1840] sm:$0xff] }
 0x1a7   :  { %v9904_v9 = vcombine.low %v1008_v40, %v1012_v45  ;;  %v1032_v40 = vld [vmem:[#allocation5 + $0x1848] sm:$0xff] }
 0x1a9   :  { %6829 = vmatpush1.bf16.msra.mxu0 %v9878_v62  ;;  %7413 = vmatpush1.bf16.msra.mxu1 %v9880_v0  ;;  %v1015_v62 = vld [vmem:[#allocation5 + $0x17c0] sm:$0xff]  ;;  %v1020_v0 = vld [vmem:[#allocation5 + $0x17e8] sm:$0xff] }
 0x1aa   :  { %6830 = vmatprep.subr.bf16.mxu0 %v9887_v11  ;;  %7414 = vmatprep.subr.bf16.mxu1 %v9889_v12  ;;  %v9911_v11 = vcombine.high %v1015_v62, %v1019_v8  ;;  %v9913_v12 = vcombine.high %v1016_v57, %v1020_v0  ;;  %v9910_v14 = vcombine.low %v1015_v62, %v1019_v8 }
 0x1ad   :  { %6831 = vmatpush1.bf16.msra.mxu0 %v9886_v26  ;;  %7415 = vmatpush1.bf16.msra.mxu1 %v9888_v28  ;;  %v1023_v26 = vld [vmem:[#allocation5 + $0x1800] sm:$0xff]  ;;  %v1028_v28 = vld [vmem:[#allocation5 + $0x1828] sm:$0xff] }
 0x1ae   :  { %6832 = vmatprep.subr.bf16.mxu0 %v9895_v31  ;;  %7416 = vmatprep.subr.bf16.mxu1 %v9897_v39  ;;  %v89_v31 = vld [vmem:[#allocation2 + $0xd0] sm:$0xff]  ;;  %v9912_v39 = vcombine.low %v1016_v57, %v1020_v0  ;;  %v9919_v44 = vcombine.high %v1023_v26, %v1027_v34  ;;  %v9921_v33 = vcombine.high %v1024_v13, %v1028_v28  ;;  %v1039_v57 = vld [vmem:[#allocation5 + $0x1880] sm:$0xff] }
 0x1af   :  { %v11058_v45 = vpack.c.bf16 %v89_v31, %v73_v29  ;;  %v9918_v24 = vcombine.low %v1023_v26, %v1027_v34  ;;  %v9920_v62 = vcombine.low %v1024_v13, %v1028_v28  ;;  %v1043_v0 = vld [vmem:[#allocation5 + $0x18a0] sm:$0xff]  ;;  %v121_v26 = vld [vmem:[#allocation2 + $0x1d0] sm:$0xff] }
 0x1b0   :  { %v9935_v34 = vcombine.high %v1039_v57, %v1043_v0  ;;  %v1047_v28 = vld [vmem:[#allocation5 + $0x18c0] sm:$0xff] }
 0x1b1   :  { %6833 = vmatpush1.bf16.msra.mxu0 %v9894_v41  ;;  %7417 = vmatpush1.bf16.msra.mxu1 %v9896_v49  ;;  %v1035_v41 = vld [vmem:[#allocation5 + $0x1860] sm:$0xff]  ;;  %11661 = vst [vmem:[#allocation19_spill] sm:$0xff] %v11058_v45  ;;  %v1036_v49 = vld [vmem:[#allocation5 + $0x1868] sm:$0xff] }
 0x1b2   :  { %6834 = vmatprep.subr.bf16.mxu0 %v9903_v50  ;;  %7418 = vmatprep.subr.bf16.mxu1 %v9905_v56  ;;  %v106_v50 = vld [vmem:[#allocation2 + $0x158] sm:$0xff]  ;;  %v9927_v8 = vcombine.high %v1031_v10, %v1035_v41  ;;  %v9926_v29 = vcombine.low %v1031_v10, %v1035_v41  ;;  %v1051_v31 = vld [vmem:[#allocation5 + $0x18e0] sm:$0xff]  ;;  %v9934_v41 = vcombine.low %v1039_v57, %v1043_v0  ;;  %v153_v57 = vld [vmem:[#allocation2 + $0x2d0] sm:$0xff] }
 0x1b3   :  { %v122_v56 = vld [vmem:[#allocation2 + $0x1d8] sm:$0xff] }
 0x1b4   :  { %v154_v10 = vld [vmem:[#allocation2 + $0x2d8] sm:$0xff] }
 0x1b5   :  { %6835 = vmatpush1.bf16.msra.mxu0 %v9902_v60  ;;  %7419 = vmatpush1.bf16.msra.mxu1 %v9904_v9  ;;  %v9929_v60 = vcombine.high %v1032_v40, %v1036_v49  ;;  %v11060_v9 = vpack.c.bf16 %v122_v56, %v106_v50  ;;  %v138_v50 = vld [vmem:[#allocation2 + $0x258] sm:$0xff] }
 0x1b6   :  { %6836 = vmatprep.subr.bf16.mxu0 %v9911_v11  ;;  %7420 = vmatprep.subr.bf16.mxu1 %v9913_v12  ;;  %v1040_v11 = vld [vmem:[#allocation5 + $0x1888] sm:$0xff] }
 0x1b7   :  { %11662 = vst [vmem:[#allocation20_spill] sm:$0xff] %v11060_v9  ;;  %v1044_v12 = vld [vmem:[#allocation5 + $0x18a8] sm:$0xff] }
 0x1b8   :  { %v9937_v13 = vcombine.high %v1040_v11, %v1044_v12 }
 0x1b9   :  { %6837 = vmatpush1.bf16.msra.mxu0 %v9910_v14  ;;  %7421 = vmatpush1.bf16.msra.mxu1 %v9912_v39  ;;  %v105_v14 = vld [vmem:[#allocation2 + $0x150] sm:$0xff]  ;;  %v1048_v39 = vld [vmem:[#allocation5 + $0x18c8] sm:$0xff] }
 0x1ba   :  { %6879 = vmatprep.subr.bf16.mxu0 %v9919_v44  ;;  %7463 = vmatprep.subr.bf16.mxu1 %v9921_v33  ;;  %v9928_v44 = vcombine.low %v1032_v40, %v1036_v49  ;;  %v1052_v33 = vld [vmem:[#allocation5 + $0x18e8] sm:$0xff]  ;;  %v9936_v40 = vcombine.low %v1040_v11, %v1044_v12  ;;  %v9943_v49 = vcombine.high %v1047_v28, %v1051_v31 }
 0x1bb   :  { %v9945_v56 = vcombine.high %v1048_v39, %v1052_v33  ;;  %v9944_v0 = vcombine.low %v1048_v39, %v1052_v33 }
 0x1bc   :  { %6839 = vmatmul.mubr.bf16.vlgmr.msra.gmra.mrb[0].mxu0 %v11058_v45  ;;  %7423 = vmatmul.mubr.bf16.vlgmr.msra.gmra.mrb[0].mxu1 %v11058_v45  ;;  %v1056_v45 = vld [vmem:[#allocation5 + $0x1908] sm:$0xff] }
 0x1bd   :  { %6880 = vmatpush1.bf16.msra.mxu0 %v9918_v24  ;;  %7464 = vmatpush1.bf16.msra.mxu1 %v9920_v62  ;;  %v11066_v24 = vpack.c.bf16 %v121_v26, %v105_v14  ;;  %v1055_v62 = vld [vmem:[#allocation5 + $0x1900] sm:$0xff]  ;;  %v9942_v14 = vcombine.low %v1047_v28, %v1051_v31  ;;  %v9953_v12 = vcombine.high %v1056_v45, %v1060_v54  ;;  %v170_v28 = vld [vmem:[#allocation2 + $0x358] sm:$0xff] }
 0x1be   :  { %6881 = vmatprep.subr.bf16.mxu0 %v9927_v8  ;;  %7465 = vmatprep.subr.bf16.mxu1 %v9929_v60  ;;  %v1059_v8 = vld [vmem:[#allocation5 + $0x1920] sm:$0xff]  ;;  %v11068_v60 = vpack.c.bf16 %v154_v10, %v138_v50  ;;  %v186_v31 = vld [vmem:[#allocation2 + $0x3d8] sm:$0xff]  ;;  %v9952_v39 = vcombine.low %v1056_v45, %v1060_v54 }
 0x1bf   :  { %6848 = vmatprep.mubr.bf16.mxu0 %v11060_v9  ;;  %7432 = vmatprep.mubr.bf16.mxu1 %v11060_v9  ;;  %11663 = vst [vmem:[#allocation21_spill] sm:$0xff] %v11066_v24  ;;  %v9951_v11 = vcombine.high %v1055_v62, %v1059_v8  ;;  %v1063_v26 = vld [vmem:[#allocation5 + $0x1940] sm:$0xff]  ;;  %v9950_v10 = vcombine.low %v1055_v62, %v1059_v8  ;;  %v1076_v9 = vld [vmem:[#allocation5 + $0x19a8] sm:$0xff]  ;;  %v185_v62 = vld [vmem:[#allocation2 + $0x3d0] sm:$0xff] }
 0x1c0   :  { %11664 = vst [vmem:[#allocation22_spill] sm:$0xff] %v11068_v60 }
 0x1c1   :  { %6882 = vmatpush1.bf16.msra.mxu0 %v9926_v29  ;;  %7466 = vmatpush1.bf16.msra.mxu1 %v9928_v44  ;;  %v137_v29 = vld [vmem:[#allocation2 + $0x250] sm:$0xff]  ;;  %v1067_v44 = vld [vmem:[#allocation5 + $0x1960] sm:$0xff] }
 0x1c2   :  { %6883 = vmatprep.subr.bf16.mxu0 %v9935_v34  ;;  %7467 = vmatprep.subr.bf16.mxu1 %v9937_v13  ;;  %v1064_v34 = vld [vmem:[#allocation5 + $0x1948] sm:$0xff]  ;;  %v11074_v50 = vpack.c.bf16 %v153_v57, %v137_v29  ;;  %v9959_v33 = vcombine.high %v1063_v26, %v1067_v44  ;;  %v9958_v29 = vcombine.low %v1063_v26, %v1067_v44  ;;  %v1079_v57 = vld [vmem:[#allocation5 + $0x19c0] sm:$0xff] }
 0x1c3   :  { %v1068_v13 = vld [vmem:[#allocation5 + $0x1968] sm:$0xff] }
 0x1c4   :  { %6849 = vmatmul.mubr.bf16.gmra.mrb[4].mxu0 %v11066_v24  ;;  %7433 = vmatmul.mubr.bf16.gmra.mrb[4].mxu1 %v11066_v24  ;;  %11665 = vst [vmem:[#allocation23_spill] sm:$0xff] %v11074_v50  ;;  %v1072_v24 = vld [vmem:[#allocation5 + $0x1988] sm:$0xff]  ;;  %v9960_v54 = vcombine.low %v1064_v34, %v1068_v13 }
 0x1c5   :  { %6884 = vmatpush1.bf16.msra.mxu0 %v9934_v41  ;;  %7468 = vmatpush1.bf16.msra.mxu1 %v9936_v40  ;;  %v9961_v41 = vcombine.high %v1064_v34, %v1068_v13  ;;  %v1071_v40 = vld [vmem:[#allocation5 + $0x1980] sm:$0xff]  ;;  %v9969_v8 = vcombine.high %v1072_v24, %v1076_v9  ;;  %v76_v26 = vld [vmem:[#allocation2 + $0x68] sm:$0xff]  ;;  %v9968_v34 = vcombine.low %v1072_v24, %v1076_v9 }
 0x1c6   :  { %6885 = vmatprep.subr.bf16.mxu0 %v9943_v49  ;;  %7469 = vmatprep.subr.bf16.mxu1 %v9945_v56  ;;  %v1075_v49 = vld [vmem:[#allocation5 + $0x19a0] sm:$0xff]  ;;  %v11076_v56 = vpack.c.bf16 %v186_v31, %v170_v28  ;;  %v92_v44 = vld [vmem:[#allocation2 + $0xe8] sm:$0xff] }
 0x1c7   :  { %6858 = vmatprep.mubr.bf16.mxu0 %v11068_v60  ;;  %7442 = vmatprep.mubr.bf16.mxu1 %v11068_v60  ;;  %v9967_v45 = vcombine.high %v1071_v40, %v1075_v49  ;;  %v9966_v31 = vcombine.low %v1071_v40, %v1075_v49  ;;  %v1092_v60 = vld [vmem:[#allocation5 + $0x1a28] sm:$0xff]  ;;  %v1095_v24 = vld [vmem:[#allocation5 + $0x1a40] sm:$0xff] }
 0x1c8   :  { %11666 = vst [vmem:[#allocation24_spill] sm:$0xff] %v11076_v56 }
 0x1c9   :  { %6886 = vmatpush1.bf16.msra.mxu0 %v9942_v14  ;;  %7470 = vmatpush1.bf16.msra.mxu1 %v9944_v0  ;;  %v169_v14 = vld [vmem:[#allocation2 + $0x350] sm:$0xff]  ;;  %v1083_v0 = vld [vmem:[#allocation5 + $0x19e0] sm:$0xff] }
 0x1ca   :  { %6887 = vmatprep.subr.bf16.mxu0 %v9951_v11  ;;  %7471 = vmatprep.subr.bf16.mxu1 %v9953_v12  ;;  %v1080_v11 = vld [vmem:[#allocation5 + $0x19c8] sm:$0xff]  ;;  %v11082_v28 = vpack.c.bf16 %v185_v62, %v169_v14  ;;  %v9975_v13 = vcombine.high %v1079_v57, %v1083_v0  ;;  %v9974_v14 = vcombine.low %v1079_v57, %v1083_v0 }
 0x1cb   :  { %v1084_v12 = vld [vmem:[#allocation5 + $0x19e8] sm:$0xff] }
 0x1cc   :  { %6859 = vmatmul.mubr.bf16.gmra.mrb[8].mxu0 %v11074_v50  ;;  %7443 = vmatmul.mubr.bf16.gmra.mrb[8].mxu1 %v11074_v50  ;;  %11667 = vst [vmem:[#allocation25_spill] sm:$0xff] %v11082_v28  ;;  %v1088_v50 = vld [vmem:[#allocation5 + $0x1a08] sm:$0xff]  ;;  %v9976_v40 = vcombine.low %v1080_v11, %v1084_v12 }
 0x1cd   :  { %6888 = vmatpush1.bf16.msra.mxu0 %v9950_v10  ;;  %7472 = vmatpush1.bf16.msra.mxu1 %v9952_v39  ;;  %v9977_v10 = vcombine.high %v1080_v11, %v1084_v12  ;;  %v1087_v39 = vld [vmem:[#allocation5 + $0x1a00] sm:$0xff]  ;;  %v9985_v9 = vcombine.high %v1088_v50, %v1092_v60  ;;  %v1096_v62 = vld [vmem:[#allocation5 + $0x1a48] sm:$0xff] }
 0x1ce   :  { %6889 = vmatprep.subr.bf16.mxu0 %v9959_v33  ;;  %7473 = vmatprep.subr.bf16.mxu1 %v9961_v41  ;;  %v1091_v33 = vld [vmem:[#allocation5 + $0x1a20] sm:$0xff]  ;;  %v11084_v41 = vpack.c.bf16 %v92_v44, %v76_v26  ;;  %v1104_v26 = vld [vmem:[#allocation5 + $0x1a88] sm:$0xff] }
 0x1cf   :  { %6868 = vmatprep.mubr.bf16.mxu0 %v11076_v56  ;;  %7452 = vmatprep.mubr.bf16.mxu1 %v11076_v56  ;;  %v9983_v49 = vcombine.high %v1087_v39, %v1091_v33  ;;  %v1103_v11 = vld [vmem:[#allocation5 + $0x1a80] sm:$0xff]  ;;  %v1108_v44 = vld [vmem:[#allocation5 + $0x1aa8] sm:$0xff] }
 0x1d0   :  { %11668 = vst [vmem:[#allocation26_spill] sm:$0xff] %v11084_v41  ;;  %v1107_v12 = vld [vmem:[#allocation5 + $0x1aa0] sm:$0xff]  ;;  %v1188_v56 = vld [vmem:[#allocation5 + $0x1d28] sm:$0xff] }
 0x1d1   :  { %6890 = vmatpush1.bf16.msra.mxu0 %v9958_v29  ;;  %7474 = vmatpush1.bf16.msra.mxu1 %v9960_v54  ;;  %v1099_v29 = vld [vmem:[#allocation5 + $0x1a60] sm:$0xff]  ;;  %v1100_v54 = vld [vmem:[#allocation5 + $0x1a68] sm:$0xff] }
 0x1d2   :  { %6891 = vmatprep.subr.bf16.mxu0 %v9967_v45  ;;  %7475 = vmatprep.subr.bf16.mxu1 %v9969_v8  ;;  %v9982_v45 = vcombine.low %v1087_v39, %v1091_v33  ;;  %v9984_v8 = vcombine.low %v1088_v50, %v1092_v60  ;;  %v9991_v57 = vcombine.high %v1095_v24, %v1099_v29  ;;  %v1115_v39 = vld [vmem:[#allocation5 + $0x1ae0] sm:$0xff]  ;;  %v1112_v33 = vld [vmem:[#allocation5 + $0x1ac8] sm:$0xff] }
 0x1d3   :  { %v9993_v0 = vcombine.high %v1096_v62, %v1100_v54  ;;  %v9998_v60 = vcombine.low %v1103_v11, %v1107_v12  ;;  %v10000_v50 = vcombine.low %v1104_v26, %v1108_v44 }
 0x1d4   :  { %6869 = vmatmul.mubr.bf16.gmra.mrb[12].mxu0 %v11082_v28  ;;  %7453 = vmatmul.mubr.bf16.gmra.mrb[12].mxu1 %v11082_v28 }
 0x1d5   :  { %6892 = vmatpush1.bf16.msra.mxu0 %v9966_v31  ;;  %7476 = vmatpush1.bf16.msra.mxu1 %v9968_v34  ;;  %v9990_v31 = vcombine.low %v1095_v24, %v1099_v29  ;;  %v9992_v34 = vcombine.low %v1096_v62, %v1100_v54  ;;  %v1123_v24 = vld [vmem:[#allocation5 + $0x1b20] sm:$0xff]  ;;  %v1120_v29 = vld [vmem:[#allocation5 + $0x1b08] sm:$0xff] }
 0x1d6   :  { %6893 = vmatprep.subr.bf16.mxu0 %v9975_v13  ;;  %7477 = vmatprep.subr.bf16.mxu1 %v9977_v10  ;;  %v9999_v13 = vcombine.high %v1103_v11, %v1107_v12  ;;  %v10001_v10 = vcombine.high %v1104_v26, %v1108_v44  ;;  %v1131_v11 = vld [vmem:[#allocation5 + $0x1b60] sm:$0xff]  ;;  %v1128_v12 = vld [vmem:[#allocation5 + $0x1b48] sm:$0xff] }
 0x1d7   :  { %6911 = vmatprep.mubr.bf16.mxu0 %v11084_v41  ;;  %7495 = vmatprep.mubr.bf16.mxu1 %v11084_v41 }
 0x1d9   :  { %6894 = vmatpush1.bf16.msra.mxu0 %v9974_v14  ;;  %7478 = vmatpush1.bf16.msra.mxu1 %v9976_v40  ;;  %v1111_v14 = vld [vmem:[#allocation5 + $0x1ac0] sm:$0xff]  ;;  %v1116_v40 = vld [vmem:[#allocation5 + $0x1ae8] sm:$0xff] }
 0x1da   :  { %6895 = vmatprep.subr.bf16.mxu0 %v9983_v49  ;;  %7479 = vmatprep.subr.bf16.mxu1 %v9985_v9  ;;  %v10007_v49 = vcombine.high %v1111_v14, %v1115_v39  ;;  %v10009_v9 = vcombine.high %v1112_v33, %v1116_v40  ;;  %v10006_v62 = vcombine.low %v1111_v14, %v1115_v39  ;;  %v1139_v14 = vld [vmem:[#allocation5 + $0x1ba0] sm:$0xff]  ;;  %v1136_v39 = vld [vmem:[#allocation5 + $0x1b88] sm:$0xff] }
 0x1db   :  { %v10008_v54 = vcombine.low %v1112_v33, %v1116_v40 }
 0x1dd   :  { %6896 = vmatpush1.bf16.msra.mxu0 %v9982_v45  ;;  %7480 = vmatpush1.bf16.msra.mxu1 %v9984_v8  ;;  %v1119_v45 = vld [vmem:[#allocation5 + $0x1b00] sm:$0xff]  ;;  %v1124_v8 = vld [vmem:[#allocation5 + $0x1b28] sm:$0xff] }
 0x1de   :  { %6897 = vmatprep.subr.bf16.mxu0 %v9991_v57  ;;  %7481 = vmatprep.subr.bf16.mxu1 %v9993_v0  ;;  %v10015_v57 = vcombine.high %v1119_v45, %v1123_v24  ;;  %v10017_v0 = vcombine.high %v1120_v29, %v1124_v8  ;;  %v10014_v26 = vcombine.low %v1119_v45, %v1123_v24  ;;  %v1147_v45 = vld [vmem:[#allocation5 + $0x1be0] sm:$0xff]  ;;  %v1144_v24 = vld [vmem:[#allocation5 + $0x1bc8] sm:$0xff] }
 0x1df   :  { %v10016_v44 = vcombine.low %v1120_v29, %v1124_v8 }
 0x1e1   :  { %6898 = vmatpush1.bf16.msra.mxu0 %v9990_v31  ;;  %7482 = vmatpush1.bf16.msra.mxu1 %v9992_v34  ;;  %v1127_v31 = vld [vmem:[#allocation5 + $0x1b40] sm:$0xff]  ;;  %v1132_v34 = vld [vmem:[#allocation5 + $0x1b68] sm:$0xff] }
 0x1e2   :  { %6899 = vmatprep.subr.bf16.mxu0 %v9999_v13  ;;  %7483 = vmatprep.subr.bf16.mxu1 %v10001_v10  ;;  %v10023_v13 = vcombine.high %v1127_v31, %v1131_v11  ;;  %v10025_v10 = vcombine.high %v1128_v12, %v1132_v34  ;;  %v10022_v33 = vcombine.low %v1127_v31, %v1131_v11  ;;  %v1155_v31 = vld [vmem:[#allocation5 + $0x1c20] sm:$0xff]  ;;  %v1152_v11 = vld [vmem:[#allocation5 + $0x1c08] sm:$0xff] }
 0x1e3   :  { %v10024_v40 = vcombine.low %v1128_v12, %v1132_v34  ;;  %v75_v34 = vld [vmem:[#allocation2 + $0x60] sm:$0xff] }
 0x1e5   :  { %6900 = vmatpush1.bf16.msra.mxu0 %v9998_v60  ;;  %7484 = vmatpush1.bf16.msra.mxu1 %v10000_v50  ;;  %v1135_v60 = vld [vmem:[#allocation5 + $0x1b80] sm:$0xff]  ;;  %v1140_v50 = vld [vmem:[#allocation5 + $0x1ba8] sm:$0xff] }
 0x1e6   :  { %6901 = vmatprep.subr.bf16.mxu0 %v10007_v49  ;;  %7485 = vmatprep.subr.bf16.mxu1 %v10009_v9  ;;  %v10031_v49 = vcombine.high %v1135_v60, %v1139_v14  ;;  %v10033_v9 = vcombine.high %v1136_v39, %v1140_v50  ;;  %v10030_v29 = vcombine.low %v1135_v60, %v1139_v14  ;;  %v1159_v14 = vld [vmem:[#allocation5 + $0x1c40] sm:$0xff] }
 0x1e7   :  { %v10032_v8 = vcombine.low %v1136_v39, %v1140_v50  ;;  %v1160_v39 = vld [vmem:[#allocation5 + $0x1c48] sm:$0xff] }
 0x1e9   :  { %6902 = vmatpush1.bf16.msra.mxu0 %v10006_v62  ;;  %7486 = vmatpush1.bf16.msra.mxu1 %v10008_v54  ;;  %v1143_v62 = vld [vmem:[#allocation5 + $0x1bc0] sm:$0xff]  ;;  %v1148_v54 = vld [vmem:[#allocation5 + $0x1be8] sm:$0xff] }
 0x1ea   :  { %6903 = vmatprep.subr.bf16.mxu0 %v10015_v57  ;;  %7487 = vmatprep.subr.bf16.mxu1 %v10017_v0  ;;  %v10039_v57 = vcombine.high %v1143_v62, %v1147_v45  ;;  %v10041_v0 = vcombine.high %v1144_v24, %v1148_v54  ;;  %v10038_v12 = vcombine.low %v1143_v62, %v1147_v45 }
 0x1ed   :  { %6904 = vmatpush1.bf16.msra.mxu0 %v10014_v26  ;;  %7488 = vmatpush1.bf16.msra.mxu1 %v10016_v44  ;;  %v1151_v26 = vld [vmem:[#allocation5 + $0x1c00] sm:$0xff]  ;;  %v1156_v44 = vld [vmem:[#allocation5 + $0x1c28] sm:$0xff] }
 0x1ee   :  { %6905 = vmatprep.subr.bf16.mxu0 %v10023_v13  ;;  %7489 = vmatprep.subr.bf16.mxu1 %v10025_v10  ;;  %v91_v13 = vld [vmem:[#allocation2 + $0xe0] sm:$0xff]  ;;  %v10040_v10 = vcombine.low %v1144_v24, %v1148_v54  ;;  %v10047_v41 = vcombine.high %v1151_v26, %v1155_v31  ;;  %v10049_v60 = vcombine.high %v1152_v11, %v1156_v44 }
 0x1ef   :  { %v11090_v50 = vpack.c.bf16 %v91_v13, %v75_v34  ;;  %v10046_v28 = vcombine.low %v1151_v26, %v1155_v31  ;;  %v10048_v62 = vcombine.low %v1152_v11, %v1156_v44  ;;  %v1167_v24 = vld [vmem:[#allocation5 + $0x1c80] sm:$0xff] }
 0x1f0   :  { %v1171_v54 = vld [vmem:[#allocation5 + $0x1ca0] sm:$0xff] }
 0x1f1   :  { %6906 = vmatpush1.bf16.msra.mxu0 %v10022_v33  ;;  %7490 = vmatpush1.bf16.msra.mxu1 %v10024_v40  ;;  %v1163_v33 = vld [vmem:[#allocation5 + $0x1c60] sm:$0xff]  ;;  %11669 = vst [vmem:[#allocation27_spill] sm:$0xff] %v11090_v50  ;;  %v1164_v40 = vld [vmem:[#allocation5 + $0x1c68] sm:$0xff]  ;;  %v10063_v31 = vcombine.high %v1167_v24, %v1171_v54 }
 0x1f2   :  { %6907 = vmatprep.subr.bf16.mxu0 %v10031_v49  ;;  %7491 = vmatprep.subr.bf16.mxu1 %v10033_v9  ;;  %v108_v49 = vld [vmem:[#allocation2 + $0x168] sm:$0xff]  ;;  %v10055_v45 = vcombine.high %v1159_v14, %v1163_v33  ;;  %v10054_v34 = vcombine.low %v1159_v14, %v1163_v33  ;;  %v123_v26 = vld [vmem:[#allocation2 + $0x1e0] sm:$0xff]  ;;  %v10062_v33 = vcombine.low %v1167_v24, %v1171_v54 }
 0x1f3   :  { %v124_v9 = vld [vmem:[#allocation2 + $0x1e8] sm:$0xff]  ;;  %v1175_v44 = vld [vmem:[#allocation5 + $0x1cc0] sm:$0xff] }
 0x1f4   :  { %v1179_v13 = vld [vmem:[#allocation5 + $0x1ce0] sm:$0xff]  ;;  %v156_v14 = vld [vmem:[#allocation2 + $0x2e8] sm:$0xff] }
 0x1f5   :  { %6908 = vmatpush1.bf16.msra.mxu0 %v10030_v29  ;;  %7492 = vmatpush1.bf16.msra.mxu1 %v10032_v8  ;;  %v10057_v29 = vcombine.high %v1160_v39, %v1164_v40  ;;  %v11092_v8 = vpack.c.bf16 %v124_v9, %v108_v49  ;;  %v140_v49 = vld [vmem:[#allocation2 + $0x268] sm:$0xff]  ;;  %v155_v24 = vld [vmem:[#allocation2 + $0x2e0] sm:$0xff] }
 0x1f6   :  { %6909 = vmatprep.subr.bf16.mxu0 %v10039_v57  ;;  %7493 = vmatprep.subr.bf16.mxu1 %v10041_v0  ;;  %v1168_v57 = vld [vmem:[#allocation5 + $0x1c88] sm:$0xff] }
 0x1f7   :  { %11670 = vst [vmem:[#allocation28_spill] sm:$0xff] %v11092_v8  ;;  %v1172_v0 = vld [vmem:[#allocation5 + $0x1ca8] sm:$0xff] }
 0x1f8   :  { %v10065_v11 = vcombine.high %v1168_v57, %v1172_v0 }
 0x1f9   :  { %6910 = vmatpush1.bf16.msra.mxu0 %v10038_v12  ;;  %7494 = vmatpush1.bf16.msra.mxu1 %v10040_v10  ;;  %v107_v12 = vld [vmem:[#allocation2 + $0x160] sm:$0xff]  ;;  %v1176_v10 = vld [vmem:[#allocation5 + $0x1cc8] sm:$0xff] }
 0x1fa   :  { %6952 = vmatprep.subr.bf16.mxu0 %v10047_v41  ;;  %7536 = vmatprep.subr.bf16.mxu1 %v10049_v60  ;;  %v10056_v41 = vcombine.low %v1160_v39, %v1164_v40  ;;  %v1180_v60 = vld [vmem:[#allocation5 + $0x1ce8] sm:$0xff]  ;;  %v10064_v39 = vcombine.low %v1168_v57, %v1172_v0  ;;  %v10071_v40 = vcombine.high %v1175_v44, %v1179_v13 }
 0x1fb   :  { %v10073_v9 = vcombine.high %v1176_v10, %v1180_v60  ;;  %v10072_v54 = vcombine.low %v1176_v10, %v1180_v60 }
 0x1fc   :  { %6912 = vmatmul.mubr.bf16.vlgmr.msra.gmra.mrb[0].mxu0 %v11090_v50  ;;  %7496 = vmatmul.mubr.bf16.vlgmr.msra.gmra.mrb[0].mxu1 %v11090_v50  ;;  %v1184_v50 = vld [vmem:[#allocation5 + $0x1d08] sm:$0xff] }
 0x1fd   :  { %6953 = vmatpush1.bf16.msra.mxu0 %v10046_v28  ;;  %7537 = vmatpush1.bf16.msra.mxu1 %v10048_v62  ;;  %v11098_v28 = vpack.c.bf16 %v123_v26, %v107_v12  ;;  %v1183_v62 = vld [vmem:[#allocation5 + $0x1d00] sm:$0xff]  ;;  %v10070_v12 = vcombine.low %v1175_v44, %v1179_v13  ;;  %v10081_v0 = vcombine.high %v1184_v50, %v1188_v56  ;;  %v172_v44 = vld [vmem:[#allocation2 + $0x368] sm:$0xff] }
 0x1fe   :  { %6954 = vmatprep.subr.bf16.mxu0 %v10055_v45  ;;  %7538 = vmatprep.subr.bf16.mxu1 %v10057_v29  ;;  %v1187_v45 = vld [vmem:[#allocation5 + $0x1d20] sm:$0xff]  ;;  %v11100_v29 = vpack.c.bf16 %v156_v14, %v140_v49  ;;  %v188_v13 = vld [vmem:[#allocation2 + $0x3e8] sm:$0xff]  ;;  %v10080_v10 = vcombine.low %v1184_v50, %v1188_v56 }
 0x1ff   :  { %6921 = vmatprep.mubr.bf16.mxu0 %v11092_v8  ;;  %7505 = vmatprep.mubr.bf16.mxu1 %v11092_v8  ;;  %11671 = vst [vmem:[#allocation29_spill] sm:$0xff] %v11098_v28  ;;  %v10079_v57 = vcombine.high %v1183_v62, %v1187_v45  ;;  %v1191_v26 = vld [vmem:[#allocation5 + $0x1d40] sm:$0xff]  ;;  %v10078_v14 = vcombine.low %v1183_v62, %v1187_v45  ;;  %v1204_v8 = vld [vmem:[#allocation5 + $0x1da8] sm:$0xff] }
 0x200   :  { %11672 = vst [vmem:[#allocation30_spill] sm:$0xff] %v11100_v29  ;;  %v187_v62 = vld [vmem:[#allocation2 + $0x3e0] sm:$0xff] }
 0x201   :  { %6955 = vmatpush1.bf16.msra.mxu0 %v10054_v34  ;;  %7539 = vmatpush1.bf16.msra.mxu1 %v10056_v41  ;;  %v139_v34 = vld [vmem:[#allocation2 + $0x260] sm:$0xff] }
 0x202   :  { %6956 = vmatprep.subr.bf16.mxu0 %v10063_v31  ;;  %7540 = vmatprep.subr.bf16.mxu1 %v10065_v11  ;;  %v1195_v41 = vld [vmem:[#allocation5 + $0x1d60] sm:$0xff]  ;;  %v1192_v31 = vld [vmem:[#allocation5 + $0x1d48] sm:$0xff]  ;;  %v11106_v49 = vpack.c.bf16 %v155_v24, %v139_v34 }
 0x203   :  { %v1196_v11 = vld [vmem:[#allocation5 + $0x1d68] sm:$0xff]  ;;  %v10087_v60 = vcombine.high %v1191_v26, %v1195_v41  ;;  %v10086_v34 = vcombine.low %v1191_v26, %v1195_v41  ;;  %v1207_v24 = vld [vmem:[#allocation5 + $0x1dc0] sm:$0xff]  ;;  %v78_v26 = vld [vmem:[#allocation2 + $0x78] sm:$0xff] }
 0x204   :  { %6922 = vmatmul.mubr.bf16.gmra.mrb[4].mxu0 %v11098_v28  ;;  %7506 = vmatmul.mubr.bf16.gmra.mrb[4].mxu1 %v11098_v28  ;;  %11673 = vst [vmem:[#allocation31_spill] sm:$0xff] %v11106_v49  ;;  %v1200_v28 = vld [vmem:[#allocation5 + $0x1d88] sm:$0xff]  ;;  %v10088_v56 = vcombine.low %v1192_v31, %v1196_v11  ;;  %v94_v41 = vld [vmem:[#allocation2 + $0xf8] sm:$0xff] }
 0x205   :  { %6957 = vmatpush1.bf16.msra.mxu0 %v10062_v33  ;;  %7541 = vmatpush1.bf16.msra.mxu1 %v10064_v39  ;;  %v10089_v33 = vcombine.high %v1192_v31, %v1196_v11  ;;  %v1199_v39 = vld [vmem:[#allocation5 + $0x1d80] sm:$0xff]  ;;  %v10097_v45 = vcombine.high %v1200_v28, %v1204_v8  ;;  %v10096_v31 = vcombine.low %v1200_v28, %v1204_v8 }
 0x206   :  { %6958 = vmatprep.subr.bf16.mxu0 %v10071_v40  ;;  %7542 = vmatprep.subr.bf16.mxu1 %v10073_v9  ;;  %v1203_v40 = vld [vmem:[#allocation5 + $0x1da0] sm:$0xff]  ;;  %v11108_v9 = vpack.c.bf16 %v188_v13, %v172_v44 }
 0x207   :  { %6931 = vmatprep.mubr.bf16.mxu0 %v11100_v29  ;;  %7515 = vmatprep.mubr.bf16.mxu1 %v11100_v29  ;;  %v10095_v50 = vcombine.high %v1199_v39, %v1203_v40  ;;  %v10094_v13 = vcombine.low %v1199_v39, %v1203_v40  ;;  %v1220_v29 = vld [vmem:[#allocation5 + $0x1e28] sm:$0xff]  ;;  %v1223_v28 = vld [vmem:[#allocation5 + $0x1e40] sm:$0xff] }
 0x209   :  { %6959 = vmatpush1.bf16.msra.mxu0 %v10070_v12  ;;  %7543 = vmatpush1.bf16.msra.mxu1 %v10072_v54  ;;  %v171_v12 = vld [vmem:[#allocation2 + $0x360] sm:$0xff] }
 0x20a   :  { %6960 = vmatprep.subr.bf16.mxu0 %v10079_v57  ;;  %7544 = vmatprep.subr.bf16.mxu1 %v10081_v0  ;;  %v1211_v54 = vld [vmem:[#allocation5 + $0x1de0] sm:$0xff]  ;;  %v1208_v57 = vld [vmem:[#allocation5 + $0x1dc8] sm:$0xff]  ;;  %v11114_v44 = vpack.c.bf16 %v187_v62, %v171_v12 }
 0x20b   :  { %v1212_v0 = vld [vmem:[#allocation5 + $0x1de8] sm:$0xff]  ;;  %v10103_v11 = vcombine.high %v1207_v24, %v1211_v54  ;;  %v10102_v12 = vcombine.low %v1207_v24, %v1211_v54 }
 0x20c   :  { %6932 = vmatmul.mubr.bf16.gmra.mrb[8].mxu0 %v11106_v49  ;;  %7516 = vmatmul.mubr.bf16.gmra.mrb[8].mxu1 %v11106_v49  ;;  %11674 = vst [vmem:[#allocation32_spill] sm:$0xff] %v11114_v44  ;;  %v1216_v49 = vld [vmem:[#allocation5 + $0x1e08] sm:$0xff]  ;;  %v10104_v39 = vcombine.low %v1208_v57, %v1212_v0 }
 0x20d   :  { %6961 = vmatpush1.bf16.msra.mxu0 %v10078_v14  ;;  %7545 = vmatpush1.bf16.msra.mxu1 %v10080_v10  ;;  %v10105_v14 = vcombine.high %v1208_v57, %v1212_v0  ;;  %v1215_v10 = vld [vmem:[#allocation5 + $0x1e00] sm:$0xff]  ;;  %v10113_v8 = vcombine.high %v1216_v49, %v1220_v29  ;;  %v1224_v62 = vld [vmem:[#allocation5 + $0x1e48] sm:$0xff] }
 0x20e   :  { %6962 = vmatprep.subr.bf16.mxu0 %v10087_v60  ;;  %7546 = vmatprep.subr.bf16.mxu1 %v10089_v33  ;;  %v1219_v60 = vld [vmem:[#allocation5 + $0x1e20] sm:$0xff]  ;;  %v11116_v33 = vpack.c.bf16 %v94_v41, %v78_v26  ;;  %v1232_v26 = vld [vmem:[#allocation5 + $0x1e88] sm:$0xff] }
 0x20f   :  { %6941 = vmatprep.mubr.bf16.mxu0 %v11108_v9  ;;  %7525 = vmatprep.mubr.bf16.mxu1 %v11108_v9  ;;  %v10111_v40 = vcombine.high %v1215_v10, %v1219_v60  ;;  %v1231_v57 = vld [vmem:[#allocation5 + $0x1e80] sm:$0xff]  ;;  %v1236_v41 = vld [vmem:[#allocation5 + $0x1ea8] sm:$0xff] }
 0x210   :  { %11675 = vst [vmem:[#allocation33_spill] sm:$0xff] %v11116_v33  ;;  %v1235_v0 = vld [vmem:[#allocation5 + $0x1ea0] sm:$0xff] }
 0x211   :  { %6963 = vmatpush1.bf16.msra.mxu0 %v10086_v34  ;;  %7547 = vmatpush1.bf16.msra.mxu1 %v10088_v56  ;;  %v1227_v34 = vld [vmem:[#allocation5 + $0x1e60] sm:$0xff]  ;;  %v1228_v56 = vld [vmem:[#allocation5 + $0x1e68] sm:$0xff] }
 0x212   :  { %6964 = vmatprep.subr.bf16.mxu0 %v10095_v50  ;;  %7548 = vmatprep.subr.bf16.mxu1 %v10097_v45  ;;  %v10110_v50 = vcombine.low %v1215_v10, %v1219_v60  ;;  %v10112_v45 = vcombine.low %v1216_v49, %v1220_v29  ;;  %v10119_v24 = vcombine.high %v1223_v28, %v1227_v34  ;;  %v1243_v10 = vld [vmem:[#allocation5 + $0x1ee0] sm:$0xff]  ;;  %v1240_v60 = vld [vmem:[#allocation5 + $0x1ec8] sm:$0xff] }
 0x213   :  { %v10121_v54 = vcombine.high %v1224_v62, %v1228_v56  ;;  %v10126_v29 = vcombine.low %v1231_v57, %v1235_v0  ;;  %v10128_v49 = vcombine.low %v1232_v26, %v1236_v41 }
 0x214   :  { %6942 = vmatmul.mubr.bf16.gmra.mrb[12].mxu0 %v11114_v44  ;;  %7526 = vmatmul.mubr.bf16.gmra.mrb[12].mxu1 %v11114_v44 }
 0x215   :  { %6965 = vmatpush1.bf16.msra.mxu0 %v10094_v13  ;;  %7549 = vmatpush1.bf16.msra.mxu1 %v10096_v31  ;;  %v10118_v13 = vcombine.low %v1223_v28, %v1227_v34  ;;  %v10120_v31 = vcombine.low %v1224_v62, %v1228_v56  ;;  %v1251_v28 = vld [vmem:[#allocation5 + $0x1f20] sm:$0xff]  ;;  %v1248_v34 = vld [vmem:[#allocation5 + $0x1f08] sm:$0xff] }
 0x216   :  { %6966 = vmatprep.subr.bf16.mxu0 %v10103_v11  ;;  %7550 = vmatprep.subr.bf16.mxu1 %v10105_v14  ;;  %v10127_v11 = vcombine.high %v1231_v57, %v1235_v0  ;;  %v10129_v14 = vcombine.high %v1232_v26, %v1236_v41  ;;  %v1259_v57 = vld [vmem:[#allocation5 + $0x1f60] sm:$0xff]  ;;  %v1256_v0 = vld [vmem:[#allocation5 + $0x1f48] sm:$0xff] }
 0x217   :  { %6984 = vmatprep.mubr.bf16.mxu0 %v11116_v33  ;;  %7568 = vmatprep.mubr.bf16.mxu1 %v11116_v33 }
 0x219   :  { %6967 = vmatpush1.bf16.msra.mxu0 %v10102_v12  ;;  %7551 = vmatpush1.bf16.msra.mxu1 %v10104_v39  ;;  %v1239_v12 = vld [vmem:[#allocation5 + $0x1ec0] sm:$0xff]  ;;  %v1244_v39 = vld [vmem:[#allocation5 + $0x1ee8] sm:$0xff] }
 0x21a   :  { %6968 = vmatprep.subr.bf16.mxu0 %v10111_v40  ;;  %7552 = vmatprep.subr.bf16.mxu1 %v10113_v8  ;;  %v10135_v40 = vcombine.high %v1239_v12, %v1243_v10  ;;  %v10137_v8 = vcombine.high %v1240_v60, %v1244_v39  ;;  %v10134_v62 = vcombine.low %v1239_v12, %v1243_v10  ;;  %v1267_v12 = vld [vmem:[#allocation5 + $0x1fa0] sm:$0xff]  ;;  %v1264_v10 = vld [vmem:[#allocation5 + $0x1f88] sm:$0xff] }
 0x21b   :  { %v10136_v56 = vcombine.low %v1240_v60, %v1244_v39 }
 0x21d   :  { %6969 = vmatpush1.bf16.msra.mxu0 %v10110_v50  ;;  %7553 = vmatpush1.bf16.msra.mxu1 %v10112_v45  ;;  %v1247_v50 = vld [vmem:[#allocation5 + $0x1f00] sm:$0xff]  ;;  %v1252_v45 = vld [vmem:[#allocation5 + $0x1f28] sm:$0xff] }
 0x21e   :  { %6970 = vmatprep.subr.bf16.mxu0 %v10119_v24  ;;  %7554 = vmatprep.subr.bf16.mxu1 %v10121_v54  ;;  %v10143_v24 = vcombine.high %v1247_v50, %v1251_v28  ;;  %v10145_v54 = vcombine.high %v1248_v34, %v1252_v45  ;;  %v10142_v26 = vcombine.low %v1247_v50, %v1251_v28  ;;  %v1275_v50 = vld [vmem:[#allocation5 + $0x1fe0] sm:$0xff]  ;;  %v1272_v28 = vld [vmem:[#allocation5 + $0x1fc8] sm:$0xff] }
 0x21f   :  { %v10144_v41 = vcombine.low %v1248_v34, %v1252_v45 }
 0x221   :  { %6971 = vmatpush1.bf16.msra.mxu0 %v10118_v13  ;;  %7555 = vmatpush1.bf16.msra.mxu1 %v10120_v31  ;;  %v1255_v13 = vld [vmem:[#allocation5 + $0x1f40] sm:$0xff]  ;;  %v1260_v31 = vld [vmem:[#allocation5 + $0x1f68] sm:$0xff] }
 0x222   :  { %6972 = vmatprep.subr.bf16.mxu0 %v10127_v11  ;;  %7556 = vmatprep.subr.bf16.mxu1 %v10129_v14  ;;  %v10151_v11 = vcombine.high %v1255_v13, %v1259_v57  ;;  %v10153_v14 = vcombine.high %v1256_v0, %v1260_v31  ;;  %v10150_v60 = vcombine.low %v1255_v13, %v1259_v57  ;;  %v261_v13 = vld [vmem:[#allocation5 + $0x30] sm:$0xff]  ;;  %v258_v57 = vld [vmem:[#allocation5 + $0x18] sm:$0xff] }
 0x223   :  { %v10152_v39 = vcombine.low %v1256_v0, %v1260_v31  ;;  %v77_v31 = vld [vmem:[#allocation2 + $0x70] sm:$0xff] }
 0x225   :  { %6973 = vmatpush1.bf16.msra.mxu0 %v10126_v29  ;;  %7557 = vmatpush1.bf16.msra.mxu1 %v10128_v49  ;;  %v1263_v29 = vld [vmem:[#allocation5 + $0x1f80] sm:$0xff]  ;;  %v1268_v49 = vld [vmem:[#allocation5 + $0x1fa8] sm:$0xff] }
 0x226   :  { %6974 = vmatprep.subr.bf16.mxu0 %v10135_v40  ;;  %7558 = vmatprep.subr.bf16.mxu1 %v10137_v8  ;;  %v10159_v40 = vcombine.high %v1263_v29, %v1267_v12  ;;  %v10161_v8 = vcombine.high %v1264_v10, %v1268_v49  ;;  %v10158_v34 = vcombine.low %v1263_v29, %v1267_v12  ;;  %v265_v12 = vld [vmem:[#allocation5 + $0x50] sm:$0xff] }
 0x227   :  { %v10160_v45 = vcombine.low %v1264_v10, %v1268_v49  ;;  %v266_v10 = vld [vmem:[#allocation5 + $0x58] sm:$0xff] }
 0x229   :  { %6975 = vmatpush1.bf16.msra.mxu0 %v10134_v62  ;;  %7559 = vmatpush1.bf16.msra.mxu1 %v10136_v56  ;;  %v1271_v62 = vld [vmem:[#allocation5 + $0x1fc0] sm:$0xff]  ;;  %v1276_v56 = vld [vmem:[#allocation5 + $0x1fe8] sm:$0xff] }
 0x22a   :  { %6976 = vmatprep.subr.bf16.mxu0 %v10143_v24  ;;  %7560 = vmatprep.subr.bf16.mxu1 %v10145_v54  ;;  %v10167_v24 = vcombine.high %v1271_v62, %v1275_v50  ;;  %v10169_v54 = vcombine.high %v1272_v28, %v1276_v56  ;;  %v10166_v0 = vcombine.low %v1271_v62, %v1275_v50 }
 0x22d   :  { %6977 = vmatpush1.bf16.msra.mxu0 %v10142_v26  ;;  %7561 = vmatpush1.bf16.msra.mxu1 %v10144_v41  ;;  %v257_v26 = vld [vmem:[#allocation5 + $0x10] sm:$0xff]  ;;  %v262_v41 = vld [vmem:[#allocation5 + $0x38] sm:$0xff] }
 0x22e   :  { %6978 = vmatprep.subr.bf16.mxu0 %v10151_v11  ;;  %7562 = vmatprep.subr.bf16.mxu1 %v10153_v14  ;;  %v93_v11 = vld [vmem:[#allocation2 + $0xf0] sm:$0xff]  ;;  %v10168_v14 = vcombine.low %v1272_v28, %v1276_v56  ;;  %v9155_v33 = vcombine.high %v257_v26, %v261_v13  ;;  %v9157_v29 = vcombine.high %v258_v57, %v262_v41 }
 0x22f   :  { %v11122_v49 = vpack.c.bf16 %v93_v11, %v77_v31  ;;  %v9154_v44 = vcombine.low %v257_v26, %v261_v13  ;;  %v9156_v62 = vcombine.low %v258_v57, %v262_v41  ;;  %v273_v56 = vld [vmem:[#allocation5 + $0x90] sm:$0xff] }
 0x230   :  { %v125_v26 = vld [vmem:[#allocation2 + $0x1f0] sm:$0xff] }
 0x231   :  { %6979 = vmatpush1.bf16.msra.mxu0 %v10150_v60  ;;  %7563 = vmatpush1.bf16.msra.mxu1 %v10152_v39  ;;  %v269_v60 = vld [vmem:[#allocation5 + $0x70] sm:$0xff]  ;;  %v270_v39 = vld [vmem:[#allocation5 + $0x78] sm:$0xff] }
 0x232   :  { %6980 = vmatprep.subr.bf16.mxu0 %v10159_v40  ;;  %7564 = vmatprep.subr.bf16.mxu1 %v10161_v8  ;;  %v110_v40 = vld [vmem:[#allocation2 + $0x178] sm:$0xff]  ;;  %v9163_v50 = vcombine.high %v265_v12, %v269_v60  ;;  %v9162_v31 = vcombine.low %v265_v12, %v269_v60  ;;  %v281_v41 = vld [vmem:[#allocation5 + $0xd0] sm:$0xff] }
 0x233   :  { %v126_v8 = vld [vmem:[#allocation2 + $0x1f8] sm:$0xff]  ;;  %v285_v11 = vld [vmem:[#allocation5 + $0xf0] sm:$0xff] }
 0x234   :  { %v11124_v28 = vpack.c.bf16 %v126_v8, %v110_v40  ;;  %v286_v40 = vld [vmem:[#allocation5 + $0xf8] sm:$0xff] }
 0x235   :  { %6981 = vmatpush1.bf16.msra.mxu0 %v10158_v34  ;;  %7565 = vmatpush1.bf16.msra.mxu1 %v10160_v45  ;;  %v9165_v34 = vcombine.high %v266_v10, %v270_v39  ;;  %v277_v45 = vld [vmem:[#allocation5 + $0xb0] sm:$0xff]  ;;  %v158_v12 = vld [vmem:[#allocation2 + $0x2f8] sm:$0xff] }
 0x236   :  { %6982 = vmatprep.subr.bf16.mxu0 %v10167_v24  ;;  %7566 = vmatprep.subr.bf16.mxu1 %v10169_v54  ;;  %11676 = vst [vmem:[#allocation34_spill] sm:$0xff] %v11124_v28  ;;  %v274_v24 = vld [vmem:[#allocation5 + $0x98] sm:$0xff]  ;;  %v9171_v13 = vcombine.high %v273_v56, %v277_v45  ;;  %v9170_v60 = vcombine.low %v273_v56, %v277_v45  ;;  %v157_v56 = vld [vmem:[#allocation2 + $0x2f0] sm:$0xff] }
 0x237   :  { %v278_v54 = vld [vmem:[#allocation5 + $0xb8] sm:$0xff] }
 0x238   :  { %v9173_v57 = vcombine.high %v274_v24, %v278_v54 }
 0x239   :  { %6983 = vmatpush1.bf16.msra.mxu0 %v10166_v0  ;;  %7567 = vmatpush1.bf16.msra.mxu1 %v10168_v14  ;;  %v109_v0 = vld [vmem:[#allocation2 + $0x170] sm:$0xff]  ;;  %v282_v14 = vld [vmem:[#allocation5 + $0xd8] sm:$0xff] }
 0x23a   :  { %7609 = vmatprep.subr.bf16.mxu0 %v9155_v33  ;;  %8193 = vmatprep.subr.bf16.mxu1 %v9157_v29  ;;  %v9164_v33 = vcombine.low %v266_v10, %v270_v39  ;;  %v11130_v29 = vpack.c.bf16 %v125_v26, %v109_v0  ;;  %v9172_v10 = vcombine.low %v274_v24, %v278_v54  ;;  %v294_v0 = vld [vmem:[#allocation5 + $0x138] sm:$0xff] }
 0x23b   :  { %v9179_v39 = vcombine.high %v281_v41, %v285_v11  ;;  %v9181_v8 = vcombine.high %v282_v14, %v286_v40  ;;  %v9178_v26 = vcombine.low %v281_v41, %v285_v11  ;;  %v9180_v45 = vcombine.low %v282_v14, %v286_v40  ;;  %v190_v41 = vld [vmem:[#allocation2 + $0x3f8] sm:$0xff] }
 0x23c   :  { %6985 = vmatmul.mubr.bf16.vlgmr.msra.gmra.mrb[0].mxu0 %v11122_v49  ;;  %7569 = vmatmul.mubr.bf16.vlgmr.msra.gmra.mrb[0].mxu1 %v11122_v49  ;;  %11677 = vst [vmem:[#allocation35_spill] sm:$0xff] %v11130_v29 }
 0x23d   :  { %7610 = vmatpush1.bf16.msra.mxu0 %v9154_v44  ;;  %8194 = vmatpush1.bf16.msra.mxu1 %v9156_v62  ;;  %v142_v44 = vld [vmem:[#allocation2 + $0x278] sm:$0xff] }
 0x23e   :  { %7611 = vmatprep.subr.bf16.mxu0 %v9163_v50  ;;  %8195 = vmatprep.subr.bf16.mxu1 %v9165_v34  ;;  %v11132_v62 = vpack.c.bf16 %v158_v12, %v142_v44  ;;  %v289_v50 = vld [vmem:[#allocation5 + $0x110] sm:$0xff]  ;;  %v302_v12 = vld [vmem:[#allocation5 + $0x178] sm:$0xff] }
 0x23f   :  { %6994 = vmatprep.mubr.bf16.mxu0 %v11124_v28  ;;  %7578 = vmatprep.mubr.bf16.mxu1 %v11124_v28  ;;  %v293_v34 = vld [vmem:[#allocation5 + $0x130] sm:$0xff]  ;;  %v290_v28 = vld [vmem:[#allocation5 + $0x118] sm:$0xff] }
 0x240   :  { %11678 = vst [vmem:[#allocation36_spill] sm:$0xff] %v11132_v62  ;;  %v9187_v24 = vcombine.high %v289_v50, %v293_v34  ;;  %v9189_v54 = vcombine.high %v290_v28, %v294_v0  ;;  %v9186_v11 = vcombine.low %v289_v50, %v293_v34  ;;  %v9188_v14 = vcombine.low %v290_v28, %v294_v0  ;;  %v189_v50 = vld [vmem:[#allocation2 + $0x3f0] sm:$0xff] }
 0x241   :  { %7612 = vmatpush1.bf16.msra.mxu0 %v9162_v31  ;;  %8196 = vmatpush1.bf16.msra.mxu1 %v9164_v33  ;;  %v141_v31 = vld [vmem:[#allocation2 + $0x270] sm:$0xff] }
 0x242   :  { %7613 = vmatprep.subr.bf16.mxu0 %v9171_v13  ;;  %8197 = vmatprep.subr.bf16.mxu1 %v9173_v57  ;;  %v297_v33 = vld [vmem:[#allocation5 + $0x150] sm:$0xff]  ;;  %v298_v57 = vld [vmem:[#allocation5 + $0x158] sm:$0xff]  ;;  %v11138_v44 = vpack.c.bf16 %v157_v56, %v141_v31 }
 0x243   :  { %v301_v13 = vld [vmem:[#allocation5 + $0x170] sm:$0xff]  ;;  %v310_v31 = vld [vmem:[#allocation5 + $0x1b8] sm:$0xff]  ;;  %v9196_v28 = vcombine.low %v298_v57, %v302_v12 }
 0x244   :  { %6995 = vmatmul.mubr.bf16.gmra.mrb[4].mxu0 %v11130_v29  ;;  %7579 = vmatmul.mubr.bf16.gmra.mrb[4].mxu1 %v11130_v29  ;;  %v9195_v40 = vcombine.high %v297_v33, %v301_v13  ;;  %v309_v29 = vld [vmem:[#allocation5 + $0x1b0] sm:$0xff]  ;;  %v9194_v56 = vcombine.low %v297_v33, %v301_v13 }
 0x245   :  { %7614 = vmatpush1.bf16.msra.mxu0 %v9170_v60  ;;  %8198 = vmatpush1.bf16.msra.mxu1 %v9172_v10  ;;  %v174_v60 = vld [vmem:[#allocation2 + $0x378] sm:$0xff]  ;;  %v9197_v10 = vcombine.high %v298_v57, %v302_v12  ;;  %v321_v12 = vld [vmem:[#allocation5 + $0x210] sm:$0xff] }
 0x246   :  { %7615 = vmatprep.subr.bf16.mxu0 %v9179_v39  ;;  %8199 = vmatprep.subr.bf16.mxu1 %v9181_v8  ;;  %v11140_v39 = vpack.c.bf16 %v190_v41, %v174_v60  ;;  %v305_v8 = vld [vmem:[#allocation5 + $0x190] sm:$0xff]  ;;  %v314_v60 = vld [vmem:[#allocation5 + $0x1d8] sm:$0xff] }
 0x247   :  { %7004 = vmatprep.mubr.bf16.mxu0 %v11132_v62  ;;  %7588 = vmatprep.mubr.bf16.mxu1 %v11132_v62  ;;  %v306_v62 = vld [vmem:[#allocation5 + $0x198] sm:$0xff]  ;;  %v9203_v34 = vcombine.high %v305_v8, %v309_v29  ;;  %v9202_v33 = vcombine.low %v305_v8, %v309_v29 }
 0x248   :  { %v9205_v0 = vcombine.high %v306_v62, %v310_v31  ;;  %v318_v41 = vld [vmem:[#allocation5 + $0x1f8] sm:$0xff]  ;;  %v9204_v13 = vcombine.low %v306_v62, %v310_v31  ;;  %v329_v62 = vld [vmem:[#allocation5 + $0x250] sm:$0xff] }
 0x249   :  { %7616 = vmatpush1.bf16.msra.mxu0 %v9178_v26  ;;  %8200 = vmatpush1.bf16.msra.mxu1 %v9180_v45  ;;  %v173_v26 = vld [vmem:[#allocation2 + $0x370] sm:$0xff]  ;;  %v9213_v57 = vcombine.high %v314_v60, %v318_v41 }
 0x24a   :  { %7617 = vmatprep.subr.bf16.mxu0 %v9187_v24  ;;  %8201 = vmatprep.subr.bf16.mxu1 %v9189_v54  ;;  %v313_v45 = vld [vmem:[#allocation5 + $0x1d0] sm:$0xff]  ;;  %v11146_v54 = vpack.c.bf16 %v189_v50, %v173_v26  ;;  %v330_v50 = vld [vmem:[#allocation5 + $0x258] sm:$0xff] }
 0x24b   :  { %v317_v24 = vld [vmem:[#allocation5 + $0x1f0] sm:$0xff] }
 0x24c   :  { %7005 = vmatmul.mubr.bf16.gmra.mrb[8].mxu0 %v11138_v44  ;;  %7589 = vmatmul.mubr.bf16.gmra.mrb[8].mxu1 %v11138_v44  ;;  %11679 = vst [vmem:[#allocation37_spill] sm:$0xff] %v11146_v54  ;;  %v9210_v26 = vcombine.low %v313_v45, %v317_v24  ;;  %v333_v31 = vld [vmem:[#allocation5 + $0x270] sm:$0xff] }
 0x24d   :  { %7618 = vmatpush1.bf16.msra.mxu0 %v9186_v11  ;;  %8202 = vmatpush1.bf16.msra.mxu1 %v9188_v14  ;;  %v9211_v11 = vcombine.high %v313_v45, %v317_v24  ;;  %v325_v14 = vld [vmem:[#allocation5 + $0x230] sm:$0xff]  ;;  %v9227_v45 = vcombine.high %v329_v62, %v333_v31 }
 0x24e   :  { %7619 = vmatprep.subr.bf16.mxu0 %v9195_v40  ;;  %8203 = vmatprep.subr.bf16.mxu1 %v9197_v10  ;;  %v322_v40 = vld [vmem:[#allocation5 + $0x218] sm:$0xff]  ;;  %v9219_v29 = vcombine.high %v321_v12, %v325_v14 }
 0x24f   :  { %7014 = vmatprep.mubr.bf16.mxu0 %v11140_v39  ;;  %7598 = vmatprep.mubr.bf16.mxu1 %v11140_v39  ;;  %v326_v10 = vld [vmem:[#allocation5 + $0x238] sm:$0xff] }
 0x250   :  { %v9221_v8 = vcombine.high %v322_v40, %v326_v10 }
 0x251   :  { %7620 = vmatpush1.bf16.msra.mxu0 %v9194_v56  ;;  %8204 = vmatpush1.bf16.msra.mxu1 %v9196_v28  ;;  %v9212_v56 = vcombine.low %v314_v60, %v318_v41  ;;  %v334_v28 = vld [vmem:[#allocation5 + $0x278] sm:$0xff]  ;;  %v337_v60 = vld [vmem:[#allocation5 + $0x290] sm:$0xff] }
 0x252   :  { %7621 = vmatprep.subr.bf16.mxu0 %v9203_v34  ;;  %8205 = vmatprep.subr.bf16.mxu1 %v9205_v0  ;;  %v9218_v34 = vcombine.low %v321_v12, %v325_v14  ;;  %v9220_v0 = vcombine.low %v322_v40, %v326_v10  ;;  %v9229_v24 = vcombine.high %v330_v50, %v334_v28  ;;  %v341_v41 = vld [vmem:[#allocation5 + $0x2b0] sm:$0xff]  ;;  %v346_v14 = vld [vmem:[#allocation5 + $0x2d8] sm:$0xff] }
 0x253   :  { %v349_v12 = vld [vmem:[#allocation5 + $0x2f0] sm:$0xff]  ;;  %v9234_v40 = vcombine.low %v337_v60, %v341_v41 }
 0x254   :  { %7015 = vmatmul.mubr.bf16.gmra.mrb[12].mxu0 %v11146_v54  ;;  %7599 = vmatmul.mubr.bf16.gmra.mrb[12].mxu1 %v11146_v54  ;;  %v9235_v54 = vcombine.high %v337_v60, %v341_v41  ;;  %v365_v60 = vld [vmem:[#allocation5 + $0x370] sm:$0xff]  ;;  %v362_v41 = vld [vmem:[#allocation5 + $0x358] sm:$0xff] }
 0x255   :  { %7622 = vmatpush1.bf16.msra.mxu0 %v9202_v33  ;;  %8206 = vmatpush1.bf16.msra.mxu1 %v9204_v13  ;;  %v338_v33 = vld [vmem:[#allocation5 + $0x298] sm:$0xff] }
 0x256   :  { %7623 = vmatprep.subr.bf16.mxu0 %v9211_v11  ;;  %8207 = vmatprep.subr.bf16.mxu1 %v9213_v57  ;;  %v342_v13 = vld [vmem:[#allocation5 + $0x2b8] sm:$0xff]  ;;  %v9226_v11 = vcombine.low %v329_v62, %v333_v31  ;;  %v9228_v57 = vcombine.low %v330_v50, %v334_v28  ;;  %v357_v62 = vld [vmem:[#allocation5 + $0x330] sm:$0xff] }
 0x257   :  { %7641 = vmatprep.mubr.bf16.mxu0 %v10894_v58  ;;  %8225 = vmatprep.mubr.bf16.mxu1 %v10894_v58  ;;  %v9237_v58 = vcombine.high %v338_v33, %v342_v13  ;;  %v9236_v10 = vcombine.low %v338_v33, %v342_v13  ;;  %v354_v31 = vld [vmem:[#allocation5 + $0x318] sm:$0xff] }
 0x259   :  { %7624 = vmatpush1.bf16.msra.mxu0 %v9210_v26  ;;  %8208 = vmatpush1.bf16.msra.mxu1 %v9212_v56  ;;  %v345_v26 = vld [vmem:[#allocation5 + $0x2d0] sm:$0xff]  ;;  %v350_v56 = vld [vmem:[#allocation5 + $0x2f8] sm:$0xff] }
 0x25a   :  { %7625 = vmatprep.subr.bf16.mxu0 %v9219_v29  ;;  %8209 = vmatprep.subr.bf16.mxu1 %v9221_v8  ;;  %v9243_v29 = vcombine.high %v345_v26, %v349_v12  ;;  %v9245_v8 = vcombine.high %v346_v14, %v350_v56  ;;  %v9242_v50 = vcombine.low %v345_v26, %v349_v12  ;;  %v373_v26 = vld [vmem:[#allocation5 + $0x3b0] sm:$0xff]  ;;  %v370_v12 = vld [vmem:[#allocation5 + $0x398] sm:$0xff] }
 0x25b   :  { %v9244_v28 = vcombine.low %v346_v14, %v350_v56 }
 0x25d   :  { %7626 = vmatpush1.bf16.msra.mxu0 %v9218_v34  ;;  %8210 = vmatpush1.bf16.msra.mxu1 %v9220_v0  ;;  %v353_v34 = vld [vmem:[#allocation5 + $0x310] sm:$0xff]  ;;  %v358_v0 = vld [vmem:[#allocation5 + $0x338] sm:$0xff] }
 0x25e   :  { %7627 = vmatprep.subr.bf16.mxu0 %v9227_v45  ;;  %8211 = vmatprep.subr.bf16.mxu1 %v9229_v24  ;;  %v9251_v45 = vcombine.high %v353_v34, %v357_v62  ;;  %v9253_v24 = vcombine.high %v354_v31, %v358_v0  ;;  %v9250_v33 = vcombine.low %v353_v34, %v357_v62  ;;  %v381_v34 = vld [vmem:[#allocation5 + $0x3f0] sm:$0xff]  ;;  %v378_v62 = vld [vmem:[#allocation5 + $0x3d8] sm:$0xff] }
 0x25f   :  { %v9252_v13 = vcombine.low %v354_v31, %v358_v0 }
 0x261   :  { %7628 = vmatpush1.bf16.msra.mxu0 %v9226_v11  ;;  %8212 = vmatpush1.bf16.msra.mxu1 %v9228_v57  ;;  %v361_v11 = vld [vmem:[#allocation5 + $0x350] sm:$0xff] }
 0x262   :  { %7629 = vmatprep.subr.bf16.mxu0 %v9235_v54  ;;  %8213 = vmatprep.subr.bf16.mxu1 %v9237_v58  ;;  %v366_v54 = vld [vmem:[#allocation5 + $0x378] sm:$0xff]  ;;  %v9259_v57 = vcombine.high %v361_v11, %v365_v60  ;;  %v9258_v14 = vcombine.low %v361_v11, %v365_v60  ;;  %v389_v11 = vld [vmem:[#allocation5 + $0x430] sm:$0xff] }
 0x263   :  { %v9261_v58 = vcombine.high %v362_v41, %v366_v54  ;;  %v9260_v56 = vcombine.low %v362_v41, %v366_v54  ;;  %v386_v60 = vld [vmem:[#allocation5 + $0x418] sm:$0xff] }
 0x265   :  { %7630 = vmatpush1.bf16.msra.mxu0 %v9234_v40  ;;  %8214 = vmatpush1.bf16.msra.mxu1 %v9236_v10  ;;  %v369_v40 = vld [vmem:[#allocation5 + $0x390] sm:$0xff]  ;;  %v374_v10 = vld [vmem:[#allocation5 + $0x3b8] sm:$0xff] }
 0x266   :  { %7631 = vmatprep.subr.bf16.mxu0 %v9243_v29  ;;  %8215 = vmatprep.subr.bf16.mxu1 %v9245_v8  ;;  %v9267_v29 = vcombine.high %v369_v40, %v373_v26  ;;  %v9269_v8 = vcombine.high %v370_v12, %v374_v10  ;;  %v9266_v31 = vcombine.low %v369_v40, %v373_v26  ;;  %v397_v40 = vld [vmem:[#allocation5 + $0x470] sm:$0xff]  ;;  %v394_v26 = vld [vmem:[#allocation5 + $0x458] sm:$0xff] }
 0x267   :  { %v9268_v0 = vcombine.low %v370_v12, %v374_v10 }
 0x269   :  { %7632 = vmatpush1.bf16.msra.mxu0 %v9242_v50  ;;  %8216 = vmatpush1.bf16.msra.mxu1 %v9244_v28  ;;  %v377_v50 = vld [vmem:[#allocation5 + $0x3d0] sm:$0xff]  ;;  %v382_v28 = vld [vmem:[#allocation5 + $0x3f8] sm:$0xff] }
 0x26a   :  { %7633 = vmatprep.subr.bf16.mxu0 %v9251_v45  ;;  %8217 = vmatprep.subr.bf16.mxu1 %v9253_v24  ;;  %v9275_v45 = vcombine.high %v377_v50, %v381_v34  ;;  %v9277_v24 = vcombine.high %v378_v62, %v382_v28  ;;  %v9274_v41 = vcombine.low %v377_v50, %v381_v34  ;;  %v405_v50 = vld [vmem:[#allocation5 + $0x4b0] sm:$0xff]  ;;  %v402_v34 = vld [vmem:[#allocation5 + $0x498] sm:$0xff] }
 0x26b   :  { %v9276_v54 = vcombine.low %v378_v62, %v382_v28  ;;  %v406_v62 = vld [vmem:[#allocation5 + $0x4b8] sm:$0xff] }
 0x26d   :  { %7634 = vmatpush1.bf16.msra.mxu0 %v9250_v33  ;;  %8218 = vmatpush1.bf16.msra.mxu1 %v9252_v13  ;;  %v385_v33 = vld [vmem:[#allocation5 + $0x410] sm:$0xff]  ;;  %v390_v13 = vld [vmem:[#allocation5 + $0x438] sm:$0xff] }
 0x26e   :  { %7635 = vmatprep.subr.bf16.mxu0 %v9259_v57  ;;  %8219 = vmatprep.subr.bf16.mxu1 %v9261_v58  ;;  %v9283_v57 = vcombine.high %v385_v33, %v389_v11  ;;  %v9285_v58 = vcombine.high %v386_v60, %v390_v13  ;;  %v9282_v12 = vcombine.low %v385_v33, %v389_v11  ;;  %v409_v33 = vld [vmem:[#allocation5 + $0x4d0] sm:$0xff] }
 0x26f   :  { %v9284_v10 = vcombine.low %v386_v60, %v390_v13  ;;  %v413_v11 = vld [vmem:[#allocation5 + $0x4f0] sm:$0xff]  ;;  %v410_v60 = vld [vmem:[#allocation5 + $0x4d8] sm:$0xff] }
 0x270   :  { %v414_v13 = vld [vmem:[#allocation5 + $0x4f8] sm:$0xff] }
 0x271   :  { %7636 = vmatpush1.bf16.msra.mxu0 %v9258_v14  ;;  %8220 = vmatpush1.bf16.msra.mxu1 %v9260_v56  ;;  %v393_v14 = vld [vmem:[#allocation5 + $0x450] sm:$0xff]  ;;  %v398_v56 = vld [vmem:[#allocation5 + $0x478] sm:$0xff] }
 0x272   :  { %7637 = vmatprep.subr.bf16.mxu0 %v9267_v29  ;;  %8221 = vmatprep.subr.bf16.mxu1 %v9269_v8  ;;  %v9291_v29 = vcombine.high %v393_v14, %v397_v40  ;;  %v9293_v8 = vcombine.high %v394_v26, %v398_v56  ;;  %v9290_v28 = vcombine.low %v393_v14, %v397_v40  ;;  %v421_v14 = vld [vmem:[#allocation5 + $0x530] sm:$0xff]  ;;  %v418_v40 = vld [vmem:[#allocation5 + $0x518] sm:$0xff] }
 0x275   :  { %7638 = vmatpush1.bf16.msra.mxu0 %v9266_v31  ;;  %8222 = vmatpush1.bf16.msra.mxu1 %v9268_v0  ;;  %v401_v31 = vld [vmem:[#allocation5 + $0x490] sm:$0xff]  ;;  %v9292_v0 = vcombine.low %v394_v26, %v398_v56  ;;  %v422_v26 = vld [vmem:[#allocation5 + $0x538] sm:$0xff]  ;;  %v9306_v56 = vcombine.low %v409_v33, %v413_v11 }
 0x276   :  { %7639 = vmatprep.subr.bf16.mxu0 %v9275_v45  ;;  %8223 = vmatprep.subr.bf16.mxu1 %v9277_v24  ;;  %v9299_v45 = vcombine.high %v401_v31, %v405_v50  ;;  %v9301_v24 = vcombine.high %v402_v34, %v406_v62 }
 0x279   :  { %7640 = vmatpush1.bf16.msra.mxu0 %v9274_v41  ;;  %8224 = vmatpush1.bf16.msra.mxu1 %v9276_v54  ;;  %v9298_v41 = vcombine.low %v401_v31, %v405_v50  ;;  %v9307_v54 = vcombine.high %v409_v33, %v413_v11  ;;  %v426_v31 = vld [vmem:[#allocation5 + $0x558] sm:$0xff] }
 0x27a   :  { %7682 = vmatprep.subr.bf16.mxu0 %v9283_v57  ;;  %8266 = vmatprep.subr.bf16.mxu1 %v9285_v58  ;;  %v9309_v57 = vcombine.high %v410_v60, %v414_v13  ;;  %v417_v58 = vld [vmem:[#allocation5 + $0x510] sm:$0xff]  ;;  %v430_v50 = vld [vmem:[#allocation5 + $0x578] sm:$0xff] }
 0x27b   :  { %v438_v33 = vld [vmem:[#allocation5 + $0x5b8] sm:$0xff] }
 0x27c   :  { %7642 = vmatmul.mubr.bf16.vlgmr.msra.gmra.mrb[16].mxu0 %v10898_v15  ;;  %8226 = vmatmul.mubr.bf16.vlgmr.msra.gmra.mrb[16].mxu1 %v10898_v15  ;;  %v9300_v15 = vcombine.low %v402_v34, %v406_v62  ;;  %v9314_v34 = vcombine.low %v417_v58, %v421_v14  ;;  %v9316_v62 = vcombine.low %v418_v40, %v422_v26 }
 0x27d   :  { %7683 = vmatpush1.bf16.msra.mxu0 %v9282_v12  ;;  %8267 = vmatpush1.bf16.msra.mxu1 %v9284_v10  ;;  %v9315_v12 = vcombine.high %v417_v58, %v421_v14  ;;  %v9317_v10 = vcombine.high %v418_v40, %v422_v26  ;;  %v449_v26 = vld [vmem:[#allocation5 + $0x610] sm:$0xff] }
 0x27e   :  { %7684 = vmatprep.subr.bf16.mxu0 %v9291_v29  ;;  %8268 = vmatprep.subr.bf16.mxu1 %v9293_v8  ;;  %v425_v29 = vld [vmem:[#allocation5 + $0x550] sm:$0xff] }
 0x27f   :  { %7651 = vmatprep.mubr.bf16.mxu0 %v10900_v25  ;;  %8235 = vmatprep.mubr.bf16.mxu1 %v10900_v25  ;;  %v9308_v25 = vcombine.low %v410_v60, %v414_v13  ;;  %v429_v8 = vld [vmem:[#allocation5 + $0x570] sm:$0xff] }
 0x280   :  { %v9322_v11 = vcombine.low %v425_v29, %v429_v8 }
 0x281   :  { %7685 = vmatpush1.bf16.msra.mxu0 %v9290_v28  ;;  %8269 = vmatpush1.bf16.msra.mxu1 %v9292_v0  ;;  %v9325_v28 = vcombine.high %v426_v31, %v430_v50  ;;  %v433_v0 = vld [vmem:[#allocation5 + $0x590] sm:$0xff] }
 0x282   :  { %7686 = vmatprep.subr.bf16.mxu0 %v9299_v45  ;;  %8270 = vmatprep.subr.bf16.mxu1 %v9301_v24  ;;  %v437_v45 = vld [vmem:[#allocation5 + $0x5b0] sm:$0xff]  ;;  %v434_v24 = vld [vmem:[#allocation5 + $0x598] sm:$0xff] }
 0x283   :  { %v9331_v60 = vcombine.high %v433_v0, %v437_v45  ;;  %v9333_v13 = vcombine.high %v434_v24, %v438_v33  ;;  %v9330_v58 = vcombine.low %v433_v0, %v437_v45  ;;  %v9332_v14 = vcombine.low %v434_v24, %v438_v33  ;;  %v465_v45 = vld [vmem:[#allocation5 + $0x690] sm:$0xff]  ;;  %v466_v33 = vld [vmem:[#allocation5 + $0x698] sm:$0xff] }
 0x284   :  { %7652 = vmatmul.mubr.bf16.gmra.mrb[20].mxu0 %v10906_v38  ;;  %8236 = vmatmul.mubr.bf16.gmra.mrb[20].mxu1 %v10906_v38  ;;  %v9323_v38 = vcombine.high %v425_v29, %v429_v8  ;;  %v469_v24 = vld [vmem:[#allocation5 + $0x6b0] sm:$0xff] }
 0x285   :  { %7687 = vmatpush1.bf16.msra.mxu0 %v9298_v41  ;;  %8271 = vmatpush1.bf16.msra.mxu1 %v9300_v15  ;;  %v441_v41 = vld [vmem:[#allocation5 + $0x5d0] sm:$0xff] }
 0x286   :  { %7688 = vmatprep.subr.bf16.mxu0 %v9307_v54  ;;  %8272 = vmatprep.subr.bf16.mxu1 %v9309_v57  ;;  %v445_v15 = vld [vmem:[#allocation5 + $0x5f0] sm:$0xff]  ;;  %v442_v54 = vld [vmem:[#allocation5 + $0x5d8] sm:$0xff] }
 0x287   :  { %7661 = vmatprep.mubr.bf16.mxu0 %v10908_v47  ;;  %8245 = vmatprep.mubr.bf16.mxu1 %v10908_v47  ;;  %v9324_v47 = vcombine.low %v426_v31, %v430_v50  ;;  %v446_v57 = vld [vmem:[#allocation5 + $0x5f8] sm:$0xff]  ;;  %v457_v31 = vld [vmem:[#allocation5 + $0x650] sm:$0xff] }
 0x288   :  { %v9341_v40 = vcombine.high %v442_v54, %v446_v57  ;;  %v461_v50 = vld [vmem:[#allocation5 + $0x670] sm:$0xff] }
 0x289   :  { %7689 = vmatpush1.bf16.msra.mxu0 %v9306_v56  ;;  %8273 = vmatpush1.bf16.msra.mxu1 %v9308_v25  ;;  %v453_v56 = vld [vmem:[#allocation5 + $0x630] sm:$0xff]  ;;  %v450_v25 = vld [vmem:[#allocation5 + $0x618] sm:$0xff] }
 0x28a   :  { %7690 = vmatprep.subr.bf16.mxu0 %v9315_v12  ;;  %8274 = vmatprep.subr.bf16.mxu1 %v9317_v10  ;;  %v454_v12 = vld [vmem:[#allocation5 + $0x638] sm:$0xff]  ;;  %v9338_v10 = vcombine.low %v441_v41, %v445_v15  ;;  %v9347_v29 = vcombine.high %v449_v26, %v453_v56 }
 0x28b   :  { %v9349_v8 = vcombine.high %v450_v25, %v454_v12 }
 0x28c   :  { %7662 = vmatmul.mubr.bf16.gmra.mrb[24].mxu0 %v10914_v61  ;;  %8246 = vmatmul.mubr.bf16.gmra.mrb[24].mxu1 %v10914_v61  ;;  %v9339_v61 = vcombine.high %v441_v41, %v445_v15  ;;  %v473_v41 = vld [vmem:[#allocation5 + $0x6d0] sm:$0xff] }
 0x28d   :  { %7691 = vmatpush1.bf16.msra.mxu0 %v9314_v34  ;;  %8275 = vmatpush1.bf16.msra.mxu1 %v9316_v62  ;;  %v458_v34 = vld [vmem:[#allocation5 + $0x658] sm:$0xff]  ;;  %v477_v15 = vld [vmem:[#allocation5 + $0x6f0] sm:$0xff] }
 0x28e   :  { %7692 = vmatprep.subr.bf16.mxu0 %v9323_v38  ;;  %8276 = vmatprep.subr.bf16.mxu1 %v9325_v28  ;;  %v462_v62 = vld [vmem:[#allocation5 + $0x678] sm:$0xff]  ;;  %v9346_v38 = vcombine.low %v449_v26, %v453_v56  ;;  %v9348_v28 = vcombine.low %v450_v25, %v454_v12  ;;  %v481_v26 = vld [vmem:[#allocation5 + $0x710] sm:$0xff] }
 0x28f   :  { %7671 = vmatprep.mubr.bf16.mxu0 %v10916_v6  ;;  %8255 = vmatprep.mubr.bf16.mxu1 %v10916_v6  ;;  %v9340_v6 = vcombine.low %v442_v54, %v446_v57  ;;  %v9357_v0 = vcombine.high %v458_v34, %v462_v62  ;;  %v474_v54 = vld [vmem:[#allocation5 + $0x6d8] sm:$0xff]  ;;  %v485_v56 = vld [vmem:[#allocation5 + $0x730] sm:$0xff] }
 0x290   :  { %v478_v57 = vld [vmem:[#allocation5 + $0x6f8] sm:$0xff] }
 0x291   :  { %7693 = vmatpush1.bf16.msra.mxu0 %v9322_v11  ;;  %8277 = vmatpush1.bf16.msra.mxu1 %v9324_v47  ;;  %v470_v11 = vld [vmem:[#allocation5 + $0x6b8] sm:$0xff]  ;;  %v9354_v47 = vcombine.low %v457_v31, %v461_v50 }
 0x292   :  { %7694 = vmatprep.subr.bf16.mxu0 %v9331_v60  ;;  %8278 = vmatprep.subr.bf16.mxu1 %v9333_v13  ;;  %v9356_v60 = vcombine.low %v458_v34, %v462_v62  ;;  %v9363_v13 = vcombine.high %v465_v45, %v469_v24  ;;  %v482_v25 = vld [vmem:[#allocation5 + $0x718] sm:$0xff] }
 0x293   :  { %v486_v12 = vld [vmem:[#allocation5 + $0x738] sm:$0xff] }
 0x294   :  { %7672 = vmatmul.mubr.bf16.gmra.mrb[28].mxu0 %v10922_v20  ;;  %8256 = vmatmul.mubr.bf16.gmra.mrb[28].mxu1 %v10922_v20  ;;  %v9355_v20 = vcombine.high %v457_v31, %v461_v50  ;;  %v489_v31 = vld [vmem:[#allocation5 + $0x750] sm:$0xff]  ;;  %v490_v34 = vld [vmem:[#allocation5 + $0x758] sm:$0xff] }
 0x295   :  { %7695 = vmatpush1.bf16.msra.mxu0 %v9330_v58  ;;  %8279 = vmatpush1.bf16.msra.mxu1 %v9332_v14  ;;  %v9362_v58 = vcombine.low %v465_v45, %v469_v24  ;;  %v9364_v14 = vcombine.low %v466_v33, %v470_v11  ;;  %v493_v50 = vld [vmem:[#allocation5 + $0x770] sm:$0xff]  ;;  %v494_v62 = vld [vmem:[#allocation5 + $0x778] sm:$0xff] }
 0x296   :  { %7696 = vmatprep.subr.bf16.mxu0 %v9339_v61  ;;  %8280 = vmatprep.subr.bf16.mxu1 %v9341_v40  ;;  %v9371_v61 = vcombine.high %v473_v41, %v477_v15  ;;  %v9373_v40 = vcombine.high %v474_v54, %v478_v57  ;;  %v497_v45 = vld [vmem:[#allocation5 + $0x790] sm:$0xff] }
 0x297   :  { %7714 = vmatprep.mubr.bf16.mxu0 %v10924_v30  ;;  %8298 = vmatprep.mubr.bf16.mxu1 %v10924_v30  ;;  %v9365_v30 = vcombine.high %v466_v33, %v470_v11  ;;  %v501_v24 = vld [vmem:[#allocation5 + $0x7b0] sm:$0xff]  ;;  %v498_v33 = vld [vmem:[#allocation5 + $0x798] sm:$0xff] }
 0x298   :  { %v502_v11 = vld [vmem:[#allocation5 + $0x7b8] sm:$0xff] }
 0x299   :  { %7697 = vmatpush1.bf16.msra.mxu0 %v9338_v10  ;;  %8281 = vmatpush1.bf16.msra.mxu1 %v9340_v6  ;;  %v9370_v10 = vcombine.low %v473_v41, %v477_v15  ;;  %v9372_v6 = vcombine.low %v474_v54, %v478_v57  ;;  %v505_v41 = vld [vmem:[#allocation5 + $0x7d0] sm:$0xff]  ;;  %v506_v54 = vld [vmem:[#allocation5 + $0x7d8] sm:$0xff] }
 0x29a   :  { %7698 = vmatprep.subr.bf16.mxu0 %v9347_v29  ;;  %8282 = vmatprep.subr.bf16.mxu1 %v9349_v8  ;;  %v9379_v29 = vcombine.high %v481_v26, %v485_v56  ;;  %v9381_v8 = vcombine.high %v482_v25, %v486_v12  ;;  %v509_v15 = vld [vmem:[#allocation5 + $0x7f0] sm:$0xff]  ;;  %v510_v57 = vld [vmem:[#allocation5 + $0x7f8] sm:$0xff] }
 0x29d   :  { %7699 = vmatpush1.bf16.msra.mxu0 %v9346_v38  ;;  %8283 = vmatpush1.bf16.msra.mxu1 %v9348_v28  ;;  %v9378_v38 = vcombine.low %v481_v26, %v485_v56  ;;  %v9380_v28 = vcombine.low %v482_v25, %v486_v12  ;;  %v513_v26 = vld [vmem:[#allocation5 + $0x810] sm:$0xff]  ;;  %v514_v25 = vld [vmem:[#allocation5 + $0x818] sm:$0xff] }
 0x29e   :  { %7700 = vmatprep.subr.bf16.mxu0 %v9355_v20  ;;  %8284 = vmatprep.subr.bf16.mxu1 %v9357_v0  ;;  %v9387_v20 = vcombine.high %v489_v31, %v493_v50  ;;  %v9389_v0 = vcombine.high %v490_v34, %v494_v62  ;;  %v517_v56 = vld [vmem:[#allocation5 + $0x830] sm:$0xff]  ;;  %v518_v12 = vld [vmem:[#allocation5 + $0x838] sm:$0xff] }
 0x2a1   :  { %7701 = vmatpush1.bf16.msra.mxu0 %v9354_v47  ;;  %8285 = vmatpush1.bf16.msra.mxu1 %v9356_v60  ;;  %v9386_v47 = vcombine.low %v489_v31, %v493_v50  ;;  %v9388_v60 = vcombine.low %v490_v34, %v494_v62  ;;  %v521_v31 = vld [vmem:[#allocation5 + $0x850] sm:$0xff]  ;;  %v522_v34 = vld [vmem:[#allocation5 + $0x858] sm:$0xff] }
 0x2a2   :  { %7702 = vmatprep.subr.bf16.mxu0 %v9363_v13  ;;  %8286 = vmatprep.subr.bf16.mxu1 %v9365_v30  ;;  %v9395_v13 = vcombine.high %v497_v45, %v501_v24  ;;  %v9397_v30 = vcombine.high %v498_v33, %v502_v11  ;;  %v525_v50 = vld [vmem:[#allocation5 + $0x870] sm:$0xff]  ;;  %v526_v62 = vld [vmem:[#allocation5 + $0x878] sm:$0xff] }
 0x2a5   :  { %7703 = vmatpush1.bf16.msra.mxu0 %v9362_v58  ;;  %8287 = vmatpush1.bf16.msra.mxu1 %v9364_v14  ;;  %v9394_v58 = vcombine.low %v497_v45, %v501_v24  ;;  %v9396_v14 = vcombine.low %v498_v33, %v502_v11  ;;  %v529_v45 = vld [vmem:[#allocation5 + $0x890] sm:$0xff]  ;;  %v530_v33 = vld [vmem:[#allocation5 + $0x898] sm:$0xff] }
 0x2a6   :  { %7704 = vmatprep.subr.bf16.mxu0 %v9371_v61  ;;  %8288 = vmatprep.subr.bf16.mxu1 %v9373_v40  ;;  %v9403_v61 = vcombine.high %v505_v41, %v509_v15  ;;  %v9405_v40 = vcombine.high %v506_v54, %v510_v57  ;;  %v533_v24 = vld [vmem:[#allocation5 + $0x8b0] sm:$0xff]  ;;  %v534_v11 = vld [vmem:[#allocation5 + $0x8b8] sm:$0xff] }
 0x2a9   :  { %7705 = vmatpush1.bf16.msra.mxu0 %v9370_v10  ;;  %8289 = vmatpush1.bf16.msra.mxu1 %v9372_v6  ;;  %v9402_v10 = vcombine.low %v505_v41, %v509_v15  ;;  %v9404_v6 = vcombine.low %v506_v54, %v510_v57  ;;  %v537_v41 = vld [vmem:[#allocation5 + $0x8d0] sm:$0xff]  ;;  %v538_v54 = vld [vmem:[#allocation5 + $0x8d8] sm:$0xff] }
 0x2aa   :  { %7706 = vmatprep.subr.bf16.mxu0 %v9379_v29  ;;  %8290 = vmatprep.subr.bf16.mxu1 %v9381_v8  ;;  %v9411_v29 = vcombine.high %v513_v26, %v517_v56  ;;  %v9413_v8 = vcombine.high %v514_v25, %v518_v12  ;;  %v541_v15 = vld [vmem:[#allocation5 + $0x8f0] sm:$0xff]  ;;  %v542_v57 = vld [vmem:[#allocation5 + $0x8f8] sm:$0xff] }
 0x2ad   :  { %7707 = vmatpush1.bf16.msra.mxu0 %v9378_v38  ;;  %8291 = vmatpush1.bf16.msra.mxu1 %v9380_v28  ;;  %v9410_v38 = vcombine.low %v513_v26, %v517_v56  ;;  %v9412_v28 = vcombine.low %v514_v25, %v518_v12  ;;  %v549_v26 = vld [vmem:[#allocation5 + $0x930] sm:$0xff]  ;;  %v546_v56 = vld [vmem:[#allocation5 + $0x918] sm:$0xff]  ;;  %v9434_v12 = vcombine.low %v537_v41, %v541_v15 }
 0x2ae   :  { %7708 = vmatprep.subr.bf16.mxu0 %v9387_v20  ;;  %8292 = vmatprep.subr.bf16.mxu1 %v9389_v0  ;;  %v9419_v20 = vcombine.high %v521_v31, %v525_v50  ;;  %v9421_v0 = vcombine.high %v522_v34, %v526_v62  ;;  %v550_v25 = vld [vmem:[#allocation5 + $0x938] sm:$0xff] }
 0x2b1   :  { %7709 = vmatpush1.bf16.msra.mxu0 %v9386_v47  ;;  %8293 = vmatpush1.bf16.msra.mxu1 %v9388_v60  ;;  %v9418_v47 = vcombine.low %v521_v31, %v525_v50  ;;  %v9420_v60 = vcombine.low %v522_v34, %v526_v62  ;;  %v554_v31 = vld [vmem:[#allocation5 + $0x958] sm:$0xff]  ;;  %v9444_v62 = vcombine.low %v546_v56, %v550_v25 }
 0x2b2   :  { %7710 = vmatprep.subr.bf16.mxu0 %v9395_v13  ;;  %8294 = vmatprep.subr.bf16.mxu1 %v9397_v30  ;;  %v9427_v13 = vcombine.high %v529_v45, %v533_v24  ;;  %v9429_v30 = vcombine.high %v530_v33, %v534_v11  ;;  %v558_v50 = vld [vmem:[#allocation5 + $0x978] sm:$0xff] }
 0x2b5   :  { %7711 = vmatpush1.bf16.msra.mxu0 %v9394_v58  ;;  %8295 = vmatpush1.bf16.msra.mxu1 %v9396_v14  ;;  %v9426_v58 = vcombine.low %v529_v45, %v533_v24  ;;  %v9435_v14 = vcombine.high %v537_v41, %v541_v15  ;;  %v566_v45 = vld [vmem:[#allocation5 + $0x9b8] sm:$0xff] }
 0x2b6   :  { %7712 = vmatprep.subr.bf16.mxu0 %v9403_v61  ;;  %8296 = vmatprep.subr.bf16.mxu1 %v9405_v40  ;;  %v9437_v61 = vcombine.high %v538_v54, %v542_v57  ;;  %v545_v40 = vld [vmem:[#allocation5 + $0x910] sm:$0xff] }
 0x2b7   :  { %v9442_v34 = vcombine.low %v545_v40, %v549_v26 }
 0x2b9   :  { %7713 = vmatpush1.bf16.msra.mxu0 %v9402_v10  ;;  %8297 = vmatpush1.bf16.msra.mxu1 %v9404_v6  ;;  %v9443_v10 = vcombine.high %v545_v40, %v549_v26  ;;  %v9445_v6 = vcombine.high %v546_v56, %v550_v25  ;;  %v585_v56 = vld [vmem:[#allocation5 + $0xa50] sm:$0xff] }
 0x2ba   :  { %7755 = vmatprep.subr.bf16.mxu0 %v9411_v29  ;;  %8339 = vmatprep.subr.bf16.mxu1 %v9413_v8  ;;  %v553_v29 = vld [vmem:[#allocation5 + $0x950] sm:$0xff] }
 0x2bb   :  { %v557_v8 = vld [vmem:[#allocation5 + $0x970] sm:$0xff] }
 0x2bc   :  { %7715 = vmatmul.mubr.bf16.vlgmr.msra.gmra.mrb[16].mxu0 %v10930_v53  ;;  %8299 = vmatmul.mubr.bf16.vlgmr.msra.gmra.mrb[16].mxu1 %v10930_v53  ;;  %v9428_v53 = vcombine.low %v530_v33, %v534_v11  ;;  %v9450_v24 = vcombine.low %v553_v29, %v557_v8  ;;  %v589_v25 = vld [vmem:[#allocation5 + $0xa70] sm:$0xff] }
 0x2bd   :  { %7756 = vmatpush1.bf16.msra.mxu0 %v9410_v38  ;;  %8340 = vmatpush1.bf16.msra.mxu1 %v9412_v28  ;;  %v9453_v38 = vcombine.high %v554_v31, %v558_v50  ;;  %v561_v28 = vld [vmem:[#allocation5 + $0x990] sm:$0xff] }
 0x2be   :  { %7757 = vmatprep.subr.bf16.mxu0 %v9419_v20  ;;  %8341 = vmatprep.subr.bf16.mxu1 %v9421_v0  ;;  %v565_v20 = vld [vmem:[#allocation5 + $0x9b0] sm:$0xff]  ;;  %v562_v0 = vld [vmem:[#allocation5 + $0x998] sm:$0xff] }
 0x2bf   :  { %7724 = vmatprep.mubr.bf16.mxu0 %v10932_v1  ;;  %8308 = vmatprep.mubr.bf16.mxu1 %v10932_v1  ;;  %v9436_v1 = vcombine.low %v538_v54, %v542_v57  ;;  %v9459_v33 = vcombine.high %v561_v28, %v565_v20  ;;  %v9461_v11 = vcombine.high %v562_v0, %v566_v45  ;;  %v577_v57 = vld [vmem:[#allocation5 + $0xa10] sm:$0xff] }
 0x2c0   :  { %v9458_v41 = vcombine.low %v561_v28, %v565_v20  ;;  %v9460_v15 = vcombine.low %v562_v0, %v566_v45  ;;  %v601_v28 = vld [vmem:[#allocation5 + $0xad0] sm:$0xff]  ;;  %v602_v0 = vld [vmem:[#allocation5 + $0xad8] sm:$0xff] }
 0x2c1   :  { %7758 = vmatpush1.bf16.msra.mxu0 %v9418_v47  ;;  %8342 = vmatpush1.bf16.msra.mxu1 %v9420_v60  ;;  %v569_v47 = vld [vmem:[#allocation5 + $0x9d0] sm:$0xff]  ;;  %v606_v45 = vld [vmem:[#allocation5 + $0xaf8] sm:$0xff] }
 0x2c2   :  { %7759 = vmatprep.subr.bf16.mxu0 %v9427_v13  ;;  %8343 = vmatprep.subr.bf16.mxu1 %v9429_v30  ;;  %v573_v60 = vld [vmem:[#allocation5 + $0x9f0] sm:$0xff]  ;;  %v570_v13 = vld [vmem:[#allocation5 + $0x9d8] sm:$0xff] }
 0x2c3   :  { %v574_v30 = vld [vmem:[#allocation5 + $0x9f8] sm:$0xff]  ;;  %v605_v20 = vld [vmem:[#allocation5 + $0xaf0] sm:$0xff] }
 0x2c4   :  { %7725 = vmatmul.mubr.bf16.gmra.mrb[20].mxu0 %v10938_v16  ;;  %8309 = vmatmul.mubr.bf16.gmra.mrb[20].mxu1 %v10938_v16  ;;  %v9451_v16 = vcombine.high %v553_v29, %v557_v8  ;;  %v9469_v54 = vcombine.high %v570_v13, %v574_v30  ;;  %v593_v8 = vld [vmem:[#allocation5 + $0xa90] sm:$0xff] }
 0x2c5   :  { %7760 = vmatpush1.bf16.msra.mxu0 %v9426_v58  ;;  %8344 = vmatpush1.bf16.msra.mxu1 %v9428_v53  ;;  %v581_v58 = vld [vmem:[#allocation5 + $0xa30] sm:$0xff]  ;;  %v578_v53 = vld [vmem:[#allocation5 + $0xa18] sm:$0xff] }
 0x2c6   :  { %7761 = vmatprep.subr.bf16.mxu0 %v9435_v14  ;;  %8345 = vmatprep.subr.bf16.mxu1 %v9437_v61  ;;  %v582_v14 = vld [vmem:[#allocation5 + $0xa38] sm:$0xff]  ;;  %v9466_v61 = vcombine.low %v569_v47, %v573_v60  ;;  %v9475_v40 = vcombine.high %v577_v57, %v581_v58 }
 0x2c7   :  { %7734 = vmatprep.mubr.bf16.mxu0 %v10940_v27  ;;  %8318 = vmatprep.mubr.bf16.mxu1 %v10940_v27  ;;  %v9452_v27 = vcombine.low %v554_v31, %v558_v50  ;;  %v9477_v26 = vcombine.high %v578_v53, %v582_v14  ;;  %v597_v31 = vld [vmem:[#allocation5 + $0xab0] sm:$0xff]  ;;  %v594_v50 = vld [vmem:[#allocation5 + $0xa98] sm:$0xff] }
 0x2c9   :  { %7762 = vmatpush1.bf16.msra.mxu0 %v9434_v12  ;;  %8346 = vmatpush1.bf16.msra.mxu1 %v9436_v1  ;;  %v586_v12 = vld [vmem:[#allocation5 + $0xa58] sm:$0xff] }
 0x2ca   :  { %7763 = vmatprep.subr.bf16.mxu0 %v9443_v10  ;;  %8347 = vmatprep.subr.bf16.mxu1 %v9445_v6  ;;  %v590_v1 = vld [vmem:[#allocation5 + $0xa78] sm:$0xff]  ;;  %v9474_v10 = vcombine.low %v577_v57, %v581_v58  ;;  %v9476_v6 = vcombine.low %v578_v53, %v582_v14  ;;  %v617_v57 = vld [vmem:[#allocation5 + $0xb50] sm:$0xff] }
 0x2cb   :  { %v9485_v29 = vcombine.high %v586_v12, %v590_v1  ;;  %v621_v58 = vld [vmem:[#allocation5 + $0xb70] sm:$0xff]  ;;  %v618_v53 = vld [vmem:[#allocation5 + $0xb58] sm:$0xff] }
 0x2cc   :  { %7735 = vmatmul.mubr.bf16.gmra.mrb[24].mxu0 %v10946_v42  ;;  %8319 = vmatmul.mubr.bf16.gmra.mrb[24].mxu1 %v10946_v42  ;;  %v9467_v42 = vcombine.high %v569_v47, %v573_v60  ;;  %v609_v47 = vld [vmem:[#allocation5 + $0xb10] sm:$0xff]  ;;  %v622_v14 = vld [vmem:[#allocation5 + $0xb78] sm:$0xff] }
 0x2cd   :  { %7764 = vmatpush1.bf16.msra.mxu0 %v9442_v34  ;;  %8348 = vmatpush1.bf16.msra.mxu1 %v9444_v62  ;;  %v598_v34 = vld [vmem:[#allocation5 + $0xab8] sm:$0xff]  ;;  %v9482_v62 = vcombine.low %v585_v56, %v589_v25  ;;  %v613_v60 = vld [vmem:[#allocation5 + $0xb30] sm:$0xff] }
 0x2ce   :  { %7765 = vmatprep.subr.bf16.mxu0 %v9451_v16  ;;  %8349 = vmatprep.subr.bf16.mxu1 %v9453_v38  ;;  %v9484_v16 = vcombine.low %v586_v12, %v590_v1  ;;  %v9491_v38 = vcombine.high %v593_v8, %v597_v31  ;;  %v626_v12 = vld [vmem:[#allocation5 + $0xb98] sm:$0xff] }
 0x2cf   :  { %7744 = vmatprep.mubr.bf16.mxu0 %v10948_v52  ;;  %8328 = vmatprep.mubr.bf16.mxu1 %v10948_v52  ;;  %v9468_v52 = vcombine.low %v570_v13, %v574_v30  ;;  %v610_v13 = vld [vmem:[#allocation5 + $0xb18] sm:$0xff] }
 0x2d0   :  { %v614_v30 = vld [vmem:[#allocation5 + $0xb38] sm:$0xff] }
 0x2d1   :  { %7766 = vmatpush1.bf16.msra.mxu0 %v9450_v24  ;;  %8350 = vmatpush1.bf16.msra.mxu1 %v9452_v27  ;;  %v9490_v24 = vcombine.low %v593_v8, %v597_v31  ;;  %v9492_v27 = vcombine.low %v594_v50, %v598_v34  ;;  %v630_v1 = vld [vmem:[#allocation5 + $0xbb8] sm:$0xff]  ;;  %v633_v8 = vld [vmem:[#allocation5 + $0xbd0] sm:$0xff] }
 0x2d2   :  { %7767 = vmatprep.subr.bf16.mxu0 %v9459_v33  ;;  %8351 = vmatprep.subr.bf16.mxu1 %v9461_v11  ;;  %v9499_v33 = vcombine.high %v601_v28, %v605_v20  ;;  %v9501_v11 = vcombine.high %v602_v0, %v606_v45  ;;  %v637_v31 = vld [vmem:[#allocation5 + $0xbf0] sm:$0xff] }
 0x2d4   :  { %7745 = vmatmul.mubr.bf16.gmra.mrb[28].mxu0 %v10954_v5  ;;  %8329 = vmatmul.mubr.bf16.gmra.mrb[28].mxu1 %v10954_v5  ;;  %v9483_v5 = vcombine.high %v585_v56, %v589_v25  ;;  %v625_v56 = vld [vmem:[#allocation5 + $0xb90] sm:$0xff] }
 0x2d5   :  { %7768 = vmatpush1.bf16.msra.mxu0 %v9458_v41  ;;  %8352 = vmatpush1.bf16.msra.mxu1 %v9460_v15  ;;  %v9498_v41 = vcombine.low %v601_v28, %v605_v20  ;;  %v9500_v15 = vcombine.low %v602_v0, %v606_v45  ;;  %v629_v25 = vld [vmem:[#allocation5 + $0xbb0] sm:$0xff]  ;;  %v642_v0 = vld [vmem:[#allocation5 + $0xc18] sm:$0xff] }
 0x2d6   :  { %7769 = vmatprep.subr.bf16.mxu0 %v9467_v42  ;;  %8353 = vmatprep.subr.bf16.mxu1 %v9469_v54  ;;  %v9507_v42 = vcombine.high %v609_v47, %v613_v60  ;;  %v9509_v54 = vcombine.high %v610_v13, %v614_v30  ;;  %v641_v28 = vld [vmem:[#allocation5 + $0xc10] sm:$0xff]  ;;  %v646_v45 = vld [vmem:[#allocation5 + $0xc38] sm:$0xff] }
 0x2d7   :  { %7787 = vmatprep.mubr.bf16.mxu0 %v10956_v17  ;;  %8371 = vmatprep.mubr.bf16.mxu1 %v10956_v17  ;;  %v9493_v17 = vcombine.high %v594_v50, %v598_v34  ;;  %v634_v50 = vld [vmem:[#allocation5 + $0xbd8] sm:$0xff]  ;;  %v645_v20 = vld [vmem:[#allocation5 + $0xc30] sm:$0xff] }
 0x2d8   :  { %v638_v34 = vld [vmem:[#allocation5 + $0xbf8] sm:$0xff] }
 0x2d9   :  { %7770 = vmatpush1.bf16.msra.mxu0 %v9466_v61  ;;  %8354 = vmatpush1.bf16.msra.mxu1 %v9468_v52  ;;  %v9506_v61 = vcombine.low %v609_v47, %v613_v60  ;;  %v9508_v52 = vcombine.low %v610_v13, %v614_v30  ;;  %v649_v47 = vld [vmem:[#allocation5 + $0xc50] sm:$0xff]  ;;  %v650_v13 = vld [vmem:[#allocation5 + $0xc58] sm:$0xff] }
 0x2da   :  { %7771 = vmatprep.subr.bf16.mxu0 %v9475_v40  ;;  %8355 = vmatprep.subr.bf16.mxu1 %v9477_v26  ;;  %v9515_v40 = vcombine.high %v617_v57, %v621_v58  ;;  %v9517_v26 = vcombine.high %v618_v53, %v622_v14  ;;  %v653_v60 = vld [vmem:[#allocation5 + $0xc70] sm:$0xff]  ;;  %v654_v30 = vld [vmem:[#allocation5 + $0xc78] sm:$0xff] }
 0x2dd   :  { %7772 = vmatpush1.bf16.msra.mxu0 %v9474_v10  ;;  %8356 = vmatpush1.bf16.msra.mxu1 %v9476_v6  ;;  %v9514_v10 = vcombine.low %v617_v57, %v621_v58  ;;  %v9516_v6 = vcombine.low %v618_v53, %v622_v14  ;;  %v657_v57 = vld [vmem:[#allocation5 + $0xc90] sm:$0xff]  ;;  %v658_v53 = vld [vmem:[#allocation5 + $0xc98] sm:$0xff] }
 0x2de   :  { %7773 = vmatprep.subr.bf16.mxu0 %v9483_v5  ;;  %8357 = vmatprep.subr.bf16.mxu1 %v9485_v29  ;;  %v9523_v5 = vcombine.high %v625_v56, %v629_v25  ;;  %v9525_v29 = vcombine.high %v626_v12, %v630_v1  ;;  %v661_v58 = vld [vmem:[#allocation5 + $0xcb0] sm:$0xff]  ;;  %v662_v14 = vld [vmem:[#allocation5 + $0xcb8] sm:$0xff] }
 0x2e1   :  { %7774 = vmatpush1.bf16.msra.mxu0 %v9482_v62  ;;  %8358 = vmatpush1.bf16.msra.mxu1 %v9484_v16  ;;  %v9522_v62 = vcombine.low %v625_v56, %v629_v25  ;;  %v9524_v16 = vcombine.low %v626_v12, %v630_v1  ;;  %v665_v56 = vld [vmem:[#allocation5 + $0xcd0] sm:$0xff]  ;;  %v666_v12 = vld [vmem:[#allocation5 + $0xcd8] sm:$0xff] }
 0x2e2   :  { %7775 = vmatprep.subr.bf16.mxu0 %v9491_v38  ;;  %8359 = vmatprep.subr.bf16.mxu1 %v9493_v17  ;;  %v9531_v38 = vcombine.high %v633_v8, %v637_v31  ;;  %v9533_v17 = vcombine.high %v634_v50, %v638_v34  ;;  %v669_v25 = vld [vmem:[#allocation5 + $0xcf0] sm:$0xff]  ;;  %v670_v1 = vld [vmem:[#allocation5 + $0xcf8] sm:$0xff] }
 0x2e5   :  { %7776 = vmatpush1.bf16.msra.mxu0 %v9490_v24  ;;  %8360 = vmatpush1.bf16.msra.mxu1 %v9492_v27  ;;  %v9530_v24 = vcombine.low %v633_v8, %v637_v31  ;;  %v9532_v27 = vcombine.low %v634_v50, %v638_v34  ;;  %v673_v8 = vld [vmem:[#allocation5 + $0xd10] sm:$0xff]  ;;  %v674_v50 = vld [vmem:[#allocation5 + $0xd18] sm:$0xff] }
 0x2e6   :  { %7777 = vmatprep.subr.bf16.mxu0 %v9499_v33  ;;  %8361 = vmatprep.subr.bf16.mxu1 %v9501_v11  ;;  %v9539_v33 = vcombine.high %v641_v28, %v645_v20  ;;  %v9541_v11 = vcombine.high %v642_v0, %v646_v45  ;;  %v677_v31 = vld [vmem:[#allocation5 + $0xd30] sm:$0xff]  ;;  %v678_v34 = vld [vmem:[#allocation5 + $0xd38] sm:$0xff] }
 0x2e9   :  { %7778 = vmatpush1.bf16.msra.mxu0 %v9498_v41  ;;  %8362 = vmatpush1.bf16.msra.mxu1 %v9500_v15  ;;  %v9538_v41 = vcombine.low %v641_v28, %v645_v20  ;;  %v9540_v15 = vcombine.low %v642_v0, %v646_v45  ;;  %v681_v28 = vld [vmem:[#allocation5 + $0xd50] sm:$0xff]  ;;  %v682_v45 = vld [vmem:[#allocation5 + $0xd58] sm:$0xff] }
 0x2ea   :  { %7779 = vmatprep.subr.bf16.mxu0 %v9507_v42  ;;  %8363 = vmatprep.subr.bf16.mxu1 %v9509_v54  ;;  %v9547_v42 = vcombine.high %v649_v47, %v653_v60  ;;  %v9549_v54 = vcombine.high %v650_v13, %v654_v30  ;;  %v685_v20 = vld [vmem:[#allocation5 + $0xd70] sm:$0xff] }
 0x2ed   :  { %7780 = vmatpush1.bf16.msra.mxu0 %v9506_v61  ;;  %8364 = vmatpush1.bf16.msra.mxu1 %v9508_v52  ;;  %v9546_v61 = vcombine.low %v649_v47, %v653_v60  ;;  %v9548_v52 = vcombine.low %v650_v13, %v654_v30  ;;  %v9572_v47 = vcombine.low %v674_v50, %v678_v34 }
 0x2ee   :  { %7781 = vmatprep.subr.bf16.mxu0 %v9515_v40  ;;  %8365 = vmatprep.subr.bf16.mxu1 %v9517_v26  ;;  %v9555_v40 = vcombine.high %v657_v57, %v661_v58  ;;  %v9557_v26 = vcombine.high %v658_v53, %v662_v14  ;;  %v9579_v13 = vcombine.high %v681_v28, %v685_v20 }
 0x2f1   :  { %7782 = vmatpush1.bf16.msra.mxu0 %v9514_v10  ;;  %8366 = vmatpush1.bf16.msra.mxu1 %v9516_v6  ;;  %v1281_v10 = vlaneseq  ;;  %v9554_v6 = vcombine.low %v657_v57, %v661_v58 }
 0x2f2   :  { %7783 = vmatprep.subr.bf16.mxu0 %v9523_v5  ;;  %8367 = vmatprep.subr.bf16.mxu1 %v9525_v29  ;;  %v9563_v5 = vcombine.high %v665_v56, %v669_v25  ;;  %v9565_v29 = vcombine.high %v666_v12, %v670_v1 }
 0x2f5   :  { %7784 = vmatpush1.bf16.msra.mxu0 %v9522_v62  ;;  %8368 = vmatpush1.bf16.msra.mxu1 %v9524_v16  ;;  %v11188_v62 = vshrl.u32 %v1281_v10, 7  ;;  %v9562_v16 = vcombine.low %v665_v56, %v669_v25 }
 0x2f6   :  { %7785 = vmatprep.subr.bf16.mxu0 %v9531_v38  ;;  %8369 = vmatprep.subr.bf16.mxu1 %v9533_v17  ;;  %v9571_v38 = vcombine.high %v673_v8, %v677_v31  ;;  %v9573_v17 = vcombine.high %v674_v50, %v678_v34 }
 0x2f7   :  { %v1283_v0 = vsub.s32 0, %v11188_v62  ;;  %v1295_v60 = vsub.s32 3, %v11188_v62 }
 0x2f9   :  { %7786 = vmatpush1.bf16.msra.mxu0 %v9530_v24  ;;  %8370 = vmatpush1.bf16.msra.mxu1 %v9532_v27  ;;  %v686_v24 = vld [vmem:[#allocation5 + $0xd78] sm:$0xff]  ;;  %v9570_v27 = vcombine.low %v673_v8, %v677_v31 }
 0x2fa   :  { %7828 = vmatprep.subr.bf16.mxu0 %v9539_v33  ;;  %8412 = vmatprep.subr.bf16.mxu1 %v9541_v11  ;;  %v1279_v33 = vld [vmem:[#allocation7] sm:$0xff]  ;;  %v1287_v11 = vsub.s32 1, %v11188_v62  ;;  %v9581_v30 = vcombine.high %v682_v45, %v686_v24 }
 0x2fc   :  { %7788 = vmatmul.mubr.bf16.vlgmr.msra.gmra.mrb[16].mxu0 %v10962_v55  ;;  %8372 = vmatmul.mubr.bf16.vlgmr.msra.gmra.mrb[16].mxu1 %v10962_v55  ;;  %v9556_v55 = vcombine.low %v658_v53, %v662_v14  ;;  %v11211_v58 = vrot.slane %v1279_v33, %v1287_v11  ;;  %v9578_v53 = vcombine.low %v681_v28, %v685_v20  ;;  %v11255_v11 = vld [vmem:[#allocation5 + $0xe50] sm:$0xff] }
 0x2fd   :  { %7829 = vmatpush1.bf16.msra.mxu0 %v9538_v41  ;;  %8413 = vmatpush1.bf16.msra.mxu1 %v9540_v15  ;;  %v11198_v41 = vld [vmem:[#allocation5 + $0xd90] sm:$0xff]  ;;  %v11214_v14 = vrot.slane %v1279_v33, %v1295_v60 }
 0x2fe   :  { %7830 = vmatprep.subr.bf16.mxu0 %v9547_v42  ;;  %8414 = vmatprep.subr.bf16.mxu1 %v9549_v54  ;;  %v11200_v15 = vld [vmem:[#allocation5 + $0xdb0] sm:$0xff]  ;;  %v11204_v42 = vld [vmem:[#allocation5 + $0xd98] sm:$0xff] }
 0x2ff   :  { %7797 = vmatprep.mubr.bf16.mxu0 %v10964_v4  ;;  %8381 = vmatprep.mubr.bf16.mxu1 %v10964_v4  ;;  %v9564_v4 = vcombine.low %v666_v12, %v670_v1  ;;  %v11206_v54 = vld [vmem:[#allocation5 + $0xdb8] sm:$0xff]  ;;  %v9586_v10 = vcombine.low %v11198_v41, %v11200_v15 }
 0x300   :  { %v9589_v25 = vcombine.high %v11204_v42, %v11206_v54  ;;  %v9588_v50 = vcombine.low %v11204_v42, %v11206_v54  ;;  %v11266_v42 = vld [vmem:[#allocation5 + $0xe78] sm:$0xff] }
 0x301   :  { %7831 = vmatpush1.bf16.msra.mxu0 %v9546_v61  ;;  %8415 = vmatpush1.bf16.msra.mxu1 %v9548_v52  ;;  %v9580_v61 = vcombine.low %v682_v45, %v686_v24  ;;  %v9587_v52 = vcombine.high %v11198_v41, %v11200_v15  ;;  %v11262_v41 = vld [vmem:[#allocation5 + $0xe70] sm:$0xff]  ;;  %v11264_v15 = vld [vmem:[#allocation5 + $0xe58] sm:$0xff] }
 0x302   :  { %7832 = vmatprep.subr.bf16.mxu0 %v9555_v40  ;;  %8416 = vmatprep.subr.bf16.mxu1 %v9557_v26  ;;  %v11218_v40 = vld [vmem:[#allocation5 + $0xdd0] sm:$0xff] }
 0x303   :  { %v11220_v26 = vld [vmem:[#allocation5 + $0xdf0] sm:$0xff] }
 0x304   :  { %7798 = vmatmul.mubr.bf16.gmra.mrb[20].mxu0 %v10970_v23  ;;  %8382 = vmatmul.mubr.bf16.gmra.mrb[20].mxu1 %v10970_v23  ;;  %v1291_v23 = vsub.s32 2, %v11188_v62  ;;  %v9595_v34 = vcombine.high %v11218_v40, %v11220_v26  ;;  %v9594_v20 = vcombine.low %v11218_v40, %v11220_v26  ;;  %v11273_v40 = vld [vmem:[#allocation5 + $0xeb0] sm:$0xff] }
 0x305   :  { %7833 = vmatpush1.bf16.msra.mxu0 %v9554_v6  ;;  %8417 = vmatpush1.bf16.msra.mxu1 %v9556_v55  ;;  %v11228_v6 = vld [vmem:[#allocation5 + $0xdd8] sm:$0xff] }
 0x306   :  { %7834 = vmatprep.subr.bf16.mxu0 %v9563_v5  ;;  %8418 = vmatprep.subr.bf16.mxu1 %v9565_v29  ;;  %v11209_v57 = vrot.slane %v1279_v33, %v1291_v23  ;;  %v11230_v55 = vld [vmem:[#allocation5 + $0xdf8] sm:$0xff] }
 0x307   :  { %7807 = vmatprep.mubr.bf16.mxu0 %v10972_v35  ;;  %8391 = vmatprep.mubr.bf16.mxu1 %v10972_v35  ;;  %v11202_v35 = vrot.slane %v1279_v33, %v1283_v0  ;;  %v11251_v33 = vld [vmem:[#allocation5 + $0xe18] sm:$0xff] }
 0x308   :  { %v11253_v23 = vld [vmem:[#allocation5 + $0xe38] sm:$0xff] }
 0x309   :  { %7835 = vmatpush1.bf16.msra.mxu0 %v9562_v16  ;;  %8419 = vmatpush1.bf16.msra.mxu1 %v9564_v4  ;;  %v11239_v16 = vld [vmem:[#allocation5 + $0xe10] sm:$0xff] }
 0x30a   :  { %7836 = vmatprep.subr.bf16.mxu0 %v9571_v38  ;;  %8420 = vmatprep.subr.bf16.mxu1 %v9573_v17  ;;  %v11241_v4 = vld [vmem:[#allocation5 + $0xe30] sm:$0xff] }
 0x30c   :  { %7808 = vmatmul.mubr.bf16.gmra.mrb[24].mxu0 %v10978_v51  ;;  %8392 = vmatmul.mubr.bf16.gmra.mrb[24].mxu1 %v10978_v51 }
 0x30d   :  { %7837 = vmatpush1.bf16.msra.mxu0 %v9570_v27  ;;  %8421 = vmatpush1.bf16.msra.mxu1 %v9572_v47  ;;  %v9597_v27 = vcombine.high %v11228_v6, %v11230_v55 }
 0x30e   :  { %7838 = vmatprep.subr.bf16.mxu0 %v9579_v13  ;;  %8422 = vmatprep.subr.bf16.mxu1 %v9581_v30  ;;  %v9596_v13 = vcombine.low %v11228_v6, %v11230_v55  ;;  %v9603_v30 = vcombine.high %v11239_v16, %v11241_v4  ;;  %v9611_v55 = vcombine.high %v11255_v11, %v11262_v41 }
 0x30f   :  { %v6986_v56 = vpop.f32.mrb[0].mxu0  ;;  %7817 = vmatprep.mubr.bf16.mxu0 %v10980_v2  ;;  %v7570_v12 = vpop.f32.mrb[0].mxu1  ;;  %8401 = vmatprep.mubr.bf16.mxu1 %v10980_v2 }
 0x310   :  { %v10174_v51 = vadd.f32 %v6986_v56, %v11202_v35  ;;  %v6988_v1 = vpop.f32.mrb[1].mxu0  ;;  %v10190_v5 = vadd.f32 %v7570_v12, %v11209_v57  ;;  %v7572_v8 = vpop.f32.mrb[1].mxu1  ;;  %v10826_v56 = vmov 1966171168   ;;  %v9605_v12 = vcombine.high %v11251_v33, %v11253_v23 }
 0x311   :  { %v10175_v29 = vadd.f32 %v6988_v1, %v11211_v58  ;;  %v6990_v31 = vpop.f32.mrb[2].mxu0  ;;  %7839 = vmatpush1.bf16.msra.mxu0 %v9578_v53  ;;  %v10191_v2 = vadd.f32 %v7572_v8, %v11214_v14  ;;  %v7574_v17 = vpop.f32.mrb[2].mxu1  ;;  %8423 = vmatpush1.bf16.msra.mxu1 %v9580_v61  ;;  %v9602_v61 = vcombine.low %v11239_v16, %v11241_v4  ;;  %v11282_v1 = vld [vmem:[#allocation5 + $0xe98] sm:$0xff] }
 0x312   :  { %8777 = vst [vmem:[#allocation8] sm:$0xff] %v10174_v51  ;;  %v10176_v38 = vadd.f32 %v6990_v31, %v11202_v35  ;;  %v6992_v28 = vpop.f32.mrb[3].mxu0  ;;  %7840 = vmatprep.subr.bf16.mxu0 %v9587_v52  ;;  %8779 = vst [vmem:[#allocation8 + $0x10] sm:$0xff] %v10190_v5  ;;  %v10192_v0 = vadd.f32 %v7574_v17, %v11209_v57  ;;  %v7576_v24 = vpop.f32.mrb[3].mxu1  ;;  %8424 = vmatprep.subr.bf16.mxu1 %v9589_v25  ;;  %v11271_v52 = vld [vmem:[#allocation5 + $0xe90] sm:$0xff]  ;;  %v11276_v25 = vunpack.c.l.s4 %v10826_v56 }
 0x313   :  { %8778 = vst [vmem:[#allocation8 + $0x8] sm:$0xff] %v10175_v29  ;;  %v10177_v45 = vadd.f32 %v6992_v28, %v11211_v58  ;;  %8780 = vst [vmem:[#allocation8 + $0x18] sm:$0xff] %v10191_v2  ;;  %v10193_v60 = vadd.f32 %v7576_v24, %v11214_v14 }
 0x314   :  { %8785 = vst [vmem:[#allocation8 + $0x40] sm:$0xff] %v10176_v38  ;;  %v8843_v47 = vadd.f32 %v10176_v38, %v10174_v51  ;;  %7818 = vmatmul.mubr.bf16.gmra.mrb[28].mxu0 %v10986_v22  ;;  %8787 = vst [vmem:[#allocation8 + $0x50] sm:$0xff] %v10192_v0  ;;  %v8861_v54 = vadd.f32 %v10192_v0, %v10190_v5  ;;  %8402 = vmatmul.mubr.bf16.gmra.mrb[28].mxu1 %v10986_v22  ;;  %v11323_v5 = vld [vmem:[#allocation5 + $0xf10] sm:$0xff] }
 0x315   :  { %8786 = vst [vmem:[#allocation8 + $0x48] sm:$0xff] %v10177_v45  ;;  %v8852_v53 = vadd.f32 %v10177_v45, %v10175_v29  ;;  %7841 = vmatpush1.bf16.msra.mxu0 %v9586_v10  ;;  %8788 = vst [vmem:[#allocation8 + $0x58] sm:$0xff] %v10193_v60  ;;  %v8870_v26 = vadd.f32 %v10193_v60, %v10191_v2  ;;  %8425 = vmatpush1.bf16.msra.mxu1 %v9588_v50  ;;  %v11284_v10 = vld [vmem:[#allocation5 + $0xeb8] sm:$0xff]  ;;  %v11309_v60 = vld [vmem:[#allocation5 + $0xef0] sm:$0xff] }
 0x316   :  { %7842 = vmatprep.subr.bf16.mxu0 %v9595_v34  ;;  %v9604_v51 = vcombine.low %v11251_v33, %v11253_v23  ;;  %8426 = vmatprep.subr.bf16.mxu1 %v9597_v27  ;;  %v9610_v22 = vcombine.low %v11255_v11, %v11262_v41  ;;  %v9613_v50 = vcombine.high %v11264_v15, %v11266_v42  ;;  %v11307_v27 = vld [vmem:[#allocation5 + $0xed0] sm:$0xff]  ;;  %v11314_v45 = vld [vmem:[#allocation5 + $0xed8] sm:$0xff] }
 0x317   :  { %v6996_v6 = vpop.f32.mrb[4].mxu0  ;;  %7860 = vmatprep.mubr.bf16.mxu0 %v10988_v36  ;;  %v7580_v8 = vpop.f32.mrb[4].mxu1  ;;  %8444 = vmatprep.mubr.bf16.mxu1 %v10988_v36  ;;  %v11316_v34 = vld [vmem:[#allocation5 + $0xef8] sm:$0xff] }
 0x318   :  { %v10178_v29 = vadd.f32 %v6996_v6, %v11202_v35  ;;  %v6998_v31 = vpop.f32.mrb[5].mxu0  ;;  %v10194_v38 = vadd.f32 %v7580_v8, %v11209_v57  ;;  %v7582_v28 = vpop.f32.mrb[5].mxu1  ;;  %v9629_v16 = vcombine.high %v11314_v45, %v11316_v34 }
 0x319   :  { %v10179_v17 = vadd.f32 %v6998_v31, %v11211_v58  ;;  %v7000_v0 = vpop.f32.mrb[6].mxu0  ;;  %7843 = vmatpush1.bf16.msra.mxu0 %v9594_v20  ;;  %v10195_v36 = vadd.f32 %v7582_v28, %v11214_v14  ;;  %v7584_v8 = vpop.f32.mrb[6].mxu1  ;;  %8427 = vmatpush1.bf16.msra.mxu1 %v9596_v13  ;;  %v9009_v20 = vunpack.c.0.s8 %v11276_v25  ;;  %v9627_v25 = vcombine.high %v11307_v27, %v11309_v60 }
 0x31a   :  { %8793 = vst [vmem:[#allocation8 + $0x80] sm:$0xff] %v10178_v29  ;;  %v8844_v56 = vadd.f32 %v10178_v29, %v8843_v47  ;;  %v10180_v6 = vadd.f32 %v7000_v0, %v11202_v35  ;;  %v7002_v31 = vpop.f32.mrb[7].mxu0  ;;  %7844 = vmatprep.subr.bf16.mxu0 %v9603_v30  ;;  %8795 = vst [vmem:[#allocation8 + $0x90] sm:$0xff] %v10194_v38  ;;  %v8862_v24 = vadd.f32 %v10194_v38, %v8861_v54  ;;  %v7586_v28 = vpop.f32.mrb[7].mxu1  ;;  %v11325_v54 = vld [vmem:[#allocation5 + $0xf30] sm:$0xff] }
 0x31b   :  { %8794 = vst [vmem:[#allocation8 + $0x88] sm:$0xff] %v10179_v17  ;;  %v8853_v2 = vadd.f32 %v10179_v17, %v8852_v53  ;;  %v10196_v47 = vadd.f32 %v7584_v8, %v11209_v57  ;;  %v10181_v29 = vadd.f32 %v7002_v31, %v11211_v58  ;;  %8428 = vmatprep.subr.bf16.mxu1 %v9605_v12  ;;  %8796 = vst [vmem:[#allocation8 + $0x98] sm:$0xff] %v10195_v36  ;;  %v11334_v17 = vld [vmem:[#allocation5 + $0xf18] sm:$0xff] }
 0x31c   :  { %v8871_v13 = vadd.f32 %v10195_v36, %v8870_v26  ;;  %8801 = vst [vmem:[#allocation8 + $0xc0] sm:$0xff] %v10180_v6  ;;  %v8845_v0 = vadd.f32 %v10180_v6, %v8844_v56  ;;  %v10197_v30 = vadd.f32 %v7586_v28, %v11214_v14  ;;  %v9626_v26 = vcombine.low %v11307_v27, %v11309_v60  ;;  %v11336_v56 = vld [vmem:[#allocation5 + $0xf38] sm:$0xff] }
 0x31d   :  { %8803 = vst [vmem:[#allocation8 + $0xd0] sm:$0xff] %v10196_v47  ;;  %v8863_v53 = vadd.f32 %v10196_v47, %v8862_v24  ;;  %8802 = vst [vmem:[#allocation8 + $0xc8] sm:$0xff] %v10181_v29  ;;  %v8854_v38 = vadd.f32 %v10181_v29, %v8853_v2  ;;  %7845 = vmatpush1.bf16.msra.mxu0 %v9602_v61  ;;  %v9628_v12 = vcombine.low %v11314_v45, %v11316_v34 }
 0x31e   :  { %v8846_v36 = vrot.slane %v8845_v0, 4  ;;  %v11339_v6 = vsub.s32 %v9009_v20, %v11188_v62  ;;  %8804 = vst [vmem:[#allocation8 + $0xd8] sm:$0xff] %v10197_v30  ;;  %v8872_v2 = vadd.f32 %v10197_v30, %v8871_v13  ;;  %8429 = vmatpush1.bf16.msra.mxu1 %v9604_v51  ;;  %7846 = vmatprep.subr.bf16.mxu0 %v9611_v55 }
 0x31f   :  { %v8864_v4 = vrot.slane %v8863_v53, 4  ;;  %v8855_v61 = vrot.slane %v8854_v38, 4  ;;  %v7006_v24 = vpop.f32.mrb[8].mxu0  ;;  %8430 = vmatprep.subr.bf16.mxu1 %v9613_v50  ;;  %v7590_v33 = vpop.f32.mrb[8].mxu1 }
 0x320   :  { %v8847_v20 = vadd.f32 %v8846_v36, %v8845_v0  ;;  %v8873_v47 = vrot.slane %v8872_v2, 4  ;;  %v10182_v29 = vadd.f32 %v7006_v24, %v11202_v35  ;;  %v7008_v23 = vpop.f32.mrb[9].mxu0  ;;  %v10198_v13 = vadd.f32 %v7590_v33, %v11209_v57  ;;  %v7592_v30 = vpop.f32.mrb[9].mxu1 }
 0x321   :  { %v8865_v55 = vadd.f32 %v8864_v4, %v8863_v53  ;;  %v8856_v28 = vadd.f32 %v8855_v61, %v8854_v38  ;;  %v10183_v50 = vadd.f32 %v7008_v23, %v11211_v58  ;;  %v7010_v8 = vpop.f32.mrb[10].mxu0  ;;  %7847 = vmatpush1.bf16.msra.mxu0 %v9610_v22  ;;  %v10199_v24 = vadd.f32 %v7592_v30, %v11214_v14  ;;  %v7594_v51 = vpop.f32.mrb[10].mxu1  ;;  %v11372_v23 = vld [vmem:[#allocation5 + $0xf50] sm:$0xff] }
 0x322   :  { %v8848_v0 = vrot.slane %v8847_v20, 2  ;;  %v8874_v36 = vadd.f32 %v8873_v47, %v8872_v2  ;;  %8809 = vst [vmem:[#allocation8 + $0x100] sm:$0xff] %v10182_v29  ;;  %v10184_v31 = vadd.f32 %v7010_v8, %v11202_v35  ;;  %v11680_v53 = vcombine.low %v11264_v15, %v11266_v42  ;;  %v7012_v38 = vpop.f32.mrb[11].mxu0  ;;  %8811 = vst [vmem:[#allocation8 + $0x110] sm:$0xff] %v10198_v13  ;;  %v7596_v2 = vpop.f32.mrb[11].mxu1  ;;  %v11374_v30 = vld [vmem:[#allocation5 + $0xf70] sm:$0xff] }
 0x323   :  { %v11681_v4 = vcombine.high %v11271_v52, %v11273_v40  ;;  %v8866_v61 = vrot.slane %v8865_v55, 2  ;;  %v8857_v11 = vrot.slane %v8856_v28, 2  ;;  %8810 = vst [vmem:[#allocation8 + $0x108] sm:$0xff] %v10183_v50  ;;  %v10200_v41 = vadd.f32 %v7594_v51, %v11209_v57  ;;  %8812 = vst [vmem:[#allocation8 + $0x118] sm:$0xff] %v10199_v24 }
 0x324   :  { %8431 = vmatpush1.bf16.msra.mxu1 %v11680_v53  ;;  %v10185_v22 = vadd.f32 %v7012_v38, %v11211_v58  ;;  %v11682_v8 = vcombine.high %v11282_v1, %v11284_v10  ;;  %v8849_v15 = vadd.f32 %v8848_v0, %v8847_v20  ;;  %v8875_v42 = vrot.slane %v8874_v36, 2  ;;  %8817 = vst [vmem:[#allocation8 + $0x140] sm:$0xff] %v10184_v31  ;;  %v11379_v20 = vld [vmem:[#allocation5 + $0xf58] sm:$0xff] }
 0x325   :  { %7848 = vmatprep.subr.bf16.mxu0 %v11681_v4  ;;  %v8915_v47 = vadd.f32 %v10184_v31, %v10182_v29  ;;  %v10201_v33 = vadd.f32 %v7596_v2, %v11214_v14  ;;  %v8867_v53 = vadd.f32 %v8866_v61, %v8865_v55  ;;  %v8858_v51 = vadd.f32 %v8857_v11, %v8856_v28  ;;  %v11381_v0 = vld [vmem:[#allocation5 + $0xf78] sm:$0xff] }
 0x326   :  { %8432 = vmatprep.subr.bf16.mxu1 %v11682_v8  ;;  %8819 = vst [vmem:[#allocation8 + $0x150] sm:$0xff] %v10200_v41  ;;  %v8933_v38 = vadd.f32 %v10200_v41, %v10198_v13  ;;  %8818 = vst [vmem:[#allocation8 + $0x148] sm:$0xff] %v10185_v22  ;;  %v8924_v4 = vadd.f32 %v10185_v22, %v10183_v50  ;;  %v11683_v8 = vcombine.low %v11271_v52, %v11273_v40 }
 0x327   :  { %v8850_v31 = vrot.slane %v8849_v15, 1  ;;  %v8876_v29 = vadd.f32 %v8875_v42, %v8874_v36  ;;  %8820 = vst [vmem:[#allocation8 + $0x158] sm:$0xff] %v10201_v33  ;;  %v8942_v2 = vadd.f32 %v10201_v33, %v10199_v24  ;;  %v11684_v55 = vcombine.low %v11282_v1, %v11284_v10  ;;  %v7016_v13 = vpop.f32.mrb[12].mxu0  ;;  %v7600_v24 = vpop.f32.mrb[12].mxu1 }
 0x328   :  { %7849 = vmatpush1.bf16.msra.mxu0 %v11683_v8  ;;  %v9637_v52 = vcombine.high %v11334_v17, %v11336_v56  ;;  %v8868_v40 = vrot.slane %v8867_v53, 1  ;;  %v8859_v28 = vrot.slane %v8858_v51, 1  ;;  %v9643_v1 = vcombine.high %v11372_v23, %v11374_v30  ;;  %v7018_v61 = vpop.f32.mrb[13].mxu0  ;;  %v7602_v33 = vpop.f32.mrb[13].mxu1 }
 0x329   :  { %8433 = vmatpush1.bf16.msra.mxu1 %v11684_v55  ;;  %7850 = vmatprep.subr.bf16.mxu0 %v9627_v25  ;;  %v8851_v10 = vadd.f32 %v8850_v31, %v8849_v15  ;;  %v8877_v36 = vrot.slane %v8876_v29, 1  ;;  %v10186_v25 = vadd.f32 %v7016_v13, %v11202_v35  ;;  %v9645_v11 = vcombine.high %v11379_v20, %v11381_v0  ;;  %v7020_v8 = vpop.f32.mrb[14].mxu0  ;;  %v7604_v50 = vpop.f32.mrb[14].mxu1 }
 0x32a   :  { %8434 = vmatprep.subr.bf16.mxu1 %v9629_v16  ;;  %v8869_v41 = vadd.f32 %v8868_v40, %v8867_v53  ;;  %v8860_v22 = vadd.f32 %v8859_v28, %v8858_v51  ;;  %v10202_v42 = vadd.f32 %v7600_v24, %v11209_v57  ;;  %v10187_v16 = vadd.f32 %v7018_v61, %v11211_v58  ;;  %v7022_v53 = vpop.f32.mrb[15].mxu0  ;;  %v7606_v60 = vpop.f32.mrb[15].mxu1 }
 0x32b   :  { %v8878_v15 = vadd.f32 %v8877_v36, %v8876_v29  ;;  %8825 = vst [vmem:[#allocation8 + $0x180] sm:$0xff] %v10186_v25  ;;  %v8916_v31 = vadd.f32 %v10186_v25, %v8915_v47  ;;  %v10203_v55 = vadd.f32 %v7602_v33, %v11214_v14  ;;  %v10188_v13 = vadd.f32 %v7020_v8, %v11202_v35  ;;  %v753_v47 = vld [vmem:[#allocation5 + $0xf90] sm:$0xff]  ;;  %v766_v33 = vld [vmem:[#allocation5 + $0xff8] sm:$0xff] }
 0x32c   :  { %7851 = vmatpush1.bf16.msra.mxu0 %v9626_v26  ;;  %v9003_v51 = vcombine.low %v8851_v10, %v8860_v22  ;;  %8827 = vst [vmem:[#allocation8 + $0x190] sm:$0xff] %v10202_v42  ;;  %v8934_v40 = vadd.f32 %v10202_v42, %v8933_v38  ;;  %8826 = vst [vmem:[#allocation8 + $0x188] sm:$0xff] %v10187_v16  ;;  %v8925_v28 = vadd.f32 %v10187_v16, %v8924_v4  ;;  %v757_v35 = vld [vmem:[#allocation5 + $0xfb0] sm:$0xff]  ;;  %v758_v38 = vld [vmem:[#allocation5 + $0xfb8] sm:$0xff] }
 0x32d   :  { %8435 = vmatpush1.bf16.msra.mxu1 %v9628_v12  ;;  %v10204_v27 = vadd.f32 %v7604_v50, %v11209_v57  ;;  %v11685_v26 = vcombine.high %v11323_v5, %v11325_v54  ;;  %v9004_v29 = vcombine.low %v8869_v41, %v8878_v15  ;;  %8828 = vst [vmem:[#allocation8 + $0x198] sm:$0xff] %v10203_v55  ;;  %8833 = vst [vmem:[#allocation8 + $0x1c0] sm:$0xff] %v10188_v13  ;;  %v754_v12 = vld [vmem:[#allocation5 + $0xf98] sm:$0xff]  ;;  %v765_v22 = vld [vmem:[#allocation5 + $0xff0] sm:$0xff] }
 0x32e   :  { %v8943_v36 = vadd.f32 %v10203_v55, %v8942_v2  ;;  %v8917_v34 = vadd.f32 %v10188_v13, %v8916_v31  ;;  %v10189_v45 = vadd.f32 %v7022_v53, %v11211_v58  ;;  %8436 = vmatprep.subr.bf16.mxu1 %v9637_v52  ;;  %v11417_v4 = vrot.slane %v9003_v51, %v11339_v6  ;;  %v762_v16 = vld [vmem:[#allocation5 + $0xfd8] sm:$0xff] }
 0x32f   :  { %7852 = vmatprep.subr.bf16.mxu0 %v11685_v26  ;;  %8835 = vst [vmem:[#allocation8 + $0x1d0] sm:$0xff] %v10204_v27  ;;  %v8935_v57 = vadd.f32 %v10204_v27, %v8934_v40  ;;  %v10205_v50 = vadd.f32 %v7606_v60, %v11214_v14  ;;  %v11686_v10 = vcombine.low %v11323_v5, %v11325_v54  ;;  %v761_v54 = vld [vmem:[#allocation5 + $0xfd0] sm:$0xff]  ;;  %v770_v26 = vld [vmem:[#allocation5 + $0x1018] sm:$0xff] }
 0x330   :  { %v9644_v2 = vcombine.low %v11379_v20, %v11381_v0  ;;  %v11426_v25 = vrot.slane %v9004_v29, %v11339_v6  ;;  %v8918_v58 = vrot.slane %v8917_v34, 4  ;;  %8834 = vst [vmem:[#allocation8 + $0x1c8] sm:$0xff] %v10189_v45  ;;  %v8926_v52 = vadd.f32 %v10189_v45, %v8925_v28  ;;  %v769_v40 = vld [vmem:[#allocation5 + $0x1010] sm:$0xff]  ;;  %v774_v29 = vld [vmem:[#allocation5 + $0x1038] sm:$0xff] }
 0x331   :  { %7853 = vmatpush1.bf16.msra.mxu0 %v11686_v10  ;;  %v11687_v24 = vcombine.low %v11334_v17, %v11336_v56  ;;  %v9651_v61 = vcombine.high %v753_v47, %v757_v35  ;;  %v8936_v14 = vrot.slane %v8935_v57, 4  ;;  %8836 = vst [vmem:[#allocation8 + $0x1d8] sm:$0xff] %v10205_v50  ;;  %v8944_v41 = vadd.f32 %v10205_v50, %v8943_v36  ;;  %v773_v28 = vld [vmem:[#allocation5 + $0x1030] sm:$0xff] }
 0x332   :  { %7854 = vmatprep.subr.bf16.mxu0 %v9643_v1  ;;  %v9653_v5 = vcombine.high %v754_v12, %v758_v38  ;;  %v9035_v20 = vcombine.low %v11417_v4, %v11426_v25  ;;  %v8919_v0 = vadd.f32 %v8918_v58, %v8917_v34  ;;  %v8927_v42 = vrot.slane %v8926_v52, 4  ;;  %v777_v50 = vld [vmem:[#allocation5 + $0x1050] sm:$0xff] }
 0x333   :  { %8437 = vmatpush1.bf16.msra.mxu1 %v11687_v24  ;;  %v8937_v8 = vadd.f32 %v8936_v14, %v8935_v57  ;;  %v8945_v15 = vrot.slane %v8944_v41, 4  ;;  %v11688_v17 = vcombine.low %v11372_v23, %v11374_v30  ;;  %v9650_v56 = vcombine.low %v753_v47, %v757_v35  ;;  %v781_v10 = vld [vmem:[#allocation5 + $0x1070] sm:$0xff]  ;;  %v782_v24 = vld [vmem:[#allocation5 + $0x1078] sm:$0xff] }
 0x334   :  { %8438 = vmatprep.subr.bf16.mxu1 %v9645_v11  ;;  %v8920_v1 = vrot.slane %v8919_v0, 2  ;;  %v8928_v31 = vadd.f32 %v8927_v42, %v8926_v52  ;;  %v9652_v11 = vcombine.low %v754_v12, %v758_v38  ;;  %v9659_v55 = vcombine.high %v761_v54, %v765_v22  ;;  %v778_v52 = vld [vmem:[#allocation5 + $0x1058] sm:$0xff] }
 0x335   :  { %7855 = vmatpush1.bf16.msra.mxu0 %v11688_v17  ;;  %v8938_v13 = vrot.slane %v8937_v8, 2  ;;  %v8946_v53 = vadd.f32 %v8945_v15, %v8944_v41  ;;  %v9661_v51 = vcombine.high %v762_v16, %v766_v33  ;;  %v9658_v30 = vcombine.low %v761_v54, %v765_v22  ;;  %v786_v15 = vld [vmem:[#allocation5 + $0x1098] sm:$0xff] }
 0x336   :  { %7856 = vmatprep.subr.bf16.mxu0 %v9651_v61  ;;  %v8921_v27 = vadd.f32 %v8920_v1, %v8919_v0  ;;  %v8929_v60 = vrot.slane %v8928_v31, 2  ;;  %v9660_v34 = vcombine.low %v762_v16, %v766_v33  ;;  %v9667_v45 = vcombine.high %v769_v40, %v773_v28  ;;  %v785_v16 = vld [vmem:[#allocation5 + $0x1090] sm:$0xff]  ;;  %v790_v17 = vld [vmem:[#allocation5 + $0x10b8] sm:$0xff] }
 0x337   :  { %8439 = vmatpush1.bf16.msra.mxu1 %v9644_v2  ;;  %v8939_v36 = vadd.f32 %v8938_v13, %v8937_v8  ;;  %v8947_v23 = vrot.slane %v8946_v53, 2  ;;  %v9669_v57 = vcombine.high %v770_v26, %v774_v29  ;;  %v9666_v41 = vcombine.low %v769_v40, %v773_v28  ;;  %v789_v33 = vld [vmem:[#allocation5 + $0x10b0] sm:$0xff]  ;;  %v794_v28 = vld [vmem:[#allocation5 + $0x10d8] sm:$0xff] }
 0x338   :  { %8440 = vmatprep.subr.bf16.mxu1 %v9653_v5  ;;  %v8922_v47 = vrot.slane %v8921_v27, 1  ;;  %v8930_v35 = vadd.f32 %v8929_v60, %v8928_v31  ;;  %v9668_v54 = vcombine.low %v770_v26, %v774_v29  ;;  %v9675_v22 = vcombine.high %v777_v50, %v781_v10  ;;  %v797_v40 = vld [vmem:[#allocation5 + $0x10f0] sm:$0xff] }
 0x339   :  { %7857 = vmatpush1.bf16.msra.mxu0 %v9650_v56  ;;  %v8940_v12 = vrot.slane %v8939_v36, 1  ;;  %v8948_v38 = vadd.f32 %v8947_v23, %v8946_v53  ;;  %v9677_v42 = vcombine.high %v778_v52, %v782_v24  ;;  %v9674_v1 = vcombine.low %v777_v50, %v781_v10  ;;  %v801_v23 = vld [vmem:[#allocation5 + $0x1110] sm:$0xff]  ;;  %v810_v50 = vld [vmem:[#allocation5 + $0x1158] sm:$0xff] }
 0x33a   :  { %7858 = vmatprep.subr.bf16.mxu0 %v9659_v55  ;;  %v8923_v2 = vadd.f32 %v8922_v47, %v8921_v27  ;;  %v8931_v58 = vrot.slane %v8930_v35, 1  ;;  %v9683_v55 = vcombine.high %v785_v16, %v789_v33  ;;  %v9685_v53 = vcombine.high %v786_v15, %v790_v17  ;;  %v798_v27 = vld [vmem:[#allocation5 + $0x10f8] sm:$0xff] }
 0x33b   :  { %8441 = vmatpush1.bf16.msra.mxu1 %v9652_v11  ;;  %v8941_v61 = vadd.f32 %v8940_v12, %v8939_v36  ;;  %v8949_v14 = vrot.slane %v8948_v38, 1  ;;  %v9676_v11 = vcombine.low %v778_v52, %v782_v24  ;;  %v9682_v60 = vcombine.low %v785_v16, %v789_v33  ;;  %v802_v47 = vld [vmem:[#allocation5 + $0x1118] sm:$0xff]  ;;  %v817_v24 = vld [vmem:[#allocation5 + $0x1190] sm:$0xff] }
 0x33c   :  { %8442 = vmatprep.subr.bf16.mxu1 %v9661_v51  ;;  %v8932_v5 = vadd.f32 %v8931_v58, %v8930_v35  ;;  %v793_v51 = vld [vmem:[#allocation5 + $0x10d0] sm:$0xff]  ;;  %v9684_v26 = vcombine.low %v786_v15, %v790_v17  ;;  %v9693_v36 = vcombine.high %v794_v28, %v798_v27  ;;  %v806_v35 = vld [vmem:[#allocation5 + $0x1138] sm:$0xff] }
 0x33d   :  { %7859 = vmatpush1.bf16.msra.mxu0 %v9658_v30  ;;  %v8950_v0 = vadd.f32 %v8949_v14, %v8948_v38  ;;  %v9691_v29 = vcombine.high %v793_v51, %v797_v40  ;;  %v805_v30 = vld [vmem:[#allocation5 + $0x1130] sm:$0xff]  ;;  %v9701_v12 = vcombine.high %v802_v47, %v806_v35  ;;  %v814_v10 = vld [vmem:[#allocation5 + $0x1178] sm:$0xff]  ;;  %v9700_v58 = vcombine.low %v802_v47, %v806_v35 }
 0x33e   :  { %7901 = vmatprep.subr.bf16.mxu0 %v9667_v45  ;;  %v9052_v8 = vcombine.low %v8923_v2, %v8932_v5  ;;  %v9699_v45 = vcombine.high %v801_v23, %v805_v30  ;;  %v809_v38 = vld [vmem:[#allocation5 + $0x1150] sm:$0xff]  ;;  %v9698_v2 = vcombine.low %v801_v23, %v805_v30  ;;  %v9709_v52 = vcombine.high %v810_v50, %v814_v10  ;;  %v818_v14 = vld [vmem:[#allocation5 + $0x1198] sm:$0xff] }
 0x33f   :  { %8443 = vmatpush1.bf16.msra.mxu1 %v9660_v34  ;;  %v9053_v56 = vcombine.low %v8941_v61, %v8950_v0  ;;  %v9690_v34 = vcombine.low %v793_v51, %v797_v40  ;;  %v821_v61 = vld [vmem:[#allocation5 + $0x11b0] sm:$0xff]  ;;  %v826_v16 = vld [vmem:[#allocation5 + $0x11d8] sm:$0xff] }
 0x340   :  { %8485 = vmatprep.subr.bf16.mxu1 %v9669_v57  ;;  %7861 = vmatmul.mubr.bf16.vlgmr.msra.gmra.mrb[16].mxu0 %v10994_v32  ;;  %v11439_v31 = vrot.slane %v9052_v8, %v11339_v6  ;;  %v813_v57 = vld [vmem:[#allocation5 + $0x1170] sm:$0xff]  ;;  %v830_v33 = vld [vmem:[#allocation5 + $0x11f8] sm:$0xff]  ;;  %v9714_v8 = vcombine.low %v817_v24, %v821_v61 }
 0x341   :  { %7902 = vmatpush1.bf16.msra.mxu0 %v9666_v41  ;;  %v11442_v13 = vrot.slane %v9053_v56, %v11339_v6  ;;  %7870 = vmatprep.mubr.bf16.mxu0 %v10996_v46  ;;  %v822_v41 = vld [vmem:[#allocation5 + $0x11b8] sm:$0xff]  ;;  %v9706_v5 = vcombine.low %v809_v38, %v813_v57  ;;  %v825_v0 = vld [vmem:[#allocation5 + $0x11d0] sm:$0xff]  ;;  %v9725_v17 = vcombine.high %v826_v16, %v830_v33 }
 0x342   :  { %8445 = vmatmul.mubr.bf16.vlgmr.msra.gmra.mrb[16].mxu1 %v10994_v32  ;;  %7903 = vmatprep.subr.bf16.mxu0 %v9675_v22  ;;  %v9717_v22 = vcombine.high %v818_v14, %v822_v41  ;;  %v9716_v15 = vcombine.low %v818_v14, %v822_v41  ;;  %v833_v56 = vld [vmem:[#allocation5 + $0x1210] sm:$0xff]  ;;  %v850_v35 = vld [vmem:[#allocation5 + $0x1298] sm:$0xff] }
 0x343   :  { %8486 = vmatpush1.bf16.msra.mxu1 %v9668_v54  ;;  %8454 = vmatprep.mubr.bf16.mxu1 %v10996_v46  ;;  %v9084_v32 = vcombine.low %v11439_v31, %v11442_v13  ;;  %v9692_v46 = vcombine.low %v794_v28, %v798_v27  ;;  %v9715_v54 = vcombine.high %v817_v24, %v821_v61  ;;  %v841_v28 = vld [vmem:[#allocation5 + $0x1250] sm:$0xff]  ;;  %v866_v14 = vld [vmem:[#allocation5 + $0x1318] sm:$0xff] }
 0x344   :  { %8487 = vmatprep.subr.bf16.mxu1 %v9677_v42  ;;  %v829_v42 = vld [vmem:[#allocation5 + $0x11f0] sm:$0xff]  ;;  %v870_v41 = vld [vmem:[#allocation5 + $0x1338] sm:$0xff] }
 0x345   :  { %7904 = vmatpush1.bf16.msra.mxu0 %v9674_v1  ;;  %v837_v1 = vld [vmem:[#allocation5 + $0x1230] sm:$0xff] }
 0x346   :  { %7905 = vmatprep.subr.bf16.mxu0 %v9683_v55  ;;  %v838_v55 = vld [vmem:[#allocation5 + $0x1238] sm:$0xff]  ;;  %v9731_v51 = vcombine.high %v833_v56, %v837_v1  ;;  %v845_v27 = vld [vmem:[#allocation5 + $0x1270] sm:$0xff] }
 0x347   :  { %8488 = vmatpush1.bf16.msra.mxu1 %v9676_v11  ;;  %v834_v11 = vld [vmem:[#allocation5 + $0x1218] sm:$0xff]  ;;  %v849_v30 = vld [vmem:[#allocation5 + $0x1290] sm:$0xff] }
 0x348   :  { %8489 = vmatprep.subr.bf16.mxu1 %v9685_v53  ;;  %7871 = vmatmul.mubr.bf16.gmra.mrb[20].mxu0 %v11002_v7  ;;  %v9722_v53 = vcombine.low %v825_v0, %v829_v42  ;;  %v9733_v40 = vcombine.high %v834_v11, %v838_v55  ;;  %v853_v47 = vld [vmem:[#allocation5 + $0x12b0] sm:$0xff] }
 0x349   :  { %7906 = vmatpush1.bf16.msra.mxu0 %v9682_v60  ;;  %7880 = vmatprep.mubr.bf16.mxu0 %v11004_v19  ;;  %v842_v60 = vld [vmem:[#allocation5 + $0x1258] sm:$0xff]  ;;  %v865_v24 = vld [vmem:[#allocation5 + $0x1310] sm:$0xff] }
 0x34a   :  { %8455 = vmatmul.mubr.bf16.gmra.mrb[20].mxu1 %v11002_v7  ;;  %7907 = vmatprep.subr.bf16.mxu0 %v9691_v29  ;;  %v9707_v7 = vcombine.high %v809_v38, %v813_v57  ;;  %v9730_v29 = vcombine.low %v833_v56, %v837_v1  ;;  %v857_v38 = vld [vmem:[#allocation5 + $0x12d0] sm:$0xff] }
 0x34b   :  { %8490 = vmatpush1.bf16.msra.mxu1 %v9684_v26  ;;  %8464 = vmatprep.mubr.bf16.mxu1 %v11004_v19  ;;  %v9708_v19 = vcombine.low %v810_v50, %v814_v10  ;;  %v846_v26 = vld [vmem:[#allocation5 + $0x1278] sm:$0xff]  ;;  %v861_v57 = vld [vmem:[#allocation5 + $0x12f0] sm:$0xff] }
 0x34c   :  { %8491 = vmatprep.subr.bf16.mxu1 %v9693_v36  ;;  %v9732_v36 = vcombine.low %v834_v11, %v838_v55  ;;  %v9741_v23 = vcombine.high %v842_v60, %v846_v26  ;;  %v858_v50 = vld [vmem:[#allocation5 + $0x12d8] sm:$0xff]  ;;  %v869_v61 = vld [vmem:[#allocation5 + $0x1330] sm:$0xff] }
 0x34d   :  { %7908 = vmatpush1.bf16.msra.mxu0 %v9690_v34  ;;  %v854_v34 = vld [vmem:[#allocation5 + $0x12b8] sm:$0xff]  ;;  %v881_v56 = vld [vmem:[#allocation5 + $0x1390] sm:$0xff] }
 0x34e   :  { %7909 = vmatprep.subr.bf16.mxu0 %v9699_v45  ;;  %v9740_v45 = vcombine.low %v842_v60, %v846_v26  ;;  %v862_v10 = vld [vmem:[#allocation5 + $0x12f8] sm:$0xff]  ;;  %v885_v1 = vld [vmem:[#allocation5 + $0x13b0] sm:$0xff] }
 0x34f   :  { %8492 = vmatpush1.bf16.msra.mxu1 %v9692_v46  ;;  %v9738_v46 = vcombine.low %v841_v28, %v845_v27  ;;  %v882_v11 = vld [vmem:[#allocation5 + $0x1398] sm:$0xff] }
 0x350   :  { %8493 = vmatprep.subr.bf16.mxu1 %v9701_v12  ;;  %7881 = vmatmul.mubr.bf16.gmra.mrb[24].mxu0 %v11010_v43  ;;  %v9747_v12 = vcombine.high %v849_v30, %v853_v47  ;;  %v886_v55 = vld [vmem:[#allocation5 + $0x13b8] sm:$0xff] }
 0x351   :  { %7910 = vmatpush1.bf16.msra.mxu0 %v9698_v2  ;;  %7890 = vmatprep.mubr.bf16.mxu0 %v11012_v59  ;;  %v9746_v2 = vcombine.low %v849_v30, %v853_v47  ;;  %v890_v60 = vld [vmem:[#allocation5 + $0x13d8] sm:$0xff]  ;;  %v897_v30 = vld [vmem:[#allocation5 + $0x1410] sm:$0xff] }
 0x352   :  { %8465 = vmatmul.mubr.bf16.gmra.mrb[24].mxu1 %v11010_v43  ;;  %7911 = vmatprep.subr.bf16.mxu0 %v9707_v7  ;;  %v9723_v43 = vcombine.high %v825_v0, %v829_v42  ;;  %v9755_v7 = vcombine.high %v857_v38, %v861_v57  ;;  %v873_v0 = vld [vmem:[#allocation5 + $0x1350] sm:$0xff]  ;;  %v894_v26 = vld [vmem:[#allocation5 + $0x13f8] sm:$0xff] }
 0x353   :  { %8494 = vmatpush1.bf16.msra.mxu1 %v9700_v58  ;;  %8474 = vmatprep.mubr.bf16.mxu1 %v11012_v59  ;;  %v9724_v59 = vcombine.low %v826_v16, %v830_v33  ;;  %v9748_v58 = vcombine.low %v850_v35, %v854_v34  ;;  %v877_v42 = vld [vmem:[#allocation5 + $0x1370] sm:$0xff]  ;;  %v874_v16 = vld [vmem:[#allocation5 + $0x1358] sm:$0xff] }
 0x354   :  { %8495 = vmatprep.subr.bf16.mxu1 %v9709_v52  ;;  %v9757_v52 = vcombine.high %v858_v50, %v862_v10  ;;  %v878_v33 = vld [vmem:[#allocation5 + $0x1378] sm:$0xff]  ;;  %v901_v47 = vld [vmem:[#allocation5 + $0x1430] sm:$0xff] }
 0x355   :  { %7912 = vmatpush1.bf16.msra.mxu0 %v9706_v5  ;;  %v9754_v5 = vcombine.low %v857_v38, %v861_v57  ;;  %v905_v38 = vld [vmem:[#allocation5 + $0x1450] sm:$0xff] }
 0x356   :  { %7913 = vmatprep.subr.bf16.mxu0 %v9715_v54  ;;  %v9763_v54 = vcombine.high %v865_v24, %v869_v61  ;;  %v909_v57 = vld [vmem:[#allocation5 + $0x1470] sm:$0xff] }
 0x357   :  { %8496 = vmatpush1.bf16.msra.mxu1 %v9708_v19  ;;  %v9756_v19 = vcombine.low %v858_v50, %v862_v10  ;;  %v906_v50 = vld [vmem:[#allocation5 + $0x1458] sm:$0xff] }
 0x358   :  { %8497 = vmatprep.subr.bf16.mxu1 %v9717_v22  ;;  %7891 = vmatmul.mubr.bf16.gmra.mrb[28].mxu0 %v11018_v18  ;;  %v9765_v22 = vcombine.high %v866_v14, %v870_v41  ;;  %v910_v10 = vld [vmem:[#allocation5 + $0x1478] sm:$0xff] }
 0x359   :  { %7914 = vmatpush1.bf16.msra.mxu0 %v9714_v8  ;;  %7933 = vmatprep.mubr.bf16.mxu0 %v11020_v37  ;;  %v9762_v8 = vcombine.low %v865_v24, %v869_v61  ;;  %v913_v24 = vld [vmem:[#allocation5 + $0x1490] sm:$0xff] }
 0x35a   :  { %8475 = vmatmul.mubr.bf16.gmra.mrb[28].mxu1 %v11018_v18  ;;  %7915 = vmatprep.subr.bf16.mxu0 %v9723_v43  ;;  %v9739_v18 = vcombine.high %v841_v28, %v845_v27  ;;  %v9771_v43 = vcombine.high %v873_v0, %v877_v42  ;;  %v889_v28 = vld [vmem:[#allocation5 + $0x13d0] sm:$0xff] }
 0x35b   :  { %8498 = vmatpush1.bf16.msra.mxu1 %v9716_v15  ;;  %8517 = vmatprep.mubr.bf16.mxu1 %v11020_v37  ;;  %v9749_v37 = vcombine.high %v850_v35, %v854_v34  ;;  %v9764_v15 = vcombine.low %v866_v14, %v870_v41  ;;  %v893_v27 = vld [vmem:[#allocation5 + $0x13f0] sm:$0xff]  ;;  %v898_v35 = vld [vmem:[#allocation5 + $0x1418] sm:$0xff] }
 0x35c   :  { %8499 = vmatprep.subr.bf16.mxu1 %v9725_v17  ;;  %v9773_v17 = vcombine.high %v874_v16, %v878_v33  ;;  %v902_v34 = vld [vmem:[#allocation5 + $0x1438] sm:$0xff]  ;;  %v917_v61 = vld [vmem:[#allocation5 + $0x14b0] sm:$0xff] }
 0x35d   :  { %7916 = vmatpush1.bf16.msra.mxu0 %v9722_v53  ;;  %v9770_v53 = vcombine.low %v873_v0, %v877_v42  ;;  %v914_v14 = vld [vmem:[#allocation5 + $0x1498] sm:$0xff]  ;;  %v921_v0 = vld [vmem:[#allocation5 + $0x14d0] sm:$0xff] }
 0x35e   :  { %7917 = vmatprep.subr.bf16.mxu0 %v9731_v51  ;;  %v9779_v51 = vcombine.high %v881_v56, %v885_v1  ;;  %v918_v41 = vld [vmem:[#allocation5 + $0x14b8] sm:$0xff]  ;;  %v925_v42 = vld [vmem:[#allocation5 + $0x14f0] sm:$0xff] }
 0x35f   :  { %8500 = vmatpush1.bf16.msra.mxu1 %v9724_v59  ;;  %v9772_v59 = vcombine.low %v874_v16, %v878_v33  ;;  %v922_v16 = vld [vmem:[#allocation5 + $0x14d8] sm:$0xff] }
 0x360   :  { %8501 = vmatprep.subr.bf16.mxu1 %v9733_v40  ;;  %v9781_v40 = vcombine.high %v882_v11, %v886_v55  ;;  %v926_v33 = vld [vmem:[#allocation5 + $0x14f8] sm:$0xff] }
 0x361   :  { %7918 = vmatpush1.bf16.msra.mxu0 %v9730_v29  ;;  %v9778_v29 = vcombine.low %v881_v56, %v885_v1  ;;  %v933_v56 = vld [vmem:[#allocation5 + $0x1530] sm:$0xff]  ;;  %v930_v1 = vld [vmem:[#allocation5 + $0x1518] sm:$0xff] }
 0x362   :  { %7919 = vmatprep.subr.bf16.mxu0 %v9739_v18  ;;  %v9787_v18 = vcombine.high %v889_v28, %v893_v27 }
 0x363   :  { %8502 = vmatpush1.bf16.msra.mxu1 %v9732_v36  ;;  %v9780_v36 = vcombine.low %v882_v11, %v886_v55  ;;  %v934_v11 = vld [vmem:[#allocation5 + $0x1538] sm:$0xff]  ;;  %v9818_v55 = vcombine.low %v921_v0, %v925_v42 }
 0x364   :  { %8503 = vmatprep.subr.bf16.mxu1 %v9741_v23  ;;  %v9789_v23 = vcombine.high %v890_v60, %v894_v26 }
 0x365   :  { %7920 = vmatpush1.bf16.msra.mxu0 %v9738_v46  ;;  %v9786_v46 = vcombine.low %v889_v28, %v893_v27  ;;  %v938_v28 = vld [vmem:[#allocation5 + $0x1558] sm:$0xff] }
 0x366   :  { %7921 = vmatprep.subr.bf16.mxu0 %v9747_v12  ;;  %v9795_v12 = vcombine.high %v897_v30, %v901_v47  ;;  %v942_v27 = vld [vmem:[#allocation5 + $0x1578] sm:$0xff] }
 0x367   :  { %8504 = vmatpush1.bf16.msra.mxu1 %v9740_v45  ;;  %v9788_v45 = vcombine.low %v890_v60, %v894_v26  ;;  %v9828_v26 = vcombine.low %v930_v1, %v934_v11 }
 0x368   :  { %8505 = vmatprep.subr.bf16.mxu1 %v9749_v37  ;;  %v9797_v37 = vcombine.high %v898_v35, %v902_v34 }
 0x369   :  { %7922 = vmatpush1.bf16.msra.mxu0 %v9746_v2  ;;  %v9794_v2 = vcombine.low %v897_v30, %v901_v47  ;;  %v950_v30 = vld [vmem:[#allocation5 + $0x15b8] sm:$0xff] }
 0x36a   :  { %7923 = vmatprep.subr.bf16.mxu0 %v9755_v7  ;;  %v9803_v7 = vcombine.high %v905_v38, %v909_v57  ;;  %v11689_v47 = vld [vmem:[#allocation15_spill] sm:$0xff] }
 0x36b   :  { %8506 = vmatpush1.bf16.msra.mxu1 %v9748_v58  ;;  %v9796_v58 = vcombine.low %v898_v35, %v902_v34 }
 0x36c   :  { %8507 = vmatprep.subr.bf16.mxu1 %v9757_v52  ;;  %v9805_v52 = vcombine.high %v906_v50, %v910_v10 }
 0x36d   :  { %7924 = vmatpush1.bf16.msra.mxu0 %v9754_v5  ;;  %v9802_v5 = vcombine.low %v905_v38, %v909_v57  ;;  %v954_v38 = vld [vmem:[#allocation5 + $0x15d8] sm:$0xff] }
 0x36e   :  { %7925 = vmatprep.subr.bf16.mxu0 %v9763_v54  ;;  %v9811_v54 = vcombine.high %v913_v24, %v917_v61  ;;  %v958_v57 = vld [vmem:[#allocation5 + $0x15f8] sm:$0xff] }
 0x36f   :  { %8508 = vmatpush1.bf16.msra.mxu1 %v9756_v19  ;;  %v9804_v19 = vcombine.low %v906_v50, %v910_v10 }
 0x370   :  { %8509 = vmatprep.subr.bf16.mxu1 %v9765_v22  ;;  %v9813_v22 = vcombine.high %v914_v14, %v918_v41 }
 0x371   :  { %7926 = vmatpush1.bf16.msra.mxu0 %v9762_v8  ;;  %v9810_v8 = vcombine.low %v913_v24, %v917_v61  ;;  %v962_v24 = vld [vmem:[#allocation5 + $0x1618] sm:$0xff] }
 0x372   :  { %7927 = vmatprep.subr.bf16.mxu0 %v9771_v43  ;;  %v9821_v43 = vcombine.high %v922_v16, %v926_v33  ;;  %v966_v61 = vld [vmem:[#allocation5 + $0x1638] sm:$0xff] }
 0x373   :  { %8510 = vmatpush1.bf16.msra.mxu1 %v9764_v15  ;;  %v9819_v15 = vcombine.high %v921_v0, %v925_v42  ;;  %v973_v0 = vld [vmem:[#allocation5 + $0x1670] sm:$0xff] }
 0x374   :  { %8511 = vmatprep.subr.bf16.mxu1 %v9773_v17  ;;  %v929_v17 = vld [vmem:[#allocation5 + $0x1510] sm:$0xff] }
 0x375   :  { %7928 = vmatpush1.bf16.msra.mxu0 %v9770_v53  ;;  %v9827_v53 = vcombine.high %v929_v17, %v933_v56  ;;  %v9826_v60 = vcombine.low %v929_v17, %v933_v56  ;;  %v11692_v42 = vld [vmem:[#allocation18_spill] sm:$0xff] }
 0x376   :  { %7929 = vmatprep.subr.bf16.mxu0 %v9779_v51  ;;  %v937_v51 = vld [vmem:[#allocation5 + $0x1550] sm:$0xff] }
 0x377   :  { %8512 = vmatpush1.bf16.msra.mxu1 %v9772_v59  ;;  %v9829_v59 = vcombine.high %v930_v1, %v934_v11  ;;  %v977_v17 = vld [vmem:[#allocation5 + $0x1690] sm:$0xff]  ;;  %v978_v1 = vld [vmem:[#allocation5 + $0x1698] sm:$0xff] }
 0x378   :  { %8513 = vmatprep.subr.bf16.mxu1 %v9781_v40  ;;  %v941_v40 = vld [vmem:[#allocation5 + $0x1570] sm:$0xff]  ;;  %v982_v11 = vld [vmem:[#allocation5 + $0x16b8] sm:$0xff] }
 0x379   :  { %7930 = vmatpush1.bf16.msra.mxu0 %v9778_v29  ;;  %v9837_v29 = vcombine.high %v938_v28, %v942_v27  ;;  %v9834_v35 = vcombine.low %v937_v51, %v941_v40  ;;  %v981_v56 = vld [vmem:[#allocation5 + $0x16b0] sm:$0xff] }
 0x37a   :  { %7931 = vmatprep.subr.bf16.mxu0 %v9787_v18  ;;  %v949_v18 = vld [vmem:[#allocation5 + $0x15b0] sm:$0xff] }
 0x37b   :  { %8514 = vmatpush1.bf16.msra.mxu1 %v9780_v36  ;;  %v945_v36 = vld [vmem:[#allocation5 + $0x1590] sm:$0xff] }
 0x37c   :  { %8515 = vmatprep.subr.bf16.mxu1 %v9789_v23  ;;  %v946_v23 = vld [vmem:[#allocation5 + $0x1598] sm:$0xff]  ;;  %v9843_v34 = vcombine.high %v945_v36, %v949_v18  ;;  %v9842_v50 = vcombine.low %v945_v36, %v949_v18  ;;  %v993_v36 = vld [vmem:[#allocation5 + $0x1710] sm:$0xff] }
 0x37d   :  { %7932 = vmatpush1.bf16.msra.mxu0 %v9786_v46  ;;  %v9845_v46 = vcombine.high %v946_v23, %v950_v30  ;;  %v9844_v10 = vcombine.low %v946_v23, %v950_v30  ;;  %v997_v18 = vld [vmem:[#allocation5 + $0x1730] sm:$0xff]  ;;  %v994_v23 = vld [vmem:[#allocation5 + $0x1718] sm:$0xff] }
 0x37e   :  { %7974 = vmatprep.subr.bf16.mxu0 %v9795_v12  ;;  %v957_v12 = vld [vmem:[#allocation5 + $0x15f0] sm:$0xff]  ;;  %v998_v30 = vld [vmem:[#allocation5 + $0x1738] sm:$0xff] }
 0x37f   :  { %8516 = vmatpush1.bf16.msra.mxu1 %v9788_v45  ;;  %v953_v45 = vld [vmem:[#allocation5 + $0x15d0] sm:$0xff] }
 0x380   :  { %8558 = vmatprep.subr.bf16.mxu1 %v9797_v37  ;;  %7934 = vmatmul.mubr.bf16.vlgmr.msra.gmra.mrb[16].mxu0 %v11026_v63  ;;  %v11690_v37 = vld [vmem:[#allocation16_spill] sm:$0xff] }
 0x381   :  { %7975 = vmatpush1.bf16.msra.mxu0 %v9794_v2  ;;  %7943 = vmatprep.mubr.bf16.mxu0 %v11028_v21  ;;  %v9851_v2 = vcombine.high %v953_v45, %v957_v12 }
 0x382   :  { %8518 = vmatmul.mubr.bf16.vlgmr.msra.gmra.mrb[16].mxu1 %v11026_v63  ;;  %7976 = vmatprep.subr.bf16.mxu0 %v9803_v7  ;;  %v9812_v63 = vcombine.low %v914_v14, %v918_v41  ;;  %v961_v7 = vld [vmem:[#allocation5 + $0x1610] sm:$0xff]  ;;  %v11691_v14 = vld [vmem:[#allocation17_spill] sm:$0xff]  ;;  %v9850_v41 = vcombine.low %v953_v45, %v957_v12  ;;  %v1002_v12 = vld [vmem:[#allocation5 + $0x1758] sm:$0xff] }
 0x383   :  { %8559 = vmatpush1.bf16.msra.mxu1 %v9796_v58  ;;  %8527 = vmatprep.mubr.bf16.mxu1 %v11028_v21  ;;  %v9820_v21 = vcombine.low %v922_v16, %v926_v33  ;;  %v9853_v58 = vcombine.high %v954_v38, %v958_v57  ;;  %v970_v16 = vld [vmem:[#allocation5 + $0x1658] sm:$0xff]  ;;  %v1005_v45 = vld [vmem:[#allocation5 + $0x1770] sm:$0xff] }
 0x384   :  { %8560 = vmatprep.subr.bf16.mxu1 %v9805_v52  ;;  %v965_v52 = vld [vmem:[#allocation5 + $0x1630] sm:$0xff]  ;;  %v974_v33 = vld [vmem:[#allocation5 + $0x1678] sm:$0xff] }
 0x385   :  { %7977 = vmatpush1.bf16.msra.mxu0 %v9802_v5  ;;  %v9852_v5 = vcombine.low %v954_v38, %v958_v57  ;;  %v9890_v38 = vcombine.low %v993_v36, %v997_v18  ;;  %v9892_v57 = vcombine.low %v994_v23, %v998_v30 }
 0x386   :  { %7978 = vmatprep.subr.bf16.mxu0 %v9811_v54  ;;  %v9861_v54 = vcombine.high %v962_v24, %v966_v61 }
 0x387   :  { %8561 = vmatpush1.bf16.msra.mxu1 %v9804_v19  ;;  %v9859_v19 = vcombine.high %v961_v7, %v965_v52 }
 0x388   :  { %8562 = vmatprep.subr.bf16.mxu1 %v9813_v22  ;;  %7944 = vmatmul.mubr.bf16.gmra.mrb[20].mxu0 %v11034_v48  ;;  %v969_v22 = vld [vmem:[#allocation5 + $0x1650] sm:$0xff] }
 0x389   :  { %7979 = vmatpush1.bf16.msra.mxu0 %v9810_v8  ;;  %7953 = vmatprep.mubr.bf16.mxu0 %v11036_v3  ;;  %v9858_v8 = vcombine.low %v961_v7, %v965_v52  ;;  %v1010_v7 = vld [vmem:[#allocation5 + $0x1798] sm:$0xff] }
 0x38a   :  { %8528 = vmatmul.mubr.bf16.gmra.mrb[20].mxu1 %v11034_v48  ;;  %7980 = vmatprep.subr.bf16.mxu0 %v9819_v15  ;;  %v9835_v48 = vcombine.high %v937_v51, %v941_v40  ;;  %v9867_v15 = vcombine.high %v969_v22, %v973_v0  ;;  %v985_v51 = vld [vmem:[#allocation5 + $0x16d0] sm:$0xff]  ;;  %v1014_v52 = vld [vmem:[#allocation5 + $0x17b8] sm:$0xff] }
 0x38b   :  { %8563 = vmatpush1.bf16.msra.mxu1 %v9812_v63  ;;  %8537 = vmatprep.mubr.bf16.mxu1 %v11036_v3  ;;  %v9836_v3 = vcombine.low %v938_v28, %v942_v27  ;;  %v9860_v63 = vcombine.low %v962_v24, %v966_v61  ;;  %v989_v40 = vld [vmem:[#allocation5 + $0x16f0] sm:$0xff]  ;;  %v986_v28 = vld [vmem:[#allocation5 + $0x16d8] sm:$0xff] }
 0x38c   :  { %8564 = vmatprep.subr.bf16.mxu1 %v9821_v43  ;;  %v9869_v43 = vcombine.high %v970_v16, %v974_v33  ;;  %v990_v27 = vld [vmem:[#allocation5 + $0x16f8] sm:$0xff] }
 0x38d   :  { %7981 = vmatpush1.bf16.msra.mxu0 %v9818_v55  ;;  %v9866_v55 = vcombine.low %v969_v22, %v973_v0  ;;  %v1022_v22 = vld [vmem:[#allocation5 + $0x17f8] sm:$0xff] }
 0x38e   :  { %7982 = vmatprep.subr.bf16.mxu0 %v9827_v53  ;;  %v9875_v53 = vcombine.high %v977_v17, %v981_v56 }
 0x38f   :  { %8565 = vmatpush1.bf16.msra.mxu1 %v9820_v21  ;;  %v9868_v21 = vcombine.low %v970_v16, %v974_v33 }
 0x390   :  { %8566 = vmatprep.subr.bf16.mxu1 %v9829_v59  ;;  %7954 = vmatmul.mubr.bf16.gmra.mrb[24].mxu0 %v11689_v47  ;;  %v9877_v59 = vcombine.high %v978_v1, %v982_v11 }
 0x391   :  { %7983 = vmatpush1.bf16.msra.mxu0 %v9826_v60  ;;  %7963 = vmatprep.mubr.bf16.mxu0 %v11690_v37  ;;  %v9874_v60 = vcombine.low %v977_v17, %v981_v56 }
 0x392   :  { %8538 = vmatmul.mubr.bf16.gmra.mrb[24].mxu1 %v11689_v47  ;;  %7984 = vmatprep.subr.bf16.mxu0 %v9835_v48  ;;  %v9883_v48 = vcombine.high %v985_v51, %v989_v40  ;;  %v9882_v47 = vcombine.low %v985_v51, %v989_v40 }
 0x393   :  { %8567 = vmatpush1.bf16.msra.mxu1 %v9828_v26  ;;  %8547 = vmatprep.mubr.bf16.mxu1 %v11690_v37  ;;  %v9876_v26 = vcombine.low %v978_v1, %v982_v11  ;;  %v1006_v37 = vld [vmem:[#allocation5 + $0x1778] sm:$0xff] }
 0x394   :  { %8568 = vmatprep.subr.bf16.mxu1 %v9837_v29  ;;  %v9885_v29 = vcombine.high %v986_v28, %v990_v27  ;;  %v9900_v61 = vcombine.low %v1002_v12, %v1006_v37 }
 0x395   :  { %7985 = vmatpush1.bf16.msra.mxu0 %v9834_v35  ;;  %v9884_v35 = vcombine.low %v986_v28, %v990_v27 }
 0x396   :  { %7986 = vmatprep.subr.bf16.mxu0 %v9843_v34  ;;  %v9893_v34 = vcombine.high %v994_v23, %v998_v30 }
 0x397   :  { %8569 = vmatpush1.bf16.msra.mxu1 %v9836_v3  ;;  %v9891_v3 = vcombine.high %v993_v36, %v997_v18  ;;  %v1046_v36 = vld [vmem:[#allocation5 + $0x18b8] sm:$0xff] }
 0x398   :  { %8570 = vmatprep.subr.bf16.mxu1 %v9845_v46  ;;  %7964 = vmatmul.mubr.bf16.gmra.mrb[28].mxu0 %v11691_v14  ;;  %v1001_v46 = vld [vmem:[#allocation5 + $0x1750] sm:$0xff] }
 0x399   :  { %7987 = vmatpush1.bf16.msra.mxu0 %v9842_v50  ;;  %8006 = vmatprep.mubr.bf16.mxu0 %v11692_v42  ;;  %v9899_v50 = vcombine.high %v1001_v46, %v1005_v45  ;;  %v9898_v24 = vcombine.low %v1001_v46, %v1005_v45  ;;  %v1050_v46 = vld [vmem:[#allocation5 + $0x18d8] sm:$0xff] }
 0x39a   :  { %8548 = vmatmul.mubr.bf16.gmra.mrb[28].mxu1 %v11691_v14  ;;  %7988 = vmatprep.subr.bf16.mxu0 %v9851_v2  ;;  %v1009_v2 = vld [vmem:[#allocation5 + $0x1790] sm:$0xff]  ;;  %v1054_v45 = vld [vmem:[#allocation5 + $0x18f8] sm:$0xff] }
 0x39b   :  { %8571 = vmatpush1.bf16.msra.mxu1 %v9844_v10  ;;  %8590 = vmatprep.mubr.bf16.mxu1 %v11692_v42  ;;  %v9901_v10 = vcombine.high %v1002_v12, %v1006_v37  ;;  %v9908_v42 = vcombine.low %v1010_v7, %v1014_v52 }
 0x39c   :  { %8572 = vmatprep.subr.bf16.mxu1 %v9853_v58  ;;  %v1013_v58 = vld [vmem:[#allocation5 + $0x17b0] sm:$0xff] }
 0x39d   :  { %7989 = vmatpush1.bf16.msra.mxu0 %v9850_v41  ;;  %v9907_v14 = vcombine.high %v1009_v2, %v1013_v58  ;;  %v9909_v41 = vcombine.high %v1010_v7, %v1014_v52  ;;  %v9906_v0 = vcombine.low %v1009_v2, %v1013_v58  ;;  %v1058_v2 = vld [vmem:[#allocation5 + $0x1918] sm:$0xff]  ;;  %v11695_v7 = vld [vmem:[#allocation21_spill] sm:$0xff] }
 0x39e   :  { %7990 = vmatprep.subr.bf16.mxu0 %v9859_v19  ;;  %v1021_v19 = vld [vmem:[#allocation5 + $0x17f0] sm:$0xff]  ;;  %v1062_v58 = vld [vmem:[#allocation5 + $0x1938] sm:$0xff] }
 0x39f   :  { %8573 = vmatpush1.bf16.msra.mxu1 %v9852_v5  ;;  %v1017_v5 = vld [vmem:[#allocation5 + $0x17d0] sm:$0xff] }
 0x3a0   :  { %8574 = vmatprep.subr.bf16.mxu1 %v9861_v54  ;;  %v1018_v54 = vld [vmem:[#allocation5 + $0x17d8] sm:$0xff]  ;;  %v9915_v16 = vcombine.high %v1017_v5, %v1021_v19  ;;  %v9914_v17 = vcombine.low %v1017_v5, %v1021_v19  ;;  %v1069_v5 = vld [vmem:[#allocation5 + $0x1970] sm:$0xff] }
 0x3a1   :  { %7991 = vmatpush1.bf16.msra.mxu0 %v9858_v8  ;;  %v9917_v33 = vcombine.high %v1018_v54, %v1022_v22  ;;  %v1025_v8 = vld [vmem:[#allocation5 + $0x1810] sm:$0xff]  ;;  %v9916_v56 = vcombine.low %v1018_v54, %v1022_v22  ;;  %v1066_v54 = vld [vmem:[#allocation5 + $0x1958] sm:$0xff] }
 0x3a2   :  { %7992 = vmatprep.subr.bf16.mxu0 %v9867_v15  ;;  %v1026_v15 = vld [vmem:[#allocation5 + $0x1818] sm:$0xff]  ;;  %v11696_v19 = vld [vmem:[#allocation22_spill] sm:$0xff] }
 0x3a3   :  { %8575 = vmatpush1.bf16.msra.mxu1 %v9860_v63  ;;  %v1029_v63 = vld [vmem:[#allocation5 + $0x1830] sm:$0xff]  ;;  %v1070_v22 = vld [vmem:[#allocation5 + $0x1978] sm:$0xff] }
 0x3a4   :  { %8576 = vmatprep.subr.bf16.mxu1 %v9869_v43  ;;  %v1030_v43 = vld [vmem:[#allocation5 + $0x1838] sm:$0xff]  ;;  %v9923_v1 = vcombine.high %v1025_v8, %v1029_v63  ;;  %v9922_v51 = vcombine.low %v1025_v8, %v1029_v63  ;;  %v1073_v8 = vld [vmem:[#allocation5 + $0x1990] sm:$0xff] }
 0x3a5   :  { %7993 = vmatpush1.bf16.msra.mxu0 %v9866_v55  ;;  %v9925_v11 = vcombine.high %v1026_v15, %v1030_v43  ;;  %v1033_v55 = vld [vmem:[#allocation5 + $0x1850] sm:$0xff]  ;;  %v9924_v40 = vcombine.low %v1026_v15, %v1030_v43  ;;  %v1074_v15 = vld [vmem:[#allocation5 + $0x1998] sm:$0xff] }
 0x3a6   :  { %7994 = vmatprep.subr.bf16.mxu0 %v9875_v53  ;;  %v1034_v53 = vld [vmem:[#allocation5 + $0x1858] sm:$0xff]  ;;  %v1077_v63 = vld [vmem:[#allocation5 + $0x19b0] sm:$0xff] }
 0x3a7   :  { %8577 = vmatpush1.bf16.msra.mxu1 %v9868_v21  ;;  %v1037_v21 = vld [vmem:[#allocation5 + $0x1870] sm:$0xff]  ;;  %v1078_v43 = vld [vmem:[#allocation5 + $0x19b8] sm:$0xff] }
 0x3a8   :  { %8578 = vmatprep.subr.bf16.mxu1 %v9877_v59  ;;  %v1038_v59 = vld [vmem:[#allocation5 + $0x1878] sm:$0xff]  ;;  %v9931_v28 = vcombine.high %v1033_v55, %v1037_v21  ;;  %v9930_v18 = vcombine.low %v1033_v55, %v1037_v21  ;;  %v9973_v55 = vcombine.high %v1074_v15, %v1078_v43  ;;  %v1081_v21 = vld [vmem:[#allocation5 + $0x19d0] sm:$0xff] }
 0x3a9   :  { %7995 = vmatpush1.bf16.msra.mxu0 %v9874_v60  ;;  %v9933_v27 = vcombine.high %v1034_v53, %v1038_v59  ;;  %v1041_v60 = vld [vmem:[#allocation5 + $0x1890] sm:$0xff]  ;;  %v9932_v23 = vcombine.low %v1034_v53, %v1038_v59  ;;  %v11698_v59 = vld [vmem:[#allocation24_spill] sm:$0xff] }
 0x3aa   :  { %7996 = vmatprep.subr.bf16.mxu0 %v9883_v48  ;;  %v11693_v48 = vld [vmem:[#allocation19_spill] sm:$0xff]  ;;  %v1085_v53 = vld [vmem:[#allocation5 + $0x19f0] sm:$0xff] }
 0x3ab   :  { %8579 = vmatpush1.bf16.msra.mxu1 %v9876_v26  ;;  %v1045_v26 = vld [vmem:[#allocation5 + $0x18b0] sm:$0xff] }
 0x3ac   :  { %8580 = vmatprep.subr.bf16.mxu1 %v9885_v29  ;;  %v1042_v29 = vld [vmem:[#allocation5 + $0x1898] sm:$0xff]  ;;  %v9939_v30 = vcombine.high %v1041_v60, %v1045_v26  ;;  %v9938_v12 = vcombine.low %v1041_v60, %v1045_v26  ;;  %v9979_v60 = vcombine.high %v1081_v21, %v1085_v53 }
 0x3ad   :  { %7997 = vmatpush1.bf16.msra.mxu0 %v9882_v47  ;;  %v9941_v47 = vcombine.high %v1042_v29, %v1046_v36  ;;  %v9940_v37 = vcombine.low %v1042_v29, %v1046_v36  ;;  %v1093_v29 = vld [vmem:[#allocation5 + $0x1a30] sm:$0xff]  ;;  %v1090_v36 = vld [vmem:[#allocation5 + $0x1a18] sm:$0xff] }
 0x3ae   :  { %7998 = vmatprep.subr.bf16.mxu0 %v9891_v3  ;;  %v1053_v3 = vld [vmem:[#allocation5 + $0x18f0] sm:$0xff] }
 0x3af   :  { %8581 = vmatpush1.bf16.msra.mxu1 %v9884_v35  ;;  %v1049_v35 = vld [vmem:[#allocation5 + $0x18d0] sm:$0xff] }
 0x3b0   :  { %8582 = vmatprep.subr.bf16.mxu1 %v9893_v34  ;;  %v11694_v34 = vld [vmem:[#allocation20_spill] sm:$0xff]  ;;  %v9946_v52 = vcombine.low %v1049_v35, %v1053_v3 }
 0x3b1   :  { %7999 = vmatpush1.bf16.msra.mxu0 %v9890_v38  ;;  %v9947_v38 = vcombine.high %v1049_v35, %v1053_v3 }
 0x3b2   :  { %8000 = vmatprep.subr.bf16.mxu0 %v9899_v50  ;;  %v1057_v50 = vld [vmem:[#allocation5 + $0x1910] sm:$0xff] }
 0x3b3   :  { %8583 = vmatpush1.bf16.msra.mxu1 %v9892_v57  ;;  %v9949_v57 = vcombine.high %v1050_v46, %v1054_v45 }
 0x3b4   :  { %8584 = vmatprep.subr.bf16.mxu1 %v9901_v10  ;;  %v1061_v10 = vld [vmem:[#allocation5 + $0x1930] sm:$0xff] }
 0x3b5   :  { %8001 = vmatpush1.bf16.msra.mxu0 %v9898_v24  ;;  %v9948_v24 = vcombine.low %v1050_v46, %v1054_v45  ;;  %v1101_v46 = vld [vmem:[#allocation5 + $0x1a70] sm:$0xff] }
 0x3b6   :  { %8002 = vmatprep.subr.bf16.mxu0 %v9907_v14  ;;  %v9957_v14 = vcombine.high %v1058_v2, %v1062_v58  ;;  %v11700_v45 = vld [vmem:[#allocation26_spill] sm:$0xff] }
 0x3b7   :  { %8585 = vmatpush1.bf16.msra.mxu1 %v9900_v61  ;;  %v9955_v61 = vcombine.high %v1057_v50, %v1061_v10 }
 0x3b8   :  { %8586 = vmatprep.subr.bf16.mxu1 %v9909_v41  ;;  %v1065_v41 = vld [vmem:[#allocation5 + $0x1950] sm:$0xff] }
 0x3b9   :  { %8003 = vmatpush1.bf16.msra.mxu0 %v9906_v0  ;;  %v9954_v0 = vcombine.low %v1057_v50, %v1061_v10 }
 0x3ba   :  { %8004 = vmatprep.subr.bf16.mxu0 %v9915_v16  ;;  %v9963_v16 = vcombine.high %v1065_v41, %v1069_v5 }
 0x3bb   :  { %8587 = vmatpush1.bf16.msra.mxu1 %v9908_v42  ;;  %v9956_v42 = vcombine.low %v1058_v2, %v1062_v58  ;;  %v1105_v2 = vld [vmem:[#allocation5 + $0x1a90] sm:$0xff] }
 0x3bc   :  { %8588 = vmatprep.subr.bf16.mxu1 %v9917_v33  ;;  %v9965_v33 = vcombine.high %v1066_v54, %v1070_v22  ;;  %v1109_v58 = vld [vmem:[#allocation5 + $0x1ab0] sm:$0xff] }
 0x3bd   :  { %8005 = vmatpush1.bf16.msra.mxu0 %v9914_v17  ;;  %v11697_v17 = vld [vmem:[#allocation23_spill] sm:$0xff] }
 0x3be   :  { %8047 = vmatprep.subr.bf16.mxu0 %v9923_v1  ;;  %v9964_v1 = vcombine.low %v1066_v54, %v1070_v22  ;;  %v1114_v54 = vld [vmem:[#allocation5 + $0x1ad8] sm:$0xff] }
 0x3bf   :  { %8589 = vmatpush1.bf16.msra.mxu1 %v9916_v56  ;;  %v9962_v56 = vcombine.low %v1065_v41, %v1069_v5  ;;  %v1113_v5 = vld [vmem:[#allocation5 + $0x1ad0] sm:$0xff]  ;;  %v1118_v22 = vld [vmem:[#allocation5 + $0x1af8] sm:$0xff] }
 0x3c0   :  { %8631 = vmatprep.subr.bf16.mxu1 %v9925_v11  ;;  %8007 = vmatmul.mubr.bf16.vlgmr.msra.gmra.mrb[16].mxu0 %v11693_v48  ;;  %v9971_v11 = vcombine.high %v1073_v8, %v1077_v63 }
 0x3c1   :  { %8048 = vmatpush1.bf16.msra.mxu0 %v9922_v51  ;;  %8016 = vmatprep.mubr.bf16.mxu0 %v11694_v34  ;;  %v1082_v51 = vld [vmem:[#allocation5 + $0x19d8] sm:$0xff] }
 0x3c2   :  { %8591 = vmatmul.mubr.bf16.vlgmr.msra.gmra.mrb[16].mxu1 %v11693_v48  ;;  %8049 = vmatprep.subr.bf16.mxu0 %v9931_v28  ;;  %v9970_v28 = vcombine.low %v1073_v8, %v1077_v63  ;;  %v1089_v48 = vld [vmem:[#allocation5 + $0x1a10] sm:$0xff] }
 0x3c3   :  { %8632 = vmatpush1.bf16.msra.mxu1 %v9924_v40  ;;  %8600 = vmatprep.mubr.bf16.mxu1 %v11694_v34  ;;  %v1086_v40 = vld [vmem:[#allocation5 + $0x19f8] sm:$0xff]  ;;  %v9987_v35 = vcombine.high %v1089_v48, %v1093_v29  ;;  %v1097_v34 = vld [vmem:[#allocation5 + $0x1a50] sm:$0xff] }
 0x3c4   :  { %8633 = vmatprep.subr.bf16.mxu1 %v9933_v27  ;;  %v9972_v27 = vcombine.low %v1074_v15, %v1078_v43  ;;  %v9981_v26 = vcombine.high %v1082_v51, %v1086_v40  ;;  %v9995_v50 = vcombine.high %v1097_v34, %v1101_v46  ;;  %v1121_v8 = vld [vmem:[#allocation5 + $0x1b10] sm:$0xff]  ;;  %v1122_v15 = vld [vmem:[#allocation5 + $0x1b18] sm:$0xff] }
 0x3c5   :  { %8050 = vmatpush1.bf16.msra.mxu0 %v9930_v18  ;;  %v1094_v18 = vld [vmem:[#allocation5 + $0x1a38] sm:$0xff]  ;;  %v1125_v63 = vld [vmem:[#allocation5 + $0x1b30] sm:$0xff] }
 0x3c6   :  { %8051 = vmatprep.subr.bf16.mxu0 %v9939_v30  ;;  %v9978_v30 = vcombine.low %v1081_v21, %v1085_v53  ;;  %v9989_v3 = vcombine.high %v1090_v36, %v1094_v18  ;;  %v1126_v43 = vld [vmem:[#allocation5 + $0x1b38] sm:$0xff]  ;;  %v1133_v21 = vld [vmem:[#allocation5 + $0x1b70] sm:$0xff] }
 0x3c7   :  { %8634 = vmatpush1.bf16.msra.mxu1 %v9932_v23  ;;  %v11699_v23 = vld [vmem:[#allocation25_spill] sm:$0xff]  ;;  %v1130_v53 = vld [vmem:[#allocation5 + $0x1b58] sm:$0xff] }
 0x3c8   :  { %8635 = vmatprep.subr.bf16.mxu1 %v9941_v47  ;;  %8017 = vmatmul.mubr.bf16.gmra.mrb[20].mxu0 %v11695_v7  ;;  %v9980_v47 = vcombine.low %v1082_v51, %v1086_v40  ;;  %v10018_v51 = vcombine.low %v1121_v8, %v1125_v63  ;;  %v10020_v40 = vcombine.low %v1122_v15, %v1126_v43 }
 0x3c9   :  { %8052 = vmatpush1.bf16.msra.mxu0 %v9938_v12  ;;  %8026 = vmatprep.mubr.bf16.mxu0 %v11696_v19  ;;  %v1098_v12 = vld [vmem:[#allocation5 + $0x1a58] sm:$0xff] }
 0x3ca   :  { %8601 = vmatmul.mubr.bf16.gmra.mrb[20].mxu1 %v11695_v7  ;;  %8053 = vmatprep.subr.bf16.mxu0 %v9947_v38  ;;  %v9986_v38 = vcombine.low %v1089_v48, %v1093_v29  ;;  %v1106_v7 = vld [vmem:[#allocation5 + $0x1a98] sm:$0xff] }
 0x3cb   :  { %8636 = vmatpush1.bf16.msra.mxu1 %v9940_v37  ;;  %8610 = vmatprep.mubr.bf16.mxu1 %v11696_v19  ;;  %v1102_v37 = vld [vmem:[#allocation5 + $0x1a78] sm:$0xff]  ;;  %v1117_v19 = vld [vmem:[#allocation5 + $0x1af0] sm:$0xff] }
 0x3cc   :  { %8637 = vmatprep.subr.bf16.mxu1 %v9949_v57  ;;  %v9988_v57 = vcombine.low %v1090_v36, %v1094_v18  ;;  %v9997_v10 = vcombine.high %v1098_v12, %v1102_v37  ;;  %v1138_v48 = vld [vmem:[#allocation5 + $0x1b98] sm:$0xff] }
 0x3cd   :  { %8054 = vmatpush1.bf16.msra.mxu0 %v9946_v52  ;;  %v1110_v52 = vld [vmem:[#allocation5 + $0x1ab8] sm:$0xff] }
 0x3ce   :  { %8055 = vmatprep.subr.bf16.mxu0 %v9955_v61  ;;  %v9996_v61 = vcombine.low %v1098_v12, %v1102_v37  ;;  %v10005_v41 = vcombine.high %v1106_v7, %v1110_v52  ;;  %v1142_v29 = vld [vmem:[#allocation5 + $0x1bb8] sm:$0xff] }
 0x3cf   :  { %8638 = vmatpush1.bf16.msra.mxu1 %v9948_v24  ;;  %v9994_v24 = vcombine.low %v1097_v34, %v1101_v46  ;;  %v1150_v34 = vld [vmem:[#allocation5 + $0x1bf8] sm:$0xff] }
 0x3d0   :  { %8639 = vmatprep.subr.bf16.mxu1 %v9957_v14  ;;  %8027 = vmatmul.mubr.bf16.gmra.mrb[24].mxu0 %v11697_v17  ;;  %v10003_v14 = vcombine.high %v1105_v2, %v1109_v58 }
 0x3d1   :  { %8056 = vmatpush1.bf16.msra.mxu0 %v9954_v0  ;;  %8036 = vmatprep.mubr.bf16.mxu0 %v11698_v59  ;;  %v10002_v0 = vcombine.low %v1105_v2, %v1109_v58 }
 0x3d2   :  { %8611 = vmatmul.mubr.bf16.gmra.mrb[24].mxu1 %v11697_v17  ;;  %8057 = vmatprep.subr.bf16.mxu0 %v9963_v16  ;;  %v10011_v16 = vcombine.high %v1113_v5, %v1117_v19  ;;  %v10010_v17 = vcombine.low %v1113_v5, %v1117_v19 }
 0x3d3   :  { %8640 = vmatpush1.bf16.msra.mxu1 %v9956_v42  ;;  %8620 = vmatprep.mubr.bf16.mxu1 %v11698_v59  ;;  %v10004_v42 = vcombine.low %v1106_v7, %v1110_v52  ;;  %v1134_v59 = vld [vmem:[#allocation5 + $0x1b78] sm:$0xff] }
 0x3d4   :  { %8641 = vmatprep.subr.bf16.mxu1 %v9965_v33  ;;  %v10013_v33 = vcombine.high %v1114_v54, %v1118_v22  ;;  %v10028_v18 = vcombine.low %v1130_v53, %v1134_v59 }
 0x3d5   :  { %8058 = vmatpush1.bf16.msra.mxu0 %v9962_v56  ;;  %v10012_v56 = vcombine.low %v1114_v54, %v1118_v22 }
 0x3d6   :  { %8059 = vmatprep.subr.bf16.mxu0 %v9971_v11  ;;  %v10021_v11 = vcombine.high %v1122_v15, %v1126_v43 }
 0x3d7   :  { %8642 = vmatpush1.bf16.msra.mxu1 %v9964_v1  ;;  %v10019_v1 = vcombine.high %v1121_v8, %v1125_v63  ;;  %v1174_v8 = vld [vmem:[#allocation5 + $0x1cb8] sm:$0xff] }
 0x3d8   :  { %8643 = vmatprep.subr.bf16.mxu1 %v9973_v55  ;;  %8037 = vmatmul.mubr.bf16.gmra.mrb[28].mxu0 %v11699_v23  ;;  %v1129_v55 = vld [vmem:[#allocation5 + $0x1b50] sm:$0xff] }
 0x3d9   :  { %8060 = vmatpush1.bf16.msra.mxu0 %v9970_v28  ;;  %8079 = vmatprep.mubr.bf16.mxu0 %v11700_v45  ;;  %v10027_v28 = vcombine.high %v1129_v55, %v1133_v21  ;;  %v10026_v36 = vcombine.low %v1129_v55, %v1133_v21  ;;  %v1178_v55 = vld [vmem:[#allocation5 + $0x1cd8] sm:$0xff] }
 0x3da   :  { %8621 = vmatmul.mubr.bf16.gmra.mrb[28].mxu1 %v11699_v23  ;;  %8061 = vmatprep.subr.bf16.mxu0 %v9979_v60  ;;  %v1137_v60 = vld [vmem:[#allocation5 + $0x1b90] sm:$0xff]  ;;  %v1182_v21 = vld [vmem:[#allocation5 + $0x1cf8] sm:$0xff] }
 0x3db   :  { %8644 = vmatpush1.bf16.msra.mxu1 %v9972_v27  ;;  %8663 = vmatprep.mubr.bf16.mxu1 %v11700_v45  ;;  %v10029_v27 = vcombine.high %v1130_v53, %v1134_v59  ;;  %v10036_v45 = vcombine.low %v1138_v48, %v1142_v29 }
 0x3dc   :  { %8645 = vmatprep.subr.bf16.mxu1 %v9981_v26  ;;  %v1141_v26 = vld [vmem:[#allocation5 + $0x1bb0] sm:$0xff] }
 0x3dd   :  { %8062 = vmatpush1.bf16.msra.mxu0 %v9978_v30  ;;  %v10035_v23 = vcombine.high %v1137_v60, %v1141_v26  ;;  %v10037_v30 = vcombine.high %v1138_v48, %v1142_v29  ;;  %v10034_v46 = vcombine.low %v1137_v60, %v1141_v26  ;;  %v1186_v60 = vld [vmem:[#allocation5 + $0x1d18] sm:$0xff]  ;;  %v11703_v48 = vld [vmem:[#allocation29_spill] sm:$0xff] }
 0x3de   :  { %8063 = vmatprep.subr.bf16.mxu0 %v9987_v35  ;;  %v1149_v35 = vld [vmem:[#allocation5 + $0x1bf0] sm:$0xff]  ;;  %v1190_v26 = vld [vmem:[#allocation5 + $0x1d38] sm:$0xff] }
 0x3df   :  { %8646 = vmatpush1.bf16.msra.mxu1 %v9980_v47  ;;  %v1145_v47 = vld [vmem:[#allocation5 + $0x1bd0] sm:$0xff] }
 0x3e0   :  { %8647 = vmatprep.subr.bf16.mxu1 %v9989_v3  ;;  %v1146_v3 = vld [vmem:[#allocation5 + $0x1bd8] sm:$0xff]  ;;  %v10043_v12 = vcombine.high %v1145_v47, %v1149_v35  ;;  %v10042_v2 = vcombine.low %v1145_v47, %v1149_v35  ;;  %v1197_v47 = vld [vmem:[#allocation5 + $0x1d70] sm:$0xff] }
 0x3e1   :  { %8064 = vmatpush1.bf16.msra.mxu0 %v9986_v38  ;;  %v10045_v37 = vcombine.high %v1146_v3, %v1150_v34  ;;  %v1153_v38 = vld [vmem:[#allocation5 + $0x1c10] sm:$0xff]  ;;  %v10044_v58 = vcombine.low %v1146_v3, %v1150_v34  ;;  %v1194_v3 = vld [vmem:[#allocation5 + $0x1d58] sm:$0xff] }
 0x3e2   :  { %8065 = vmatprep.subr.bf16.mxu0 %v9995_v50  ;;  %v1154_v50 = vld [vmem:[#allocation5 + $0x1c18] sm:$0xff]  ;;  %v11704_v35 = vld [vmem:[#allocation30_spill] sm:$0xff] }
 0x3e3   :  { %8648 = vmatpush1.bf16.msra.mxu1 %v9988_v57  ;;  %v1157_v57 = vld [vmem:[#allocation5 + $0x1c30] sm:$0xff]  ;;  %v1198_v34 = vld [vmem:[#allocation5 + $0x1d78] sm:$0xff] }
 0x3e4   :  { %8649 = vmatprep.subr.bf16.mxu1 %v9997_v10  ;;  %v1158_v10 = vld [vmem:[#allocation5 + $0x1c38] sm:$0xff]  ;;  %v10051_v7 = vcombine.high %v1153_v38, %v1157_v57  ;;  %v10050_v5 = vcombine.low %v1153_v38, %v1157_v57  ;;  %v1201_v38 = vld [vmem:[#allocation5 + $0x1d90] sm:$0xff] }
 0x3e5   :  { %8066 = vmatpush1.bf16.msra.mxu0 %v9994_v24  ;;  %v10053_v52 = vcombine.high %v1154_v50, %v1158_v10  ;;  %v1161_v24 = vld [vmem:[#allocation5 + $0x1c50] sm:$0xff]  ;;  %v10052_v19 = vcombine.low %v1154_v50, %v1158_v10  ;;  %v1202_v50 = vld [vmem:[#allocation5 + $0x1d98] sm:$0xff] }
 0x3e6   :  { %8067 = vmatprep.subr.bf16.mxu0 %v10003_v14  ;;  %v1162_v14 = vld [vmem:[#allocation5 + $0x1c58] sm:$0xff]  ;;  %v1205_v57 = vld [vmem:[#allocation5 + $0x1db0] sm:$0xff] }
 0x3e7   :  { %8650 = vmatpush1.bf16.msra.mxu1 %v9996_v61  ;;  %v1165_v61 = vld [vmem:[#allocation5 + $0x1c70] sm:$0xff]  ;;  %v1206_v10 = vld [vmem:[#allocation5 + $0x1db8] sm:$0xff] }
 0x3e8   :  { %8651 = vmatprep.subr.bf16.mxu1 %v10005_v41  ;;  %v1166_v41 = vld [vmem:[#allocation5 + $0x1c78] sm:$0xff]  ;;  %v10059_v54 = vcombine.high %v1161_v24, %v1165_v61  ;;  %v10058_v63 = vcombine.low %v1161_v24, %v1165_v61  ;;  %v10101_v24 = vcombine.high %v1202_v50, %v1206_v10  ;;  %v1209_v61 = vld [vmem:[#allocation5 + $0x1dd0] sm:$0xff] }
 0x3e9   :  { %8068 = vmatpush1.bf16.msra.mxu0 %v10002_v0  ;;  %v10061_v22 = vcombine.high %v1162_v14, %v1166_v41  ;;  %v1169_v0 = vld [vmem:[#allocation5 + $0x1c90] sm:$0xff]  ;;  %v10060_v15 = vcombine.low %v1162_v14, %v1166_v41  ;;  %v1210_v41 = vld [vmem:[#allocation5 + $0x1dd8] sm:$0xff] }
 0x3ea   :  { %8069 = vmatprep.subr.bf16.mxu0 %v10011_v16  ;;  %v11701_v16 = vld [vmem:[#allocation27_spill] sm:$0xff]  ;;  %v1213_v14 = vld [vmem:[#allocation5 + $0x1df0] sm:$0xff] }
 0x3eb   :  { %8652 = vmatpush1.bf16.msra.mxu1 %v10004_v42  ;;  %v1173_v42 = vld [vmem:[#allocation5 + $0x1cb0] sm:$0xff] }
 0x3ec   :  { %8653 = vmatprep.subr.bf16.mxu1 %v10013_v33  ;;  %v1170_v33 = vld [vmem:[#allocation5 + $0x1c98] sm:$0xff]  ;;  %v10067_v43 = vcombine.high %v1169_v0, %v1173_v42  ;;  %v10066_v53 = vcombine.low %v1169_v0, %v1173_v42  ;;  %v1217_v42 = vld [vmem:[#allocation5 + $0x1e10] sm:$0xff] }
 0x3ed   :  { %8070 = vmatpush1.bf16.msra.mxu0 %v10010_v17  ;;  %v10069_v17 = vcombine.high %v1170_v33, %v1174_v8  ;;  %v10068_v59 = vcombine.low %v1170_v33, %v1174_v8  ;;  %v1218_v33 = vld [vmem:[#allocation5 + $0x1e18] sm:$0xff] }
 0x3ee   :  { %8071 = vmatprep.subr.bf16.mxu0 %v10019_v1  ;;  %v1181_v1 = vld [vmem:[#allocation5 + $0x1cf0] sm:$0xff]  ;;  %v1222_v8 = vld [vmem:[#allocation5 + $0x1e38] sm:$0xff] }
 0x3ef   :  { %8654 = vmatpush1.bf16.msra.mxu1 %v10012_v56  ;;  %v1177_v56 = vld [vmem:[#allocation5 + $0x1cd0] sm:$0xff] }
 0x3f0   :  { %8655 = vmatprep.subr.bf16.mxu1 %v10021_v11  ;;  %v11702_v11 = vld [vmem:[#allocation28_spill] sm:$0xff]  ;;  %v10074_v29 = vcombine.low %v1177_v56, %v1181_v1 }
 0x3f1   :  { %8072 = vmatpush1.bf16.msra.mxu0 %v10018_v51  ;;  %v10075_v51 = vcombine.high %v1177_v56, %v1181_v1  ;;  %v1225_v56 = vld [vmem:[#allocation5 + $0x1e50] sm:$0xff] }
 0x3f2   :  { %8073 = vmatprep.subr.bf16.mxu0 %v10027_v28  ;;  %v1185_v28 = vld [vmem:[#allocation5 + $0x1d10] sm:$0xff] }
 0x3f3   :  { %8656 = vmatpush1.bf16.msra.mxu1 %v10020_v40  ;;  %v10077_v40 = vcombine.high %v1178_v55, %v1182_v21  ;;  %v1229_v1 = vld [vmem:[#allocation5 + $0x1e70] sm:$0xff] }
 0x3f4   :  { %8657 = vmatprep.subr.bf16.mxu1 %v10029_v27  ;;  %v1189_v27 = vld [vmem:[#allocation5 + $0x1d30] sm:$0xff] }
 0x3f5   :  { %8074 = vmatpush1.bf16.msra.mxu0 %v10026_v36  ;;  %v10076_v36 = vcombine.low %v1178_v55, %v1182_v21  ;;  %v1226_v55 = vld [vmem:[#allocation5 + $0x1e58] sm:$0xff] }
 0x3f6   :  { %8075 = vmatprep.subr.bf16.mxu0 %v10035_v23  ;;  %v10085_v23 = vcombine.high %v1186_v60, %v1190_v26  ;;  %v1230_v21 = vld [vmem:[#allocation5 + $0x1e78] sm:$0xff] }
 0x3f7   :  { %8658 = vmatpush1.bf16.msra.mxu1 %v10028_v18  ;;  %v10083_v18 = vcombine.high %v1185_v28, %v1189_v27 }
 0x3f8   :  { %8659 = vmatprep.subr.bf16.mxu1 %v10037_v30  ;;  %v1193_v30 = vld [vmem:[#allocation5 + $0x1d50] sm:$0xff] }
 0x3f9   :  { %8076 = vmatpush1.bf16.msra.mxu0 %v10034_v46  ;;  %v10082_v46 = vcombine.low %v1185_v28, %v1189_v27  ;;  %v1233_v28 = vld [vmem:[#allocation5 + $0x1e90] sm:$0xff] }
 0x3fa   :  { %8077 = vmatprep.subr.bf16.mxu0 %v10043_v12  ;;  %v10091_v12 = vcombine.high %v1193_v30, %v1197_v47  ;;  %v1237_v27 = vld [vmem:[#allocation5 + $0x1eb0] sm:$0xff] }
 0x3fb   :  { %8660 = vmatpush1.bf16.msra.mxu1 %v10036_v45  ;;  %v10084_v45 = vcombine.low %v1186_v60, %v1190_v26  ;;  %v1234_v60 = vld [vmem:[#allocation5 + $0x1e98] sm:$0xff] }
 0x3fc   :  { %8661 = vmatprep.subr.bf16.mxu1 %v10045_v37  ;;  %v10093_v37 = vcombine.high %v1194_v3, %v1198_v34  ;;  %v1238_v26 = vld [vmem:[#allocation5 + $0x1eb8] sm:$0xff] }
 0x3fd   :  { %8078 = vmatpush1.bf16.msra.mxu0 %v10042_v2  ;;  %v11705_v2 = vld [vmem:[#allocation31_spill] sm:$0xff] }
 0x3fe   :  { %8120 = vmatprep.subr.bf16.mxu0 %v10051_v7  ;;  %v10092_v7 = vcombine.low %v1194_v3, %v1198_v34  ;;  %v10130_v3 = vcombine.low %v1233_v28, %v1237_v27  ;;  %v10132_v34 = vcombine.low %v1234_v60, %v1238_v26 }
 0x3ff   :  { %8662 = vmatpush1.bf16.msra.mxu1 %v10044_v58  ;;  %v10090_v58 = vcombine.low %v1193_v30, %v1197_v47  ;;  %v1245_v30 = vld [vmem:[#allocation5 + $0x1ef0] sm:$0xff]  ;;  %v1242_v47 = vld [vmem:[#allocation5 + $0x1ed8] sm:$0xff] }
 0x400   :  { %8704 = vmatprep.subr.bf16.mxu1 %v10053_v52  ;;  %8080 = vmatmul.mubr.bf16.vlgmr.msra.gmra.mrb[16].mxu0 %v11701_v16  ;;  %v10099_v52 = vcombine.high %v1201_v38, %v1205_v57 }
 0x401   :  { %8121 = vmatpush1.bf16.msra.mxu0 %v10050_v5  ;;  %8089 = vmatprep.mubr.bf16.mxu0 %v11702_v11  ;;  %v1214_v5 = vld [vmem:[#allocation5 + $0x1df8] sm:$0xff] }
 0x402   :  { %8664 = vmatmul.mubr.bf16.vlgmr.msra.gmra.mrb[16].mxu1 %v11701_v16  ;;  %8122 = vmatprep.subr.bf16.mxu0 %v10059_v54  ;;  %v10100_v54 = vcombine.low %v1202_v50, %v1206_v10  ;;  %v10109_v0 = vcombine.high %v1210_v41, %v1214_v5  ;;  %v1221_v16 = vld [vmem:[#allocation5 + $0x1e30] sm:$0xff] }
 0x403   :  { %8705 = vmatpush1.bf16.msra.mxu1 %v10052_v19  ;;  %8673 = vmatprep.mubr.bf16.mxu1 %v11702_v11  ;;  %v10098_v19 = vcombine.low %v1201_v38, %v1205_v57  ;;  %v11707_v11 = vld [vmem:[#allocation33_spill] sm:$0xff]  ;;  %v1250_v38 = vld [vmem:[#allocation5 + $0x1f18] sm:$0xff] }
 0x404   :  { %8706 = vmatprep.subr.bf16.mxu1 %v10061_v22  ;;  %v10107_v22 = vcombine.high %v1209_v61, %v1213_v14  ;;  %v1254_v57 = vld [vmem:[#allocation5 + $0x1f38] sm:$0xff] }
 0x405   :  { %8123 = vmatpush1.bf16.msra.mxu0 %v10058_v63  ;;  %v11706_v63 = vld [vmem:[#allocation32_spill] sm:$0xff] }
 0x406   :  { %8124 = vmatprep.subr.bf16.mxu0 %v10067_v43  ;;  %v10115_v43 = vcombine.high %v1217_v42, %v1221_v16 }
 0x407   :  { %8707 = vmatpush1.bf16.msra.mxu1 %v10060_v15  ;;  %v10106_v15 = vcombine.low %v1209_v61, %v1213_v14  ;;  %v1262_v61 = vld [vmem:[#allocation5 + $0x1f78] sm:$0xff] }
 0x408   :  { %8708 = vmatprep.subr.bf16.mxu1 %v10069_v17  ;;  %8090 = vmatmul.mubr.bf16.gmra.mrb[20].mxu0 %v11703_v48  ;;  %v10117_v17 = vcombine.high %v1218_v33, %v1222_v8 }
 0x409   :  { %8125 = vmatpush1.bf16.msra.mxu0 %v10066_v53  ;;  %8099 = vmatprep.mubr.bf16.mxu0 %v11704_v35  ;;  %v10114_v53 = vcombine.low %v1217_v42, %v1221_v16  ;;  %v1270_v42 = vld [vmem:[#allocation5 + $0x1fb8] sm:$0xff] }
 0x40a   :  { %8674 = vmatmul.mubr.bf16.gmra.mrb[20].mxu1 %v11703_v48  ;;  %8126 = vmatprep.subr.bf16.mxu0 %v10075_v51  ;;  %v10123_v51 = vcombine.high %v1225_v56, %v1229_v1  ;;  %v10122_v48 = vcombine.low %v1225_v56, %v1229_v1 }
 0x40b   :  { %8709 = vmatpush1.bf16.msra.mxu1 %v10068_v59  ;;  %8683 = vmatprep.mubr.bf16.mxu1 %v11704_v35  ;;  %v10116_v59 = vcombine.low %v1218_v33, %v1222_v8  ;;  %v1246_v35 = vld [vmem:[#allocation5 + $0x1ef8] sm:$0xff] }
 0x40c   :  { %8710 = vmatprep.subr.bf16.mxu1 %v10077_v40  ;;  %v10125_v40 = vcombine.high %v1226_v55, %v1230_v21  ;;  %v10140_v10 = vcombine.low %v1242_v47, %v1246_v35 }
 0x40d   :  { %8127 = vmatpush1.bf16.msra.mxu0 %v10074_v29  ;;  %v10124_v29 = vcombine.low %v1226_v55, %v1230_v21 }
 0x40e   :  { %8128 = vmatprep.subr.bf16.mxu0 %v10083_v18  ;;  %v10133_v18 = vcombine.high %v1234_v60, %v1238_v26  ;;  %v1303_v60 = vsub.s32 5, %v11188_v62  ;;  %v1311_v26 = vsub.s32 7, %v11188_v62 }
 0x40f   :  { %8711 = vmatpush1.bf16.msra.mxu1 %v10076_v36  ;;  %v10131_v36 = vcombine.high %v1233_v28, %v1237_v27  ;;  %v1299_v28 = vsub.s32 4, %v11188_v62  ;;  %v1307_v27 = vsub.s32 6, %v11188_v62 }
 0x410   :  { %8712 = vmatprep.subr.bf16.mxu1 %v10085_v23  ;;  %8100 = vmatmul.mubr.bf16.gmra.mrb[24].mxu0 %v11705_v2  ;;  %v1241_v23 = vld [vmem:[#allocation5 + $0x1ed0] sm:$0xff] }
 0x411   :  { %8129 = vmatpush1.bf16.msra.mxu0 %v10082_v46  ;;  %8109 = vmatprep.mubr.bf16.mxu0 %v11108_v9  ;;  %v10139_v46 = vcombine.high %v1241_v23, %v1245_v30  ;;  %v10138_v50 = vcombine.low %v1241_v23, %v1245_v30 }
 0x412   :  { %8684 = vmatmul.mubr.bf16.gmra.mrb[24].mxu1 %v11705_v2  ;;  %8130 = vmatprep.subr.bf16.mxu0 %v10091_v12  ;;  %v1249_v12 = vld [vmem:[#allocation5 + $0x1f10] sm:$0xff] }
 0x413   :  { %8713 = vmatpush1.bf16.msra.mxu1 %v10084_v45  ;;  %8693 = vmatprep.mubr.bf16.mxu1 %v11108_v9  ;;  %v10108_v9 = vcombine.low %v1210_v41, %v1214_v5  ;;  %v10141_v45 = vcombine.high %v1242_v47, %v1246_v35  ;;  %v10148_v41 = vcombine.low %v1250_v38, %v1254_v57 }
 0x414   :  { %8714 = vmatprep.subr.bf16.mxu1 %v10093_v37  ;;  %v1253_v37 = vld [vmem:[#allocation5 + $0x1f30] sm:$0xff] }
 0x415   :  { %8131 = vmatpush1.bf16.msra.mxu0 %v10090_v58  ;;  %v10147_v2 = vcombine.high %v1249_v12, %v1253_v37  ;;  %v10149_v58 = vcombine.high %v1250_v38, %v1254_v57  ;;  %v10146_v14 = vcombine.low %v1249_v12, %v1253_v37 }
 0x416   :  { %8132 = vmatprep.subr.bf16.mxu0 %v10099_v52  ;;  %v1261_v52 = vld [vmem:[#allocation5 + $0x1f70] sm:$0xff] }
 0x417   :  { %8715 = vmatpush1.bf16.msra.mxu1 %v10092_v7  ;;  %v1257_v7 = vld [vmem:[#allocation5 + $0x1f50] sm:$0xff] }
 0x418   :  { %8716 = vmatprep.subr.bf16.mxu1 %v10101_v24  ;;  %8110 = vmatmul.mubr.bf16.gmra.mrb[28].mxu0 %v11706_v63  ;;  %v1258_v24 = vld [vmem:[#allocation5 + $0x1f58] sm:$0xff]  ;;  %v10155_v5 = vcombine.high %v1257_v7, %v1261_v52  ;;  %v10154_v16 = vcombine.low %v1257_v7, %v1261_v52 }
 0x419   :  { %8133 = vmatpush1.bf16.msra.mxu0 %v10098_v19  ;;  %8152 = vmatprep.mubr.bf16.mxu0 %v11707_v11  ;;  %v10157_v19 = vcombine.high %v1258_v24, %v1262_v61  ;;  %v10156_v33 = vcombine.low %v1258_v24, %v1262_v61 }
 0x41a   :  { %8694 = vmatmul.mubr.bf16.gmra.mrb[28].mxu1 %v11706_v63  ;;  %8134 = vmatprep.subr.bf16.mxu0 %v10107_v22  ;;  %v1269_v22 = vld [vmem:[#allocation5 + $0x1fb0] sm:$0xff] }
 0x41b   :  { %8717 = vmatpush1.bf16.msra.mxu1 %v10100_v54  ;;  %8736 = vmatprep.mubr.bf16.mxu1 %v11707_v11  ;;  %v1265_v54 = vld [vmem:[#allocation5 + $0x1f90] sm:$0xff] }
 0x41c   :  { %8718 = vmatprep.subr.bf16.mxu1 %v10109_v0  ;;  %v1266_v0 = vld [vmem:[#allocation5 + $0x1f98] sm:$0xff]  ;;  %v10163_v8 = vcombine.high %v1265_v54, %v1269_v22  ;;  %v10162_v56 = vcombine.low %v1265_v54, %v1269_v22 }
 0x41d   :  { %8135 = vmatpush1.bf16.msra.mxu0 %v10106_v15  ;;  %v10165_v63 = vcombine.high %v1266_v0, %v1270_v42  ;;  %v1273_v15 = vld [vmem:[#allocation5 + $0x1fd0] sm:$0xff]  ;;  %v10164_v1 = vcombine.low %v1266_v0, %v1270_v42 }
 0x41e   :  { %8136 = vmatprep.subr.bf16.mxu0 %v10115_v43  ;;  %v1274_v43 = vld [vmem:[#allocation5 + $0x1fd8] sm:$0xff] }
 0x41f   :  { %8719 = vmatpush1.bf16.msra.mxu1 %v10108_v9  ;;  %v1277_v9 = vld [vmem:[#allocation5 + $0x1ff0] sm:$0xff] }
 0x420   :  { %8720 = vmatprep.subr.bf16.mxu1 %v10117_v17  ;;  %v1278_v17 = vld [vmem:[#allocation5 + $0x1ff8] sm:$0xff]  ;;  %v10171_v11 = vcombine.high %v1273_v15, %v1277_v9  ;;  %v10170_v21 = vcombine.low %v1273_v15, %v1277_v9 }
 0x421   :  { %8137 = vmatpush1.bf16.msra.mxu0 %v10114_v53  ;;  %v10173_v55 = vcombine.high %v1274_v43, %v1278_v17  ;;  %v10172_v53 = vcombine.low %v1274_v43, %v1278_v17 }
 0x422   :  { %8138 = vmatprep.subr.bf16.mxu0 %v10123_v51  ;;  %v11709_v51 = vld [vmem:[#allocation35_spill] sm:$0xff] }
 0x423   :  { %8721 = vmatpush1.bf16.msra.mxu1 %v10116_v59  ;;  %v11708_v59 = vld [vmem:[#allocation34_spill] sm:$0xff] }
 0x424   :  { %8722 = vmatprep.subr.bf16.mxu1 %v10125_v40  ;;  %v11710_v40 = vld [vmem:[#allocation36_spill] sm:$0xff] }
 0x425   :  { %8139 = vmatpush1.bf16.msra.mxu0 %v10122_v48  ;;  %v10700_v48 = vld [vmem:[#allocation7] sm:$0xff] }
 0x426   :  { %8140 = vmatprep.subr.bf16.mxu0 %v10131_v36  ;;  %v11530_v36 = vrot.slane %v10700_v48, %v1303_v60 }
 0x427   :  { %8723 = vmatpush1.bf16.msra.mxu1 %v10124_v29  ;;  %v11526_v29 = vrot.slane %v10700_v48, %v1299_v28 }
 0x428   :  { %8724 = vmatprep.subr.bf16.mxu1 %v10133_v18 }
 0x429   :  { %8141 = vmatpush1.bf16.msra.mxu0 %v10130_v3 }
 0x42a   :  { %8142 = vmatprep.subr.bf16.mxu0 %v10139_v46 }
 0x42b   :  { %8725 = vmatpush1.bf16.msra.mxu1 %v10132_v34 }
 0x42c   :  { %8726 = vmatprep.subr.bf16.mxu1 %v10141_v45 }
 0x42d   :  { %8143 = vmatpush1.bf16.msra.mxu0 %v10138_v50 }
 0x42e   :  { %8144 = vmatprep.subr.bf16.mxu0 %v10147_v2 }
 0x42f   :  { %8727 = vmatpush1.bf16.msra.mxu1 %v10140_v10 }
 0x430   :  { %8728 = vmatprep.subr.bf16.mxu1 %v10149_v58 }
 0x431   :  { %8145 = vmatpush1.bf16.msra.mxu0 %v10146_v14 }
 0x432   :  { %8146 = vmatprep.subr.bf16.mxu0 %v10155_v5 }
 0x433   :  { %8729 = vmatpush1.bf16.msra.mxu1 %v10148_v41 }
 0x434   :  { %8730 = vmatprep.subr.bf16.mxu1 %v10157_v19 }
 0x435   :  { %8147 = vmatpush1.bf16.msra.mxu0 %v10154_v16 }
 0x436   :  { %8148 = vmatprep.subr.bf16.mxu0 %v10163_v8 }
 0x437   :  { %8731 = vmatpush1.bf16.msra.mxu1 %v10156_v33 }
 0x438   :  { %8732 = vmatprep.subr.bf16.mxu1 %v10165_v63 }
 0x439   :  { %8149 = vmatpush1.bf16.msra.mxu0 %v10162_v56 }
 0x43a   :  { %8150 = vmatprep.subr.bf16.mxu0 %v10171_v11 }
 0x43b   :  { %8733 = vmatpush1.bf16.msra.mxu1 %v10164_v1 }
 0x43c   :  { %8734 = vmatprep.subr.bf16.mxu1 %v10173_v55 }
 0x43d   :  { %8151 = vmatpush1.bf16.msra.mxu0 %v10170_v21 }
 0x43f   :  { %8735 = vmatpush1.bf16.msra.mxu1 %v10172_v53 }
 0x440   :  { %8153 = vmatmul.mubr.bf16.vlgmr.msra.gmra.mrb[16].mxu0 %v11122_v49 }
 0x441   :  { %8162 = vmatprep.mubr.bf16.mxu0 %v11708_v59 }
 0x442   :  { %8737 = vmatmul.mubr.bf16.vlgmr.msra.gmra.mrb[16].mxu1 %v11122_v49  ;;  %v11711_v49 = vld [vmem:[#allocation37_spill] sm:$0xff] }
 0x443   :  { %8746 = vmatprep.mubr.bf16.mxu1 %v11708_v59 }
 0x448   :  { %8163 = vmatmul.mubr.bf16.gmra.mrb[20].mxu0 %v11709_v51 }
 0x449   :  { %8172 = vmatprep.mubr.bf16.mxu0 %v11710_v40 }
 0x44a   :  { %8747 = vmatmul.mubr.bf16.gmra.mrb[20].mxu1 %v11709_v51 }
 0x44b   :  { %8756 = vmatprep.mubr.bf16.mxu1 %v11710_v40 }
 0x450   :  { %8173 = vmatmul.mubr.bf16.gmra.mrb[24].mxu0 %v11138_v44 }
 0x451   :  { %8182 = vmatprep.mubr.bf16.mxu0 %v11140_v39 }
 0x452   :  { %8757 = vmatmul.mubr.bf16.gmra.mrb[24].mxu1 %v11138_v44  ;;  %v11528_v44 = vrot.slane %v10700_v48, %v1307_v27 }
 0x453   :  { %8766 = vmatprep.mubr.bf16.mxu1 %v11140_v39  ;;  %v11532_v39 = vrot.slane %v10700_v48, %v1311_v26 }
 0x458   :  { %8183 = vmatmul.mubr.bf16.gmra.mrb[28].mxu0 %v11711_v49 }
 0x45a   :  { %8767 = vmatmul.mubr.bf16.gmra.mrb[28].mxu1 %v11711_v49 }
 0x513   :  { %v8154_v18 = vpop.f32.mrb[16].mxu0 }
 0x514   :  { %v10206_v23 = vadd.f32 %v8154_v18, %v11526_v29  ;;  %v8156_v47 = vpop.f32.mrb[17].mxu0 }
 0x515   :  { %v8738_v30 = vpop.f32.mrb[16].mxu1  ;;  %v10207_v3 = vadd.f32 %v8156_v47, %v11530_v36  ;;  %v8158_v62 = vpop.f32.mrb[18].mxu0 }
 0x516   :  { %v10222_v35 = vadd.f32 %v8738_v30, %v11528_v44  ;;  %v8740_v34 = vpop.f32.mrb[17].mxu1  ;;  %8781 = vst [vmem:[#allocation8 + $0x20] sm:$0xff] %v10206_v23  ;;  %v10208_v45 = vadd.f32 %v8158_v62, %v11526_v29  ;;  %v8160_v37 = vpop.f32.mrb[19].mxu0 }
 0x517   :  { %v10223_v46 = vadd.f32 %v8740_v34, %v11532_v39  ;;  %v8742_v12 = vpop.f32.mrb[18].mxu1  ;;  %8782 = vst [vmem:[#allocation8 + $0x28] sm:$0xff] %v10207_v3  ;;  %v10209_v57 = vadd.f32 %v8160_v37, %v11530_v36 }
 0x518   :  { %8783 = vst [vmem:[#allocation8 + $0x30] sm:$0xff] %v10222_v35  ;;  %v10224_v38 = vadd.f32 %v8742_v12, %v11528_v44  ;;  %v8744_v50 = vpop.f32.mrb[19].mxu1  ;;  %8789 = vst [vmem:[#allocation8 + $0x60] sm:$0xff] %v10208_v45  ;;  %v8879_v10 = vadd.f32 %v10208_v45, %v10206_v23 }
 0x519   :  { %8784 = vst [vmem:[#allocation8 + $0x38] sm:$0xff] %v10223_v46  ;;  %v10225_v2 = vadd.f32 %v8744_v50, %v11532_v39  ;;  %8790 = vst [vmem:[#allocation8 + $0x68] sm:$0xff] %v10209_v57  ;;  %v8888_v7 = vadd.f32 %v10209_v57, %v10207_v3 }
 0x51a   :  { %8791 = vst [vmem:[#allocation8 + $0x70] sm:$0xff] %v10224_v38  ;;  %v8897_v58 = vadd.f32 %v10224_v38, %v10222_v35 }
 0x51b   :  { %8792 = vst [vmem:[#allocation8 + $0x78] sm:$0xff] %v10225_v2  ;;  %v8906_v52 = vadd.f32 %v10225_v2, %v10223_v46  ;;  %v8164_v24 = vpop.f32.mrb[20].mxu0 }
 0x51c   :  { %v10210_v61 = vadd.f32 %v8164_v24, %v11526_v29  ;;  %v8166_v41 = vpop.f32.mrb[21].mxu0 }
 0x51d   :  { %v8748_v14 = vpop.f32.mrb[20].mxu1  ;;  %v10211_v19 = vadd.f32 %v8166_v41, %v11530_v36  ;;  %v8168_v22 = vpop.f32.mrb[22].mxu0 }
 0x51e   :  { %v10226_v5 = vadd.f32 %v8748_v14, %v11528_v44  ;;  %v8750_v54 = vpop.f32.mrb[21].mxu1  ;;  %8797 = vst [vmem:[#allocation8 + $0xa0] sm:$0xff] %v10210_v61  ;;  %v8880_v0 = vadd.f32 %v10210_v61, %v8879_v10  ;;  %v10212_v16 = vadd.f32 %v8168_v22, %v11526_v29  ;;  %v8170_v8 = vpop.f32.mrb[23].mxu0 }
 0x51f   :  { %v10227_v42 = vadd.f32 %v8750_v54, %v11532_v39  ;;  %v8752_v33 = vpop.f32.mrb[22].mxu1  ;;  %8798 = vst [vmem:[#allocation8 + $0xa8] sm:$0xff] %v10211_v19  ;;  %v8889_v15 = vadd.f32 %v10211_v19, %v8888_v7  ;;  %v10213_v43 = vadd.f32 %v8170_v8, %v11530_v36 }
 0x520   :  { %8799 = vst [vmem:[#allocation8 + $0xb0] sm:$0xff] %v10226_v5  ;;  %v8898_v63 = vadd.f32 %v10226_v5, %v8897_v58  ;;  %v10228_v9 = vadd.f32 %v8752_v33, %v11528_v44  ;;  %v8754_v17 = vpop.f32.mrb[23].mxu1  ;;  %8805 = vst [vmem:[#allocation8 + $0xe0] sm:$0xff] %v10212_v16  ;;  %v8881_v1 = vadd.f32 %v10212_v16, %v8880_v0 }
 0x521   :  { %8800 = vst [vmem:[#allocation8 + $0xb8] sm:$0xff] %v10227_v42  ;;  %v8907_v56 = vadd.f32 %v10227_v42, %v8906_v52  ;;  %v10229_v11 = vadd.f32 %v8754_v17, %v11532_v39  ;;  %8806 = vst [vmem:[#allocation8 + $0xe8] sm:$0xff] %v10213_v43  ;;  %v8890_v21 = vadd.f32 %v10213_v43, %v8889_v15 }
 0x522   :  { %8807 = vst [vmem:[#allocation8 + $0xf0] sm:$0xff] %v10228_v9  ;;  %v8899_v55 = vadd.f32 %v10228_v9, %v8898_v63  ;;  %v8882_v53 = vrot.slane %v8881_v1, 4 }
 0x523   :  { %8808 = vst [vmem:[#allocation8 + $0xf8] sm:$0xff] %v10229_v11  ;;  %v8908_v59 = vadd.f32 %v10229_v11, %v8907_v56  ;;  %v8891_v40 = vrot.slane %v8890_v21, 4  ;;  %v8174_v49 = vpop.f32.mrb[24].mxu0 }
 0x524   :  { %v8900_v51 = vrot.slane %v8899_v55, 4  ;;  %v8883_v28 = vadd.f32 %v8882_v53, %v8881_v1  ;;  %v10214_v60 = vadd.f32 %v8174_v49, %v11526_v29  ;;  %v8176_v48 = vpop.f32.mrb[25].mxu0 }
 0x525   :  { %v8909_v27 = vrot.slane %v8908_v59, 4  ;;  %v8758_v26 = vpop.f32.mrb[24].mxu1  ;;  %v8892_v23 = vadd.f32 %v8891_v40, %v8890_v21  ;;  %v10215_v47 = vadd.f32 %v8176_v48, %v11530_v36  ;;  %v8178_v3 = vpop.f32.mrb[26].mxu0 }
 0x526   :  { %v8901_v18 = vadd.f32 %v8900_v51, %v8899_v55  ;;  %v10230_v30 = vadd.f32 %v8758_v26, %v11528_v44  ;;  %v8760_v35 = vpop.f32.mrb[25].mxu1  ;;  %v8884_v34 = vrot.slane %v8883_v28, 2  ;;  %8813 = vst [vmem:[#allocation8 + $0x120] sm:$0xff] %v10214_v60  ;;  %v10216_v45 = vadd.f32 %v8178_v3, %v11526_v29  ;;  %v8180_v37 = vpop.f32.mrb[27].mxu0 }
 0x527   :  { %v8910_v62 = vadd.f32 %v8909_v27, %v8908_v59  ;;  %v10231_v46 = vadd.f32 %v8760_v35, %v11532_v39  ;;  %v8762_v12 = vpop.f32.mrb[26].mxu1  ;;  %v8893_v57 = vrot.slane %v8892_v23, 2  ;;  %8814 = vst [vmem:[#allocation8 + $0x128] sm:$0xff] %v10215_v47  ;;  %v10217_v10 = vadd.f32 %v8180_v37, %v11530_v36 }
 0x528   :  { %v8902_v38 = vrot.slane %v8901_v18, 2  ;;  %8815 = vst [vmem:[#allocation8 + $0x130] sm:$0xff] %v10230_v30  ;;  %v10232_v50 = vadd.f32 %v8762_v12, %v11528_v44  ;;  %v8764_v2 = vpop.f32.mrb[27].mxu1  ;;  %v8885_v58 = vadd.f32 %v8884_v34, %v8883_v28  ;;  %8821 = vst [vmem:[#allocation8 + $0x160] sm:$0xff] %v10216_v45  ;;  %v8951_v52 = vadd.f32 %v10216_v45, %v10214_v60 }
 0x529   :  { %v8911_v7 = vrot.slane %v8910_v62, 2  ;;  %8816 = vst [vmem:[#allocation8 + $0x138] sm:$0xff] %v10231_v46  ;;  %v10233_v24 = vadd.f32 %v8764_v2, %v11532_v39  ;;  %v8894_v14 = vadd.f32 %v8893_v57, %v8892_v23  ;;  %8822 = vst [vmem:[#allocation8 + $0x168] sm:$0xff] %v10217_v10  ;;  %v8960_v5 = vadd.f32 %v10217_v10, %v10215_v47 }
 0x52a   :  { %v8903_v61 = vadd.f32 %v8902_v38, %v8901_v18  ;;  %8823 = vst [vmem:[#allocation8 + $0x170] sm:$0xff] %v10232_v50  ;;  %v8969_v41 = vadd.f32 %v10232_v50, %v10230_v30  ;;  %v8886_v19 = vrot.slane %v8885_v58, 1 }
 0x52b   :  { %v8912_v54 = vadd.f32 %v8911_v7, %v8910_v62  ;;  %8824 = vst [vmem:[#allocation8 + $0x178] sm:$0xff] %v10233_v24  ;;  %v8978_v22 = vadd.f32 %v10233_v24, %v10231_v46  ;;  %v8895_v42 = vrot.slane %v8894_v14, 1  ;;  %v8184_v16 = vpop.f32.mrb[28].mxu0 }
 0x52c   :  { %v8904_v0 = vrot.slane %v8903_v61, 1  ;;  %v8887_v33 = vadd.f32 %v8886_v19, %v8885_v58  ;;  %v10218_v63 = vadd.f32 %v8184_v16, %v11526_v29  ;;  %v8186_v9 = vpop.f32.mrb[29].mxu0 }
 0x52d   :  { %v8913_v8 = vrot.slane %v8912_v54, 1  ;;  %v8768_v15 = vpop.f32.mrb[28].mxu1  ;;  %v8896_v17 = vadd.f32 %v8895_v42, %v8894_v14  ;;  %v10219_v1 = vadd.f32 %v8186_v9, %v11530_v36  ;;  %v8188_v55 = vpop.f32.mrb[30].mxu0 }
 0x52e   :  { %v8905_v43 = vadd.f32 %v8904_v0, %v8903_v61  ;;  %v10234_v56 = vadd.f32 %v8768_v15, %v11528_v44  ;;  %v8770_v11 = vpop.f32.mrb[29].mxu1  ;;  %8829 = vst [vmem:[#allocation8 + $0x1a0] sm:$0xff] %v10218_v63  ;;  %v8952_v53 = vadd.f32 %v10218_v63, %v8951_v52  ;;  %v10220_v51 = vadd.f32 %v8188_v55, %v11526_v29  ;;  %v8190_v49 = vpop.f32.mrb[31].mxu0 }
 0x52f   :  { %v8914_v21 = vadd.f32 %v8913_v8, %v8912_v54  ;;  %v10235_v59 = vadd.f32 %v8770_v11, %v11532_v39  ;;  %v8772_v40 = vpop.f32.mrb[30].mxu1  ;;  %v9005_v28 = vcombine.low %v8887_v33, %v8896_v17  ;;  %8830 = vst [vmem:[#allocation8 + $0x1a8] sm:$0xff] %v10219_v1  ;;  %v8961_v60 = vadd.f32 %v10219_v1, %v8960_v5 }
 0x530   :  { %8831 = vst [vmem:[#allocation8 + $0x1b0] sm:$0xff] %v10234_v56  ;;  %v8970_v27 = vadd.f32 %v10234_v56, %v8969_v41  ;;  %v10236_v26 = vadd.f32 %v8772_v40, %v11528_v44  ;;  %v8774_v48 = vpop.f32.mrb[31].mxu1  ;;  %8837 = vst [vmem:[#allocation8 + $0x1e0] sm:$0xff] %v10220_v51  ;;  %v8953_v30 = vadd.f32 %v10220_v51, %v8952_v53 }
 0x531   :  { %v9006_v18 = vcombine.low %v8905_v43, %v8914_v21  ;;  %8832 = vst [vmem:[#allocation8 + $0x1b8] sm:$0xff] %v10235_v59  ;;  %v8979_v23 = vadd.f32 %v10235_v59, %v8978_v22  ;;  %v10221_v47 = vadd.f32 %v8190_v49, %v11530_v36  ;;  %v9027_v29 = vrot.slane %v9005_v28, %v11339_v6 }
 0x532   :  { %8839 = vst [vmem:[#allocation8 + $0x1f0] sm:$0xff] %v10236_v26  ;;  %v8971_v35 = vadd.f32 %v10236_v26, %v8970_v27  ;;  %v10237_v3 = vadd.f32 %v8774_v48, %v11532_v39  ;;  %v8954_v62 = vrot.slane %v8953_v30, 4 }
 0x533   :  { %v9034_v34 = vrot.slane %v9006_v18, %v11339_v6  ;;  %8838 = vst [vmem:[#allocation8 + $0x1e8] sm:$0xff] %v10221_v47  ;;  %v8962_v44 = vadd.f32 %v10221_v47, %v8961_v60 }
 0x534   :  { %v8972_v46 = vrot.slane %v8971_v35, 4  ;;  %8840 = vst [vmem:[#allocation8 + $0x1f8] sm:$0xff] %v10237_v3  ;;  %v8980_v45 = vadd.f32 %v10237_v3, %v8979_v23  ;;  %v8955_v37 = vadd.f32 %v8954_v62, %v8953_v30 }
 0x535   :  { %v9036_v12 = vcombine.low %v9027_v29, %v9034_v34  ;;  %v8963_v38 = vrot.slane %v8962_v44, 4 }
 0x536   :  { %10778 = shalt.err (!%p10775_p0)
}
 0x537   :  { %s10779_s5 = scalar_lea.hbm %s11609_s3, 8192 }
 0x538   :  { %p10780_p1 = scmp.ne.s32.totalorder %s11609_s3, %s10779_s5  ;;  %p10783_p2 = scmp.lt.u32.totalorder %s10779_s5, %s11609_s3 }
 0x53a   :  { %p10785_p3 = pnand %p10783_p2, %p10780_p1 }
 0x53c   :  { %10788 = shalt.err (!%p10785_p3)
}
 0x53d   :  { %s10828_s10 = smov 1024   ;;  %s10829_s11 = smov 64   ;;  %v8973_v36 = vadd.f32 %v8972_v46, %v8971_v35  ;;  %v8981_v39 = vrot.slane %v8980_v45, 4  ;;  %v9043_v57 = vrot.slane %v9035_v20, %v11339_v6  ;;  %v9050_v50 = vrot.slane %v9036_v12, %v11339_v6 }
 0x53e   :  { %9127 = dma.vmem_to_hbm [thread:$0]  %s9122_s27, 8192, %s11609_s3, [#allocation4], %s10828_s10, %s10828_s10, %s10829_s11   ;;  %v8956_v10 = vrot.slane %v8955_v37, 2  ;;  %v8964_v2 = vadd.f32 %v8963_v38, %v8962_v44  ;;  %v9092_v17 = vrot.slane %v9084_v32, %v11339_v6 }
 0x53f   :  { %v8974_v58 = vrot.slane %v8973_v36, 2  ;;  %v8982_v7 = vadd.f32 %v8981_v39, %v8980_v45  ;;  %v9051_v61 = vcombine.low %v9043_v57, %v9050_v50  ;;  %s10830_s3 = smov [#allocation9]  }
 0x540   :  { %v8957_v52 = vadd.f32 %v8956_v10, %v8955_v37  ;;  %v8965_v24 = vrot.slane %v8964_v2, 2  ;;  %s9133_s14 = sshll.u32 %s10830_s3, 4  ;;  %s9134_s14 = int_to_ptr.vmem [resolvable:$true] %s9133_s14 }
 0x541   :  { %v8975_v14 = vadd.f32 %v8974_v58, %v8973_v36  ;;  %v8983_v41 = vrot.slane %v8982_v7, 2  ;;  %v9112_v16 = vmul.f32 0.03125, %v9051_v61  ;;  %s10789_s15 = scalar_lea.vmem %s9134_s14, 256  ;;  %p10794_p5 = scmp.lt.s32.totalorder %s9134_s14, %s9134_s14 }
 0x542   :  { %v8958_v5 = vrot.slane %v8957_v52, 1  ;;  %v8966_v19 = vadd.f32 %v8965_v24, %v8964_v2  ;;  %p10790_p4 = scmp.ne.s32.totalorder %s9134_s14, %s10789_s15  ;;  %p10795_p6 = scmp.lt.s32.totalorder %s10789_s15, %s10789_s15 }
 0x543   :  { %v8976_v54 = vrot.slane %v8975_v14, 1  ;;  %v8984_v22 = vadd.f32 %v8983_v41, %v8982_v7  ;;  %9114 = vst [vmem:[#allocation9] sm:$0xff] %v9112_v16 }
 0x544   :  { %v8959_v0 = vadd.f32 %v8958_v5, %v8957_v52  ;;  %v8967_v42 = vrot.slane %v8966_v19, 1  ;;  %p10796_p7 = por %p10795_p6, %p10794_p5 }
 0x545   :  { %v8977_v4 = vadd.f32 %v8976_v54, %v8975_v14  ;;  %v8985_v25 = vrot.slane %v8984_v22, 1 }
 0x546   :  { %v8968_v20 = vadd.f32 %v8967_v42, %v8966_v19  ;;  %p10797_p8 = pnand %p10796_p7, %p10790_p4 }
 0x547   :  { %v8986_v33 = vadd.f32 %v8985_v25, %v8984_v22 }
 0x548   :  { %v9054_v8 = vcombine.low %v8959_v0, %v8968_v20 }
 0x549   :  { %v9055_v63 = vcombine.low %v8977_v4, %v8986_v33 }
 0x54a   :  { %v9076_v15 = vrot.slane %v9054_v8, %v11339_v6 }
 0x54b   :  { %v9083_v9 = vrot.slane %v9055_v63, %v11339_v6 }
 0x54d   :  { %v9085_v43 = vcombine.low %v9076_v15, %v9083_v9 }
 0x54f   :  { %v9099_v56 = vrot.slane %v9085_v43, %v11339_v6 }
 0x551   :  { %v9100_v1 = vcombine.low %v9092_v17, %v9099_v56 }
 0x553   :  { %v9113_v11 = vmul.f32 0.03125, %v9100_v1 }
 0x555   :  { %9115 = vst [vmem:[#allocation9 + $0x8] sm:$0xff] %v9113_v11 }
 0x556   :  { %10800 = shalt.err (!%p10797_p8)
}
 0x557   :  { %s10801_s18 = scalar_lea.hbm %s11610_s4, 256 }
 0x558   :  { %p10802_p9 = scmp.ne.s32.totalorder %s11610_s4, %s10801_s18  ;;  %p10805_p10 = scmp.lt.u32.totalorder %s10801_s18, %s11610_s4 }
 0x55a   :  { %p10807_p11 = pnand %p10805_p10, %p10802_p9 }
 0x55c   :  { %10810 = shalt.err (!%p10807_p11)
}
 0x55d   :  { %s10831_s23 = smov 8  }
 0x55e   :  { %9139 = dma.vmem_to_hbm [thread:$0]  %s9134_s14, 256, %s11610_s4, [#allocation10], %s10824_s13, %s10824_s13, %s10831_s23  }
 0x55f   :  { %10815 = dma.done.wait [#allocation4], 8192  }
 0x560   :  { %10816 = vsyncadd [#allocation4], 4294959104 }
 0x561   :  { %10817 = dma.done.wait [#allocation10], 256  }
 0x562   :  { %10818 = vsyncadd [#allocation10], 4294967040 }
 0x563   :  { %9146 = vsyncpa [#allocation3], 1 }
 0x564   :  { %9147 = vsyncpa [#allocation6], 1 }
 0x565   :  { %9148 = vsyncpa [#allocation4], 1 }
 0x566   :  { %9149 = vsyncpa [#allocation10], 1 }

</bundles_post_ra>
